<compile_context>
chip_gen: v7x
topology: tpu7x:2x2x1
jax: 0.10.0
libtpu: 0.0.40
codegen_flags: <defaults>
</compile_context>

<pallas_src>
import functools

import jax
import jax.numpy as jnp
from jax.experimental import pallas as pl
from jax.experimental.pallas import tpu as pltpu


def _round_up(x, m):
    return (x + m - 1) // m * m


def _device_kind():
    try:
        return jax.devices()[0].device_kind.lower()
    except Exception:
        return ""


def _vmem_capacity_bytes(kind):
    try:
        cap = int(pltpu.get_tpu_info().vmem_capacity_bytes)
        if cap > 0:
            return cap
    except Exception:
        pass
    # Fallback from the device-kind string; conservative (v7x-sized) otherwise.
    if "v5" in kind or "v6" in kind:
        return 128 * 1024 * 1024
    return 64 * 1024 * 1024


def _has_256_deep_mxu(kind):
    # v2-v5 TensorCores carry 128-deep MXUs; v6e / v7x are 256-deep.
    return not any(tag in kind for tag in ("v2", "v3", "v4", "v5"))


# ----------------------------------------------------------------------------
# Pallas kernel: fused per-step input projection + interleaved BiLSTM recurrence
# + FC head over one (S, Bt, Ep) batch tile.
# ----------------------------------------------------------------------------
def _entity_kernel(emb_ref,      # (S, Bt, Ep)            compute dtype
                   w_ih_ref,     # (Ep, 8*H2p)            compute dtype  [fwd gates | rev gates]
                   w_hh_ref,     # fuse_hh: (2*H2p, 8*H2p) block-diag; else (H2p, 8*H2p) = [fwd | rev]
                   b_ref,        # (1, 8*H2p)             f32            [fwd | rev] (bias_ih + bias_hh)
                   fc_w_ref,     # (2*H2p, Tp)            compute dtype  rows = [fwd hidden | rev hidden]
                   fc_b_ref,     # (1, Tp)                f32
                   out_ref,      # (S, Bt, Tp)            out dtype
                   h_ref,        # scratch (S, Bt, 2*H2p) compute dtype
                   *, fuse_hh, unroll):
    S, Bt, Ep = emb_ref.shape
    H2p = h_ref.shape[-1] // 2
    Tp = fc_w_ref.shape[1]
    cdt = emb_ref.dtype

    # Loop-invariant weight / bias loads, hoisted out of the serial recurrence.
    w_ih_f = w_ih_ref[:, 0:4 * H2p]            # (Ep, 4*H2p)
    w_ih_r = w_ih_ref[:, 4 * H2p:8 * H2p]
    b_f = b_ref[:, 0:4 * H2p]                  # (1, 4*H2p) f32
    b_r = b_ref[:, 4 * H2p:8 * H2p]
    if fuse_hh:
        w_hh = w_hh_ref[...]                   # (2*H2p, 8*H2p) block-diagonal
    else:
        w_hh_f = w_hh_ref[:, 0:4 * H2p]        # (H2p, 4*H2p)
        w_hh_r = w_hh_ref[:, 4 * H2p:8 * H2p]

    def lstm_cell(gates, c):
        # PyTorch gate order i, f, g, o; every gate block is a 128-lane-aligned slice.
        i_g = jax.nn.sigmoid(gates[:, 0 * H2p:1 * H2p])
        f_g = jax.nn.sigmoid(gates[:, 1 * H2p:2 * H2p])
        g_g = jnp.tanh(gates[:, 2 * H2p:3 * H2p])
        o_g = jax.nn.sigmoid(gates[:, 3 * H2p:4 * H2p])
        c_new = f_g * c + i_g * g_g
        h_new = o_g * jnp.tanh(c_new)
        return h_new, c_new

    # Forward and reverse recurrences interleaved in one loop: two independent
    # chains fill each other's MXU/EUP latency gaps. (On v5e the recurrence is
    # EUP-bound at large Bt*H2p; the extra per-step input-projection MXU work
    # hides under the transcendental chain.)
    def step(i, carry):
        h_f, c_f, h_r, c_r = carry
        t_f = i
        t_r = S - 1 - i
        x_f = emb_ref[t_f]                     # (Bt, Ep)
        x_r = emb_ref[t_r]
        # Input projections: carry-independent, so they overlap with the h-chain.
        xg_f = jnp.dot(x_f, w_ih_f, preferred_element_type=jnp.float32) + b_f
        xg_r = jnp.dot(x_r, w_ih_r, preferred_element_type=jnp.float32) + b_r
        if fuse_hh:
            # Single K=2*H2p issue on the latency-critical chain: fills the
            # 256-deep MXU on v6e/v7x and halves per-step MXU issue overhead.
            h_cat = jnp.concatenate([h_f, h_r], axis=1)
            hh = jnp.dot(h_cat, w_hh, preferred_element_type=jnp.float32)
            g_f = xg_f + hh[:, 0:4 * H2p]
            g_r = xg_r + hh[:, 4 * H2p:8 * H2p]
        else:
            # v5e / 128-deep MXUs: two native K=128 matmuls, no block-diag zeros.
            g_f = xg_f + jnp.dot(h_f, w_hh_f, preferred_element_type=jnp.float32)
            g_r = xg_r + jnp.dot(h_r, w_hh_r, preferred_element_type=jnp.float32)
        hf_new, cf_new = lstm_cell(g_f, c_f)
        hr_new, cr_new = lstm_cell(g_r, c_r)
        # h carry is re-quantized to compute dtype each step (cell state c stays
        # f32); pass compute_dtype=float32 if drift matters at very long S.
        hf_c = hf_new.astype(cdt)
        hr_c = hr_new.astype(cdt)
        # forward hidden -> low lane half, reverse -> high lane half (lane aligned).
        h_ref[pl.ds(t_f, 1), :, pl.ds(0, H2p)] = hf_c[None]
        h_ref[pl.ds(t_r, 1), :, pl.ds(H2p, H2p)] = hr_c[None]
        return hf_c, cf_new, hr_c, cr_new

    h0 = jnp.zeros((Bt, H2p), cdt)
    c0 = jnp.zeros((Bt, H2p), jnp.float32)
    jax.lax.fori_loop(0, S, step, (h0, c0, h0, c0), unroll=unroll)

    # nn.Dropout is the identity at inference -> no-op.

    # FC head: one MXU matmul on the concatenated hidden scratch, lane-dense store.
    h2d = h_ref[...].reshape(S * Bt, 2 * H2p)
    logits = jnp.dot(h2d, fc_w_ref[...], preferred_element_type=jnp.float32) + fc_b_ref[...]
    out_ref[...] = logits.reshape(S, Bt, Tp).astype(out_ref.dtype)


# ----------------------------------------------------------------------------
# Wrapper: padding / weight re-layout + pallas_call with a batch grid.
# ----------------------------------------------------------------------------
def entity_recognition_forward(x_tokens, params, *, compute_dtype=jnp.bfloat16,
                               out_dtype=None, batch_tile=None, fuse_hh=None):
    """x_tokens: (S, B) int32 token ids. Returns (S, B, num_tags) logits.

    Expected params layout (PyTorch nn.LSTM / nn.Linear conventions):
      emb_table (V, E); wih_* (4*H2, E); whh_* (4*H2, H2) in i,f,g,o order;
      b_* (1, 4*H2) MUST already be bias_ih + bias_hh summed; fc_w (T, 2*H2),
      columns ordered [forward hidden | reverse hidden]; fc_b (1, T).
    """
    emb_table = params["emb_table"]
    S, B = x_tokens.shape
    E = emb_table.shape[1]
    H2 = params["whh_f"].shape[1]
    T = params["fc_w"].shape[0]

    out_dtype = compute_dtype if out_dtype is None else out_dtype

    H2p = _round_up(H2, 128)                   # lane-align each gate block
    Ep = _round_up(E, 128)
    Tp = _round_up(T, 128)                     # lane-dense logits store

    # ---- generation-aware sizing -------------------------------------------------
    kind = _device_kind()
    vmem_cap = _vmem_capacity_bytes(kind)
    # Scoped-VMEM budget with headroom for compiler scratch (v7x ~50 MiB, v5e/v6e ~100 MiB).
    vmem_budget = min(int(vmem_cap * 0.80), vmem_cap - 12 * 1024 * 1024)
    if fuse_hh is None:
        fuse_hh = _has_256_deep_mxu(kind)

    csz = jnp.dtype(compute_dtype).itemsize
    osz = jnp.dtype(out_dtype).itemsize
    whh_rows = 2 * H2p if fuse_hh else H2p
    wbytes = (Ep * 8 * H2p + whh_rows * 8 * H2p + 2 * H2p * Tp) * csz + (8 * H2p + Tp) * 4

    def vmem_need(bt):
        need = 2 * S * bt * Ep * csz           # embedded input block (double-buffered)
        need += 2 * S * bt * Tp * osz          # logits output block (double-buffered)
        need += S * bt * 2 * H2p * csz         # hidden scratch
        need += 2 * wbytes                     # broadcast weights (double-buffered)
        return need

    B8 = _round_up(B, 8)
    if batch_tile is None:
        batch_tile = 64 if vmem_cap <= 64 * 1024 * 1024 else 128   # v7x: smaller tiles
    Bt = min(_round_up(batch_tile, 8), B8)
    if B8 >= 16:
        # Keep >=2 grid programs so ("parallel",) can shard across v7x's 2 TensorCores.
        Bt = min(Bt, _round_up((B8 + 1) // 2, 8))
    while Bt > 8 and vmem_need(Bt) > vmem_budget:
        Bt = max(8, _round_up(Bt // 2, 8))
    # TODO(synk): if vmem_need(8) still exceeds vmem_budget (very long S), chunk the
    #             S axis with manual DMA double-buffering instead of shrinking Bt.
    Bp = _round_up(B, Bt)

    # ---- embedding gather (plain-JAX glue) directly in compute dtype -------------
    emb_table_p = jnp.pad(emb_table, ((0, 0), (0, Ep - E))).astype(compute_dtype)   # (V, Ep)
    embedded = emb_table_p[x_tokens]                                                # (S, B, Ep)
    embedded = jnp.pad(embedded, ((0, 0), (0, Bp - B), (0, 0)))

    # ---- weight re-layout: per-gate zero pad, pre-transpose (no .T in-kernel) ----
    def pad_gate_rows(w):                       # (4*H2, X) -> (4*H2p, X)
        blocks = [w[k * H2:(k + 1) * H2] for k in range(4)]
        return jnp.concatenate(
            [jnp.pad(blk, ((0, H2p - H2), (0, 0))) for blk in blocks], axis=0)

    def prep_w_ih(w):                           # (4H2, E) -> (Ep, 4H2p)
        w = pad_gate_rows(w)
        w = jnp.pad(w, ((0, 0), (0, Ep - E)))
        return w.T

    def prep_w_hh(w):                           # (4H2, H2) -> (H2p, 4H2p)
        w = pad_gate_rows(w)
        w = jnp.pad(w, ((0, 0), (0, H2p - H2)))
        return w.T

    def pad_gate_cols(b):                       # (1, 4H2) -> (1, 4H2p)
        blocks = [b[:, k * H2:(k + 1) * H2] for k in range(4)]
        return jnp.concatenate(
            [jnp.pad(blk, ((0, 0), (0, H2p - H2))) for blk in blocks], axis=1)

    w_ih = jnp.concatenate([prep_w_ih(params["wih_f"]),
                            prep_w_ih(params["wih_r"])], axis=1)          # (Ep, 8H2p)
    whh_f_t = prep_w_hh(params["whh_f"])                                   # (H2p, 4H2p)
    whh_r_t = prep_w_hh(params["whh_r"])
    if fuse_hh:
        z = jnp.zeros_like(whh_f_t)
        w_hh = jnp.concatenate([jnp.concatenate([whh_f_t, z], axis=1),
                                jnp.concatenate([z, whh_r_t], axis=1)], axis=0)  # (2H2p, 8H2p)
    else:
        w_hh = jnp.concatenate([whh_f_t, whh_r_t], axis=1)                       # (H2p, 8H2p)

    # NOTE: b_f / b_r must already be bias_ih + bias_hh (PyTorch keeps two biases).
    bias = jnp.concatenate([pad_gate_cols(params["b_f"]),
                            pad_gate_cols(params["b_r"])], axis=1)         # (1, 8H2p)

    fc_w = params["fc_w"]                       # (T, 2*H2): cols = [fwd | rev]
    fc_fwd = jnp.pad(fc_w[:, :H2], ((0, Tp - T), (0, H2p - H2)))
    fc_rev = jnp.pad(fc_w[:, H2:], ((0, Tp - T), (0, H2p - H2)))
    fc_w_t = jnp.concatenate([fc_fwd, fc_rev], axis=1).T                   # (2H2p, Tp)
    fc_b = jnp.pad(params["fc_b"], ((0, 0), (0, Tp - T)))                  # (1, Tp)

    w_ih = w_ih.astype(compute_dtype)
    w_hh = w_hh.astype(compute_dtype)
    fc_w_t = fc_w_t.astype(compute_dtype)
    bias = bias.astype(jnp.float32)
    fc_b = fc_b.astype(jnp.float32)

    # ---- grid / specs -------------------------------------------------------------
    def bcast_spec(arr):
        nd = arr.ndim
        return pl.BlockSpec(arr.shape, lambda b, _nd=nd: (0,) * _nd)

    grid = (Bp // Bt,)

    # vreg-pressure-aware unroll: each direction's f32 gate tile is Bt*4*H2p elems.
    gate_vregs = (Bt * 4 * H2p) // (8 * 128)
    if gate_vregs >= 32:
        unroll = 1
    elif gate_vregs >= 16:
        unroll = 2
    else:
        unroll = max(1, min(8, S))

    kernel = pl.pallas_call(
        functools.partial(_entity_kernel, fuse_hh=fuse_hh, unroll=unroll),
        out_shape=jax.ShapeDtypeStruct((S, Bp, Tp), out_dtype),
        grid_spec=pltpu.PrefetchScalarGridSpec(
            num_scalar_prefetch=0,
            grid=grid,
            in_specs=[
                pl.BlockSpec((S, Bt, Ep), lambda b: (0, b, 0)),
                bcast_spec(w_ih),
                bcast_spec(w_hh),
                bcast_spec(bias),
                bcast_spec(fc_w_t),
                bcast_spec(fc_b),
            ],
            out_specs=pl.BlockSpec((S, Bt, Tp), lambda b: (0, b, 0)),
            scratch_shapes=[
                pltpu.VMEM((S, Bt, 2 * H2p), compute_dtype),   # [fwd | rev] hidden states
            ]),
        compiler_params=pltpu.CompilerParams(
            dimension_semantics=("parallel",),
            vmem_limit_bytes=int(vmem_budget)),
    )
    out = kernel(embedded, w_ih, w_hh, bias, fc_w_t, fc_b)
    return out[:, :B, :T]


# ----------------------------------------------------------------------------
# Pure-JAX reference (mirrors torch semantics) for correctness checks.
# ----------------------------------------------------------------------------
def reference_forward(x_tokens, params):
    emb = params["emb_table"][x_tokens].astype(jnp.float32)   # (S, B, E)
    S, B, E = emb.shape
    H2 = params["whh_f"].shape[1]

    def run_dir(w_ih, w_hh, b, reverse):
        h = jnp.zeros((B, H2), jnp.float32)
        c = jnp.zeros((B, H2), jnp.float32)
        outs = [None] * S
        ts = range(S - 1, -1, -1) if reverse else range(S)
        for t in ts:
            gates = emb[t] @ w_ih.T + h @ w_hh.T + b
            i_g = jax.nn.sigmoid(gates[:, 0 * H2:1 * H2])
            f_g = jax.nn.sigmoid(gates[:, 1 * H2:2 * H2])
            g_g = jnp.tanh(gates[:, 2 * H2:3 * H2])
            o_g = jax.nn.sigmoid(gates[:, 3 * H2:4 * H2])
            c = f_g * c + i_g * g_g
            h = o_g * jnp.tanh(c)
            outs[t] = h
        return jnp.stack(outs, axis=0)

    hf = run_dir(params["wih_f"], params["whh_f"], params["b_f"], reverse=False)
    hr = run_dir(params["wih_r"], params["whh_r"], params["b_r"], reverse=True)
    hcat = jnp.concatenate([hf, hr], axis=-1)                 # (S, B, 2*H2)
    return hcat @ params["fc_w"].T + params["fc_b"]


# ----------------------------------------------------------------------------
# Deterministic parameter init + demo run
# ----------------------------------------------------------------------------
def init_params(key, vocab_size, embedding_dim, hidden_dim, num_tags):
    H2 = hidden_dim // 2
    ks = jax.random.split(key, 12)
    u = lambda k, shape, s: jax.random.uniform(k, shape, jnp.float32, -s, s)
    s_lstm = 1.0 / jnp.sqrt(H2)
    s_fc = 1.0 / jnp.sqrt(hidden_dim)
    return {
        "emb_table": jax.random.normal(ks[0], (vocab_size, embedding_dim), jnp.float32),
        "wih_f": u(ks[1], (4 * H2, embedding_dim), s_lstm),
        "whh_f": u(ks[2], (4 * H2, H2), s_lstm),
        # combined bias = bias_ih + bias_hh (PyTorch keeps two; their sum is what matters)
        "b_f": (u(ks[3], (1, 4 * H2), s_lstm) + u(ks[4], (1, 4 * H2), s_lstm)),
        "wih_r": u(ks[5], (4 * H2, embedding_dim), s_lstm),
        "whh_r": u(ks[6], (4 * H2, H2), s_lstm),
        "b_r": (u(ks[7], (1, 4 * H2), s_lstm) + u(ks[8], (1, 4 * H2), s_lstm)),
        "fc_w": u(ks[9], (num_tags, hidden_dim), s_fc),
        "fc_b": u(ks[10], (1, num_tags), s_fc),
    }


if __name__ == "__main__":
    vocab_size, embedding_dim, hidden_dim, num_tags = 100, 32, 32, 8
    seq_len, batch = 8, 2

    key = jax.random.PRNGKey(0)
    pkey, xkey = jax.random.split(key)
    params = init_params(pkey, vocab_size, embedding_dim, hidden_dim, num_tags)
    x = jax.random.randint(xkey, (seq_len, batch), 0, vocab_size, dtype=jnp.int32)

    ref = reference_forward(x, params)

    # f32 compute, split-recurrence path (v5e-style): tight check vs the reference.
    out_f32 = jax.block_until_ready(
        entity_recognition_forward(x, params, compute_dtype=jnp.float32,
                                   out_dtype=jnp.float32, fuse_hh=False))
    assert out_f32.shape == (seq_len, batch, num_tags), out_f32.shape
    assert jnp.allclose(out_f32, ref, atol=1e-3, rtol=1e-3), (
        float(jnp.max(jnp.abs(out_f32 - ref))))

    # bf16 compute, fused-recurrence path (v6e/v7x fast path): looser tolerance.
    out_bf16 = jax.block_until_ready(
        entity_recognition_forward(x, params, compute_dtype=jnp.bfloat16, fuse_hh=True))
    assert out_bf16.shape == (seq_len, batch, num_tags), out_bf16.shape
    assert jnp.allclose(out_bf16.astype(jnp.float32), ref, atol=5e-2, rtol=5e-2), (
        float(jnp.max(jnp.abs(out_bf16.astype(jnp.float32) - ref))))

    # Auto (generation-detected) defaults.
    out_auto = jax.block_until_ready(entity_recognition_forward(x, params))
    assert out_auto.shape == (seq_len, batch, num_tags), out_auto.shape

    print("KERNEL_OK")
</pallas_src>

<mosaic_0001>
module attributes {stable_mosaic.version = 11 : i64} {
  func.func @_entity_kernel(%arg0: i32, %arg1: memref<8x8x128xf32, #tpu.memory_space<vmem>>, %arg2: memref<128x1024xf32, #tpu.memory_space<vmem>>, %arg3: memref<128x1024xf32, #tpu.memory_space<vmem>>, %arg4: memref<1x1024xf32, #tpu.memory_space<vmem>>, %arg5: memref<256x128xf32, #tpu.memory_space<vmem>>, %arg6: memref<1x128xf32, #tpu.memory_space<vmem>>, %arg7: memref<8x8x128xf32, #tpu.memory_space<vmem>>, %arg8: memref<8x8x256xf32, #tpu.memory_space<vmem>>) attributes {dimension_semantics = [#tpu.dimension_semantics<parallel>], iteration_bounds = array<i64: 1>, scalar_prefetch = 0 : i64, scratch_operands = 1 : i64, tpu.core_type = #tpu.core_type<tc>, window_params = [{transform_indices = @transform_0, window_bounds = array<i64: 8, 8, 128>}, {pipeline_mode = #tpu.pipeline_mode<synchronous>, transform_indices = @transform_1, window_bounds = array<i64: 128, 1024>}, {pipeline_mode = #tpu.pipeline_mode<synchronous>, transform_indices = @transform_2, window_bounds = array<i64: 128, 1024>}, {pipeline_mode = #tpu.pipeline_mode<synchronous>, transform_indices = @transform_3, window_bounds = array<i64: 1, 1024>}, {pipeline_mode = #tpu.pipeline_mode<synchronous>, transform_indices = @transform_4, window_bounds = array<i64: 256, 128>}, {pipeline_mode = #tpu.pipeline_mode<synchronous>, transform_indices = @transform_5, window_bounds = array<i64: 1, 128>}, {transform_indices = @transform_6, window_bounds = array<i64: 8, 8, 128>}]} {
    %c0 = arith.constant 0 : index
    %c0_0 = arith.constant 0 : index
    %0 = vector.load %arg2[%c0, %c0_0] : memref<128x1024xf32, #tpu.memory_space<vmem>>, vector<128x512xf32>
    %c0_1 = arith.constant 0 : index
    %c512 = arith.constant 512 : index
    %1 = vector.load %arg2[%c0_1, %c512] : memref<128x1024xf32, #tpu.memory_space<vmem>>, vector<128x512xf32>
    %c0_2 = arith.constant 0 : index
    %c0_3 = arith.constant 0 : index
    %2 = vector.load %arg4[%c0_2, %c0_3] : memref<1x1024xf32, #tpu.memory_space<vmem>>, vector<1x512xf32>
    %c0_4 = arith.constant 0 : index
    %c512_5 = arith.constant 512 : index
    %3 = vector.load %arg4[%c0_4, %c512_5] : memref<1x1024xf32, #tpu.memory_space<vmem>>, vector<1x512xf32>
    %c0_6 = arith.constant 0 : index
    %c0_7 = arith.constant 0 : index
    %4 = vector.load %arg3[%c0_6, %c0_7] : memref<128x1024xf32, #tpu.memory_space<vmem>>, vector<128x512xf32>
    %c0_8 = arith.constant 0 : index
    %c512_9 = arith.constant 512 : index
    %5 = vector.load %arg3[%c0_8, %c512_9] : memref<128x1024xf32, #tpu.memory_space<vmem>>, vector<128x512xf32>
    %cst = arith.constant 0.000000e+00 : f32
    %6 = vector.broadcast %cst : f32 to vector<8x128xf32>
    %cst_10 = arith.constant 0.000000e+00 : f32
    %7 = vector.broadcast %cst_10 : f32 to vector<8x128xf32>
    %c0_i32 = arith.constant 0 : i32
    %c7_i32 = arith.constant 7 : i32
    %8 = arith.subi %c7_i32, %c0_i32 : i32
    %9 = arith.index_cast %c0_i32 : i32 to index
    %c0_11 = arith.constant 0 : index
    %c0_12 = arith.constant 0 : index
    %10 = vector.load %arg1[%9, %c0_11, %c0_12] : memref<8x8x128xf32, #tpu.memory_space<vmem>>, vector<1x8x128xf32>
    %11 = vector.shape_cast %10 : vector<1x8x128xf32> to vector<8x128xf32>
    %12 = arith.index_cast %8 : i32 to index
    %c0_13 = arith.constant 0 : index
    %c0_14 = arith.constant 0 : index
    %13 = vector.load %arg1[%12, %c0_13, %c0_14] : memref<8x8x128xf32, #tpu.memory_space<vmem>>, vector<1x8x128xf32>
    %14 = vector.shape_cast %13 : vector<1x8x128xf32> to vector<8x128xf32>
    %cst_15 = arith.constant dense<0.000000e+00> : vector<8x512xf32>
    %15 = tpu.matmul %11, %0, %cst_15 {dimension_numbers = #tpu.dot_dimension_numbers<[1], [0], [0], [1], [0, 0, 1, 1], [], []>} : vector<8x128xf32>, vector<128x512xf32>, vector<8x512xf32> -> vector<8x512xf32>
    %16 = vector.broadcast %2 : vector<1x512xf32> to vector<8x512xf32>
    %17 = arith.addf %15, %16 : vector<8x512xf32>
    %cst_16 = arith.constant dense<0.000000e+00> : vector<8x512xf32>
    %18 = tpu.matmul %14, %1, %cst_16 {dimension_numbers = #tpu.dot_dimension_numbers<[1], [0], [0], [1], [0, 0, 1, 1], [], []>} : vector<8x128xf32>, vector<128x512xf32>, vector<8x512xf32> -> vector<8x512xf32>
    %19 = vector.broadcast %3 : vector<1x512xf32> to vector<8x512xf32>
    %20 = arith.addf %18, %19 : vector<8x512xf32>
    %cst_17 = arith.constant dense<0.000000e+00> : vector<8x512xf32>
    %21 = tpu.matmul %6, %4, %cst_17 {dimension_numbers = #tpu.dot_dimension_numbers<[1], [0], [0], [1], [0, 0, 1, 1], [], []>} : vector<8x128xf32>, vector<128x512xf32>, vector<8x512xf32> -> vector<8x512xf32>
    %22 = arith.addf %17, %21 : vector<8x512xf32>
    %cst_18 = arith.constant dense<0.000000e+00> : vector<8x512xf32>
    %23 = tpu.matmul %6, %5, %cst_18 {dimension_numbers = #tpu.dot_dimension_numbers<[1], [0], [0], [1], [0, 0, 1, 1], [], []>} : vector<8x128xf32>, vector<128x512xf32>, vector<8x512xf32> -> vector<8x512xf32>
    %24 = arith.addf %20, %23 : vector<8x512xf32>
    %25 = vector.extract_strided_slice %22 {offsets = [0, 0], sizes = [8, 128], strides = [1, 1]} : vector<8x512xf32> to vector<8x128xf32>
    %26 = arith.negf %25 : vector<8x128xf32>
    %27 = math.exp %26 : vector<8x128xf32>
    %cst_19 = arith.constant 1.000000e+00 : f32
    %28 = vector.broadcast %cst_19 : f32 to vector<8x128xf32>
    %29 = arith.addf %28, %27 : vector<8x128xf32>
    %30 = arith.divf %28, %29 : vector<8x128xf32>
    %31 = vector.extract_strided_slice %22 {offsets = [0, 128], sizes = [8, 128], strides = [1, 1]} : vector<8x512xf32> to vector<8x128xf32>
    %32 = arith.negf %31 : vector<8x128xf32>
    %33 = math.exp %32 : vector<8x128xf32>
    %cst_20 = arith.constant 1.000000e+00 : f32
    %34 = vector.broadcast %cst_20 : f32 to vector<8x128xf32>
    %35 = arith.addf %34, %33 : vector<8x128xf32>
    %36 = arith.divf %34, %35 : vector<8x128xf32>
    %37 = vector.extract_strided_slice %22 {offsets = [0, 256], sizes = [8, 128], strides = [1, 1]} : vector<8x512xf32> to vector<8x128xf32>
    %38 = math.tanh %37 : vector<8x128xf32>
    %39 = vector.extract_strided_slice %22 {offsets = [0, 384], sizes = [8, 128], strides = [1, 1]} : vector<8x512xf32> to vector<8x128xf32>
    %40 = arith.negf %39 : vector<8x128xf32>
    %41 = math.exp %40 : vector<8x128xf32>
    %cst_21 = arith.constant 1.000000e+00 : f32
    %42 = vector.broadcast %cst_21 : f32 to vector<8x128xf32>
    %43 = arith.addf %42, %41 : vector<8x128xf32>
    %44 = arith.divf %42, %43 : vector<8x128xf32>
    %45 = arith.mulf %36, %7 : vector<8x128xf32>
    %46 = arith.mulf %30, %38 : vector<8x128xf32>
    %47 = arith.addf %45, %46 : vector<8x128xf32>
    %48 = math.tanh %47 : vector<8x128xf32>
    %49 = arith.mulf %44, %48 : vector<8x128xf32>
    %50 = vector.extract_strided_slice %24 {offsets = [0, 0], sizes = [8, 128], strides = [1, 1]} : vector<8x512xf32> to vector<8x128xf32>
    %51 = arith.negf %50 : vector<8x128xf32>
    %52 = math.exp %51 : vector<8x128xf32>
    %cst_22 = arith.constant 1.000000e+00 : f32
    %53 = vector.broadcast %cst_22 : f32 to vector<8x128xf32>
    %54 = arith.addf %53, %52 : vector<8x128xf32>
    %55 = arith.divf %53, %54 : vector<8x128xf32>
    %56 = vector.extract_strided_slice %24 {offsets = [0, 128], sizes = [8, 128], strides = [1, 1]} : vector<8x512xf32> to vector<8x128xf32>
    %57 = arith.negf %56 : vector<8x128xf32>
    %58 = math.exp %57 : vector<8x128xf32>
    %cst_23 = arith.constant 1.000000e+00 : f32
    %59 = vector.broadcast %cst_23 : f32 to vector<8x128xf32>
    %60 = arith.addf %59, %58 : vector<8x128xf32>
    %61 = arith.divf %59, %60 : vector<8x128xf32>
    %62 = vector.extract_strided_slice %24 {offsets = [0, 256], sizes = [8, 128], strides = [1, 1]} : vector<8x512xf32> to vector<8x128xf32>
    %63 = math.tanh %62 : vector<8x128xf32>
    %64 = vector.extract_strided_slice %24 {offsets = [0, 384], sizes = [8, 128], strides = [1, 1]} : vector<8x512xf32> to vector<8x128xf32>
    %65 = arith.negf %64 : vector<8x128xf32>
    %66 = math.exp %65 : vector<8x128xf32>
    %cst_24 = arith.constant 1.000000e+00 : f32
    %67 = vector.broadcast %cst_24 : f32 to vector<8x128xf32>
    %68 = arith.addf %67, %66 : vector<8x128xf32>
    %69 = arith.divf %67, %68 : vector<8x128xf32>
    %70 = arith.mulf %61, %7 : vector<8x128xf32>
    %71 = arith.mulf %55, %63 : vector<8x128xf32>
    %72 = arith.addf %70, %71 : vector<8x128xf32>
    %73 = math.tanh %72 : vector<8x128xf32>
    %74 = arith.mulf %69, %73 : vector<8x128xf32>
    %75 = vector.shape_cast %49 : vector<8x128xf32> to vector<1x8x128xf32>
    %76 = arith.index_cast %c0_i32 : i32 to index
    %c0_25 = arith.constant 0 : index
    %c0_26 = arith.constant 0 : index
    %77 = vector.load %arg8[%76, %c0_25, %c0_26] : memref<8x8x256xf32, #tpu.memory_space<vmem>>, vector<1x8x128xf32>
    tpu.vector_store %arg8[%76, %c0_25, %c0_26], %75 {strides = array<i32>} : memref<8x8x256xf32, #tpu.memory_space<vmem>>, vector<1x8x128xf32>,
    %78 = vector.shape_cast %74 : vector<8x128xf32> to vector<1x8x128xf32>
    %79 = arith.index_cast %8 : i32 to index
    %c0_27 = arith.constant 0 : index
    %c128 = arith.constant 128 : index
    %80 = vector.load %arg8[%79, %c0_27, %c128] : memref<8x8x256xf32, #tpu.memory_space<vmem>>, vector<1x8x128xf32>
    tpu.vector_store %arg8[%79, %c0_27, %c128], %78 {strides = array<i32>} : memref<8x8x256xf32, #tpu.memory_space<vmem>>, vector<1x8x128xf32>,
    %c1_i32 = arith.constant 1 : i32
    %c7_i32_28 = arith.constant 7 : i32
    %81 = arith.subi %c7_i32_28, %c1_i32 : i32
    %82 = arith.index_cast %c1_i32 : i32 to index
    %c0_29 = arith.constant 0 : index
    %c0_30 = arith.constant 0 : index
    %83 = vector.load %arg1[%82, %c0_29, %c0_30] : memref<8x8x128xf32, #tpu.memory_space<vmem>>, vector<1x8x128xf32>
    %84 = vector.shape_cast %83 : vector<1x8x128xf32> to vector<8x128xf32>
    %85 = arith.index_cast %81 : i32 to index
    %c0_31 = arith.constant 0 : index
    %c0_32 = arith.constant 0 : index
    %86 = vector.load %arg1[%85, %c0_31, %c0_32] : memref<8x8x128xf32, #tpu.memory_space<vmem>>, vector<1x8x128xf32>
    %87 = vector.shape_cast %86 : vector<1x8x128xf32> to vector<8x128xf32>
    %cst_33 = arith.constant dense<0.000000e+00> : vector<8x512xf32>
    %88 = tpu.matmul %84, %0, %cst_33 {dimension_numbers = #tpu.dot_dimension_numbers<[1], [0], [0], [1], [0, 0, 1, 1], [], []>} : vector<8x128xf32>, vector<128x512xf32>, vector<8x512xf32> -> vector<8x512xf32>
    %89 = vector.broadcast %2 : vector<1x512xf32> to vector<8x512xf32>
    %90 = arith.addf %88, %89 : vector<8x512xf32>
    %cst_34 = arith.constant dense<0.000000e+00> : vector<8x512xf32>
    %91 = tpu.matmul %87, %1, %cst_34 {dimension_numbers = #tpu.dot_dimension_numbers<[1], [0], [0], [1], [0, 0, 1, 1], [], []>} : vector<8x128xf32>, vector<128x512xf32>, vector<8x512xf32> -> vector<8x512xf32>
    %92 = vector.broadcast %3 : vector<1x512xf32> to vector<8x512xf32>
    %93 = arith.addf %91, %92 : vector<8x512xf32>
    %cst_35 = arith.constant dense<0.000000e+00> : vector<8x512xf32>
    %94 = tpu.matmul %49, %4, %cst_35 {dimension_numbers = #tpu.dot_dimension_numbers<[1], [0], [0], [1], [0, 0, 1, 1], [], []>} : vector<8x128xf32>, vector<128x512xf32>, vector<8x512xf32> -> vector<8x512xf32>
    %95 = arith.addf %90, %94 : vector<8x512xf32>
    %cst_36 = arith.constant dense<0.000000e+00> : vector<8x512xf32>
    %96 = tpu.matmul %74, %5, %cst_36 {dimension_numbers = #tpu.dot_dimension_numbers<[1], [0], [0], [1], [0, 0, 1, 1], [], []>} : vector<8x128xf32>, vector<128x512xf32>, vector<8x512xf32> -> vector<8x512xf32>
    %97 = arith.addf %93, %96 : vector<8x512xf32>
    %98 = vector.extract_strided_slice %95 {offsets = [0, 0], sizes = [8, 128], strides = [1, 1]} : vector<8x512xf32> to vector<8x128xf32>
    %99 = arith.negf %98 : vector<8x128xf32>
    %100 = math.exp %99 : vector<8x128xf32>
    %cst_37 = arith.constant 1.000000e+00 : f32
    %101 = vector.broadcast %cst_37 : f32 to vector<8x128xf32>
    %102 = arith.addf %101, %100 : vector<8x128xf32>
    %103 = arith.divf %101, %102 : vector<8x128xf32>
    %104 = vector.extract_strided_slice %95 {offsets = [0, 128], sizes = [8, 128], strides = [1, 1]} : vector<8x512xf32> to vector<8x128xf32>
    %105 = arith.negf %104 : vector<8x128xf32>
    %106 = math.exp %105 : vector<8x128xf32>
    %cst_38 = arith.constant 1.000000e+00 : f32
    %107 = vector.broadcast %cst_38 : f32 to vector<8x128xf32>
    %108 = arith.addf %107, %106 : vector<8x128xf32>
    %109 = arith.divf %107, %108 : vector<8x128xf32>
    %110 = vector.extract_strided_slice %95 {offsets = [0, 256], sizes = [8, 128], strides = [1, 1]} : vector<8x512xf32> to vector<8x128xf32>
    %111 = math.tanh %110 : vector<8x128xf32>
    %112 = vector.extract_strided_slice %95 {offsets = [0, 384], sizes = [8, 128], strides = [1, 1]} : vector<8x512xf32> to vector<8x128xf32>
    %113 = arith.negf %112 : vector<8x128xf32>
    %114 = math.exp %113 : vector<8x128xf32>
    %cst_39 = arith.constant 1.000000e+00 : f32
    %115 = vector.broadcast %cst_39 : f32 to vector<8x128xf32>
    %116 = arith.addf %115, %114 : vector<8x128xf32>
    %117 = arith.divf %115, %116 : vector<8x128xf32>
    %118 = arith.mulf %109, %47 : vector<8x128xf32>
    %119 = arith.mulf %103, %111 : vector<8x128xf32>
    %120 = arith.addf %118, %119 : vector<8x128xf32>
    %121 = math.tanh %120 : vector<8x128xf32>
    %122 = arith.mulf %117, %121 : vector<8x128xf32>
    %123 = vector.extract_strided_slice %97 {offsets = [0, 0], sizes = [8, 128], strides = [1, 1]} : vector<8x512xf32> to vector<8x128xf32>
    %124 = arith.negf %123 : vector<8x128xf32>
    %125 = math.exp %124 : vector<8x128xf32>
    %cst_40 = arith.constant 1.000000e+00 : f32
    %126 = vector.broadcast %cst_40 : f32 to vector<8x128xf32>
    %127 = arith.addf %126, %125 : vector<8x128xf32>
    %128 = arith.divf %126, %127 : vector<8x128xf32>
    %129 = vector.extract_strided_slice %97 {offsets = [0, 128], sizes = [8, 128], strides = [1, 1]} : vector<8x512xf32> to vector<8x128xf32>
    %130 = arith.negf %129 : vector<8x128xf32>
    %131 = math.exp %130 : vector<8x128xf32>
    %cst_41 = arith.constant 1.000000e+00 : f32
    %132 = vector.broadcast %cst_41 : f32 to vector<8x128xf32>
    %133 = arith.addf %132, %131 : vector<8x128xf32>
    %134 = arith.divf %132, %133 : vector<8x128xf32>
    %135 = vector.extract_strided_slice %97 {offsets = [0, 256], sizes = [8, 128], strides = [1, 1]} : vector<8x512xf32> to vector<8x128xf32>
    %136 = math.tanh %135 : vector<8x128xf32>
    %137 = vector.extract_strided_slice %97 {offsets = [0, 384], sizes = [8, 128], strides = [1, 1]} : vector<8x512xf32> to vector<8x128xf32>
    %138 = arith.negf %137 : vector<8x128xf32>
    %139 = math.exp %138 : vector<8x128xf32>
    %cst_42 = arith.constant 1.000000e+00 : f32
    %140 = vector.broadcast %cst_42 : f32 to vector<8x128xf32>
    %141 = arith.addf %140, %139 : vector<8x128xf32>
    %142 = arith.divf %140, %141 : vector<8x128xf32>
    %143 = arith.mulf %134, %72 : vector<8x128xf32>
    %144 = arith.mulf %128, %136 : vector<8x128xf32>
    %145 = arith.addf %143, %144 : vector<8x128xf32>
    %146 = math.tanh %145 : vector<8x128xf32>
    %147 = arith.mulf %142, %146 : vector<8x128xf32>
    %148 = vector.shape_cast %122 : vector<8x128xf32> to vector<1x8x128xf32>
    %149 = arith.index_cast %c1_i32 : i32 to index
    %c0_43 = arith.constant 0 : index
    %c0_44 = arith.constant 0 : index
    %150 = vector.load %arg8[%149, %c0_43, %c0_44] : memref<8x8x256xf32, #tpu.memory_space<vmem>>, vector<1x8x128xf32>
    tpu.vector_store %arg8[%149, %c0_43, %c0_44], %148 {strides = array<i32>} : memref<8x8x256xf32, #tpu.memory_space<vmem>>, vector<1x8x128xf32>,
    %151 = vector.shape_cast %147 : vector<8x128xf32> to vector<1x8x128xf32>
    %152 = arith.index_cast %81 : i32 to index
    %c0_45 = arith.constant 0 : index
    %c128_46 = arith.constant 128 : index
    %153 = vector.load %arg8[%152, %c0_45, %c128_46] : memref<8x8x256xf32, #tpu.memory_space<vmem>>, vector<1x8x128xf32>
    tpu.vector_store %arg8[%152, %c0_45, %c128_46], %151 {strides = array<i32>} : memref<8x8x256xf32, #tpu.memory_space<vmem>>, vector<1x8x128xf32>,
    %c2_i32 = arith.constant 2 : i32
    %c7_i32_47 = arith.constant 7 : i32
    %154 = arith.subi %c7_i32_47, %c2_i32 : i32
    %155 = arith.index_cast %c2_i32 : i32 to index
    %c0_48 = arith.constant 0 : index
    %c0_49 = arith.constant 0 : index
    %156 = vector.load %arg1[%155, %c0_48, %c0_49] : memref<8x8x128xf32, #tpu.memory_space<vmem>>, vector<1x8x128xf32>
    %157 = vector.shape_cast %156 : vector<1x8x128xf32> to vector<8x128xf32>
    %158 = arith.index_cast %154 : i32 to index
    %c0_50 = arith.constant 0 : index
    %c0_51 = arith.constant 0 : index
    %159 = vector.load %arg1[%158, %c0_50, %c0_51] : memref<8x8x128xf32, #tpu.memory_space<vmem>>, vector<1x8x128xf32>
    %160 = vector.shape_cast %159 : vector<1x8x128xf32> to vector<8x128xf32>
    %cst_52 = arith.constant dense<0.000000e+00> : vector<8x512xf32>
    %161 = tpu.matmul %157, %0, %cst_52 {dimension_numbers = #tpu.dot_dimension_numbers<[1], [0], [0], [1], [0, 0, 1, 1], [], []>} : vector<8x128xf32>, vector<128x512xf32>, vector<8x512xf32> -> vector<8x512xf32>
    %162 = vector.broadcast %2 : vector<1x512xf32> to vector<8x512xf32>
    %163 = arith.addf %161, %162 : vector<8x512xf32>
    %cst_53 = arith.constant dense<0.000000e+00> : vector<8x512xf32>
    %164 = tpu.matmul %160, %1, %cst_53 {dimension_numbers = #tpu.dot_dimension_numbers<[1], [0], [0], [1], [0, 0, 1, 1], [], []>} : vector<8x128xf32>, vector<128x512xf32>, vector<8x512xf32> -> vector<8x512xf32>
    %165 = vector.broadcast %3 : vector<1x512xf32> to vector<8x512xf32>
    %166 = arith.addf %164, %165 : vector<8x512xf32>
    %cst_54 = arith.constant dense<0.000000e+00> : vector<8x512xf32>
    %167 = tpu.matmul %122, %4, %cst_54 {dimension_numbers = #tpu.dot_dimension_numbers<[1], [0], [0], [1], [0, 0, 1, 1], [], []>} : vector<8x128xf32>, vector<128x512xf32>, vector<8x512xf32> -> vector<8x512xf32>
    %168 = arith.addf %163, %167 : vector<8x512xf32>
    %cst_55 = arith.constant dense<0.000000e+00> : vector<8x512xf32>
    %169 = tpu.matmul %147, %5, %cst_55 {dimension_numbers = #tpu.dot_dimension_numbers<[1], [0], [0], [1], [0, 0, 1, 1], [], []>} : vector<8x128xf32>, vector<128x512xf32>, vector<8x512xf32> -> vector<8x512xf32>
    %170 = arith.addf %166, %169 : vector<8x512xf32>
    %171 = vector.extract_strided_slice %168 {offsets = [0, 0], sizes = [8, 128], strides = [1, 1]} : vector<8x512xf32> to vector<8x128xf32>
    %172 = arith.negf %171 : vector<8x128xf32>
    %173 = math.exp %172 : vector<8x128xf32>
    %cst_56 = arith.constant 1.000000e+00 : f32
    %174 = vector.broadcast %cst_56 : f32 to vector<8x128xf32>
    %175 = arith.addf %174, %173 : vector<8x128xf32>
    %176 = arith.divf %174, %175 : vector<8x128xf32>
    %177 = vector.extract_strided_slice %168 {offsets = [0, 128], sizes = [8, 128], strides = [1, 1]} : vector<8x512xf32> to vector<8x128xf32>
    %178 = arith.negf %177 : vector<8x128xf32>
    %179 = math.exp %178 : vector<8x128xf32>
    %cst_57 = arith.constant 1.000000e+00 : f32
    %180 = vector.broadcast %cst_57 : f32 to vector<8x128xf32>
    %181 = arith.addf %180, %179 : vector<8x128xf32>
    %182 = arith.divf %180, %181 : vector<8x128xf32>
    %183 = vector.extract_strided_slice %168 {offsets = [0, 256], sizes = [8, 128], strides = [1, 1]} : vector<8x512xf32> to vector<8x128xf32>
    %184 = math.tanh %183 : vector<8x128xf32>
    %185 = vector.extract_strided_slice %168 {offsets = [0, 384], sizes = [8, 128], strides = [1, 1]} : vector<8x512xf32> to vector<8x128xf32>
    %186 = arith.negf %185 : vector<8x128xf32>
    %187 = math.exp %186 : vector<8x128xf32>
    %cst_58 = arith.constant 1.000000e+00 : f32
    %188 = vector.broadcast %cst_58 : f32 to vector<8x128xf32>
    %189 = arith.addf %188, %187 : vector<8x128xf32>
    %190 = arith.divf %188, %189 : vector<8x128xf32>
    %191 = arith.mulf %182, %120 : vector<8x128xf32>
    %192 = arith.mulf %176, %184 : vector<8x128xf32>
    %193 = arith.addf %191, %192 : vector<8x128xf32>
    %194 = math.tanh %193 : vector<8x128xf32>
    %195 = arith.mulf %190, %194 : vector<8x128xf32>
    %196 = vector.extract_strided_slice %170 {offsets = [0, 0], sizes = [8, 128], strides = [1, 1]} : vector<8x512xf32> to vector<8x128xf32>
    %197 = arith.negf %196 : vector<8x128xf32>
    %198 = math.exp %197 : vector<8x128xf32>
    %cst_59 = arith.constant 1.000000e+00 : f32
    %199 = vector.broadcast %cst_59 : f32 to vector<8x128xf32>
    %200 = arith.addf %199, %198 : vector<8x128xf32>
    %201 = arith.divf %199, %200 : vector<8x128xf32>
    %202 = vector.extract_strided_slice %170 {offsets = [0, 128], sizes = [8, 128], strides = [1, 1]} : vector<8x512xf32> to vector<8x128xf32>
    %203 = arith.negf %202 : vector<8x128xf32>
    %204 = math.exp %203 : vector<8x128xf32>
    %cst_60 = arith.constant 1.000000e+00 : f32
    %205 = vector.broadcast %cst_60 : f32 to vector<8x128xf32>
    %206 = arith.addf %205, %204 : vector<8x128xf32>
    %207 = arith.divf %205, %206 : vector<8x128xf32>
    %208 = vector.extract_strided_slice %170 {offsets = [0, 256], sizes = [8, 128], strides = [1, 1]} : vector<8x512xf32> to vector<8x128xf32>
    %209 = math.tanh %208 : vector<8x128xf32>
    %210 = vector.extract_strided_slice %170 {offsets = [0, 384], sizes = [8, 128], strides = [1, 1]} : vector<8x512xf32> to vector<8x128xf32>
    %211 = arith.negf %210 : vector<8x128xf32>
    %212 = math.exp %211 : vector<8x128xf32>
    %cst_61 = arith.constant 1.000000e+00 : f32
    %213 = vector.broadcast %cst_61 : f32 to vector<8x128xf32>
    %214 = arith.addf %213, %212 : vector<8x128xf32>
    %215 = arith.divf %213, %214 : vector<8x128xf32>
    %216 = arith.mulf %207, %145 : vector<8x128xf32>
    %217 = arith.mulf %201, %209 : vector<8x128xf32>
    %218 = arith.addf %216, %217 : vector<8x128xf32>
    %219 = math.tanh %218 : vector<8x128xf32>
    %220 = arith.mulf %215, %219 : vector<8x128xf32>
    %221 = vector.shape_cast %195 : vector<8x128xf32> to vector<1x8x128xf32>
    %222 = arith.index_cast %c2_i32 : i32 to index
    %c0_62 = arith.constant 0 : index
    %c0_63 = arith.constant 0 : index
    %223 = vector.load %arg8[%222, %c0_62, %c0_63] : memref<8x8x256xf32, #tpu.memory_space<vmem>>, vector<1x8x128xf32>
    tpu.vector_store %arg8[%222, %c0_62, %c0_63], %221 {strides = array<i32>} : memref<8x8x256xf32, #tpu.memory_space<vmem>>, vector<1x8x128xf32>,
    %224 = vector.shape_cast %220 : vector<8x128xf32> to vector<1x8x128xf32>
    %225 = arith.index_cast %154 : i32 to index
    %c0_64 = arith.constant 0 : index
    %c128_65 = arith.constant 128 : index
    %226 = vector.load %arg8[%225, %c0_64, %c128_65] : memref<8x8x256xf32, #tpu.memory_space<vmem>>, vector<1x8x128xf32>
    tpu.vector_store %arg8[%225, %c0_64, %c128_65], %224 {strides = array<i32>} : memref<8x8x256xf32, #tpu.memory_space<vmem>>, vector<1x8x128xf32>,
    %c3_i32 = arith.constant 3 : i32
    %c7_i32_66 = arith.constant 7 : i32
    %227 = arith.subi %c7_i32_66, %c3_i32 : i32
    %228 = arith.index_cast %c3_i32 : i32 to index
    %c0_67 = arith.constant 0 : index
    %c0_68 = arith.constant 0 : index
    %229 = vector.load %arg1[%228, %c0_67, %c0_68] : memref<8x8x128xf32, #tpu.memory_space<vmem>>, vector<1x8x128xf32>
    %230 = vector.shape_cast %229 : vector<1x8x128xf32> to vector<8x128xf32>
    %231 = arith.index_cast %227 : i32 to index
    %c0_69 = arith.constant 0 : index
    %c0_70 = arith.constant 0 : index
    %232 = vector.load %arg1[%231, %c0_69, %c0_70] : memref<8x8x128xf32, #tpu.memory_space<vmem>>, vector<1x8x128xf32>
    %233 = vector.shape_cast %232 : vector<1x8x128xf32> to vector<8x128xf32>
    %cst_71 = arith.constant dense<0.000000e+00> : vector<8x512xf32>
    %234 = tpu.matmul %230, %0, %cst_71 {dimension_numbers = #tpu.dot_dimension_numbers<[1], [0], [0], [1], [0, 0, 1, 1], [], []>} : vector<8x128xf32>, vector<128x512xf32>, vector<8x512xf32> -> vector<8x512xf32>
    %235 = vector.broadcast %2 : vector<1x512xf32> to vector<8x512xf32>
    %236 = arith.addf %234, %235 : vector<8x512xf32>
    %cst_72 = arith.constant dense<0.000000e+00> : vector<8x512xf32>
    %237 = tpu.matmul %233, %1, %cst_72 {dimension_numbers = #tpu.dot_dimension_numbers<[1], [0], [0], [1], [0, 0, 1, 1], [], []>} : vector<8x128xf32>, vector<128x512xf32>, vector<8x512xf32> -> vector<8x512xf32>
    %238 = vector.broadcast %3 : vector<1x512xf32> to vector<8x512xf32>
    %239 = arith.addf %237, %238 : vector<8x512xf32>
    %cst_73 = arith.constant dense<0.000000e+00> : vector<8x512xf32>
    %240 = tpu.matmul %195, %4, %cst_73 {dimension_numbers = #tpu.dot_dimension_numbers<[1], [0], [0], [1], [0, 0, 1, 1], [], []>} : vector<8x128xf32>, vector<128x512xf32>, vector<8x512xf32> -> vector<8x512xf32>
    %241 = arith.addf %236, %240 : vector<8x512xf32>
    %cst_74 = arith.constant dense<0.000000e+00> : vector<8x512xf32>
    %242 = tpu.matmul %220, %5, %cst_74 {dimension_numbers = #tpu.dot_dimension_numbers<[1], [0], [0], [1], [0, 0, 1, 1], [], []>} : vector<8x128xf32>, vector<128x512xf32>, vector<8x512xf32> -> vector<8x512xf32>
    %243 = arith.addf %239, %242 : vector<8x512xf32>
    %244 = vector.extract_strided_slice %241 {offsets = [0, 0], sizes = [8, 128], strides = [1, 1]} : vector<8x512xf32> to vector<8x128xf32>
    %245 = arith.negf %244 : vector<8x128xf32>
    %246 = math.exp %245 : vector<8x128xf32>
    %cst_75 = arith.constant 1.000000e+00 : f32
    %247 = vector.broadcast %cst_75 : f32 to vector<8x128xf32>
    %248 = arith.addf %247, %246 : vector<8x128xf32>
    %249 = arith.divf %247, %248 : vector<8x128xf32>
    %250 = vector.extract_strided_slice %241 {offsets = [0, 128], sizes = [8, 128], strides = [1, 1]} : vector<8x512xf32> to vector<8x128xf32>
    %251 = arith.negf %250 : vector<8x128xf32>
    %252 = math.exp %251 : vector<8x128xf32>
    %cst_76 = arith.constant 1.000000e+00 : f32
    %253 = vector.broadcast %cst_76 : f32 to vector<8x128xf32>
    %254 = arith.addf %253, %252 : vector<8x128xf32>
    %255 = arith.divf %253, %254 : vector<8x128xf32>
    %256 = vector.extract_strided_slice %241 {offsets = [0, 256], sizes = [8, 128], strides = [1, 1]} : vector<8x512xf32> to vector<8x128xf32>
    %257 = math.tanh %256 : vector<8x128xf32>
    %258 = vector.extract_strided_slice %241 {offsets = [0, 384], sizes = [8, 128], strides = [1, 1]} : vector<8x512xf32> to vector<8x128xf32>
    %259 = arith.negf %258 : vector<8x128xf32>
    %260 = math.exp %259 : vector<8x128xf32>
    %cst_77 = arith.constant 1.000000e+00 : f32
    %261 = vector.broadcast %cst_77 : f32 to vector<8x128xf32>
    %262 = arith.addf %261, %260 : vector<8x128xf32>
    %263 = arith.divf %261, %262 : vector<8x128xf32>
    %264 = arith.mulf %255, %193 : vector<8x128xf32>
    %265 = arith.mulf %249, %257 : vector<8x128xf32>
    %266 = arith.addf %264, %265 : vector<8x128xf32>
    %267 = math.tanh %266 : vector<8x128xf32>
    %268 = arith.mulf %263, %267 : vector<8x128xf32>
    %269 = vector.extract_strided_slice %243 {offsets = [0, 0], sizes = [8, 128], strides = [1, 1]} : vector<8x512xf32> to vector<8x128xf32>
    %270 = arith.negf %269 : vector<8x128xf32>
    %271 = math.exp %270 : vector<8x128xf32>
    %cst_78 = arith.constant 1.000000e+00 : f32
    %272 = vector.broadcast %cst_78 : f32 to vector<8x128xf32>
    %273 = arith.addf %272, %271 : vector<8x128xf32>
    %274 = arith.divf %272, %273 : vector<8x128xf32>
    %275 = vector.extract_strided_slice %243 {offsets = [0, 128], sizes = [8, 128], strides = [1, 1]} : vector<8x512xf32> to vector<8x128xf32>
    %276 = arith.negf %275 : vector<8x128xf32>
    %277 = math.exp %276 : vector<8x128xf32>
    %cst_79 = arith.constant 1.000000e+00 : f32
    %278 = vector.broadcast %cst_79 : f32 to vector<8x128xf32>
    %279 = arith.addf %278, %277 : vector<8x128xf32>
    %280 = arith.divf %278, %279 : vector<8x128xf32>
    %281 = vector.extract_strided_slice %243 {offsets = [0, 256], sizes = [8, 128], strides = [1, 1]} : vector<8x512xf32> to vector<8x128xf32>
    %282 = math.tanh %281 : vector<8x128xf32>
    %283 = vector.extract_strided_slice %243 {offsets = [0, 384], sizes = [8, 128], strides = [1, 1]} : vector<8x512xf32> to vector<8x128xf32>
    %284 = arith.negf %283 : vector<8x128xf32>
    %285 = math.exp %284 : vector<8x128xf32>
    %cst_80 = arith.constant 1.000000e+00 : f32
    %286 = vector.broadcast %cst_80 : f32 to vector<8x128xf32>
    %287 = arith.addf %286, %285 : vector<8x128xf32>
    %288 = arith.divf %286, %287 : vector<8x128xf32>
    %289 = arith.mulf %280, %218 : vector<8x128xf32>
    %290 = arith.mulf %274, %282 : vector<8x128xf32>
    %291 = arith.addf %289, %290 : vector<8x128xf32>
    %292 = math.tanh %291 : vector<8x128xf32>
    %293 = arith.mulf %288, %292 : vector<8x128xf32>
    %294 = vector.shape_cast %268 : vector<8x128xf32> to vector<1x8x128xf32>
    %295 = arith.index_cast %c3_i32 : i32 to index
    %c0_81 = arith.constant 0 : index
    %c0_82 = arith.constant 0 : index
    %296 = vector.load %arg8[%295, %c0_81, %c0_82] : memref<8x8x256xf32, #tpu.memory_space<vmem>>, vector<1x8x128xf32>
    tpu.vector_store %arg8[%295, %c0_81, %c0_82], %294 {strides = array<i32>} : memref<8x8x256xf32, #tpu.memory_space<vmem>>, vector<1x8x128xf32>,
    %297 = vector.shape_cast %293 : vector<8x128xf32> to vector<1x8x128xf32>
    %298 = arith.index_cast %227 : i32 to index
    %c0_83 = arith.constant 0 : index
    %c128_84 = arith.constant 128 : index
    %299 = vector.load %arg8[%298, %c0_83, %c128_84] : memref<8x8x256xf32, #tpu.memory_space<vmem>>, vector<1x8x128xf32>
    tpu.vector_store %arg8[%298, %c0_83, %c128_84], %297 {strides = array<i32>} : memref<8x8x256xf32, #tpu.memory_space<vmem>>, vector<1x8x128xf32>,
    %c4_i32 = arith.constant 4 : i32
    %c7_i32_85 = arith.constant 7 : i32
    %300 = arith.subi %c7_i32_85, %c4_i32 : i32
    %301 = arith.index_cast %c4_i32 : i32 to index
    %c0_86 = arith.constant 0 : index
    %c0_87 = arith.constant 0 : index
    %302 = vector.load %arg1[%301, %c0_86, %c0_87] : memref<8x8x128xf32, #tpu.memory_space<vmem>>, vector<1x8x128xf32>
    %303 = vector.shape_cast %302 : vector<1x8x128xf32> to vector<8x128xf32>
    %304 = arith.index_cast %300 : i32 to index
    %c0_88 = arith.constant 0 : index
    %c0_89 = arith.constant 0 : index
    %305 = vector.load %arg1[%304, %c0_88, %c0_89] : memref<8x8x128xf32, #tpu.memory_space<vmem>>, vector<1x8x128xf32>
    %306 = vector.shape_cast %305 : vector<1x8x128xf32> to vector<8x128xf32>
    %cst_90 = arith.constant dense<0.000000e+00> : vector<8x512xf32>
    %307 = tpu.matmul %303, %0, %cst_90 {dimension_numbers = #tpu.dot_dimension_numbers<[1], [0], [0], [1], [0, 0, 1, 1], [], []>} : vector<8x128xf32>, vector<128x512xf32>, vector<8x512xf32> -> vector<8x512xf32>
    %308 = vector.broadcast %2 : vector<1x512xf32> to vector<8x512xf32>
    %309 = arith.addf %307, %308 : vector<8x512xf32>
    %cst_91 = arith.constant dense<0.000000e+00> : vector<8x512xf32>
    %310 = tpu.matmul %306, %1, %cst_91 {dimension_numbers = #tpu.dot_dimension_numbers<[1], [0], [0], [1], [0, 0, 1, 1], [], []>} : vector<8x128xf32>, vector<128x512xf32>, vector<8x512xf32> -> vector<8x512xf32>
    %311 = vector.broadcast %3 : vector<1x512xf32> to vector<8x512xf32>
    %312 = arith.addf %310, %311 : vector<8x512xf32>
    %cst_92 = arith.constant dense<0.000000e+00> : vector<8x512xf32>
    %313 = tpu.matmul %268, %4, %cst_92 {dimension_numbers = #tpu.dot_dimension_numbers<[1], [0], [0], [1], [0, 0, 1, 1], [], []>} : vector<8x128xf32>, vector<128x512xf32>, vector<8x512xf32> -> vector<8x512xf32>
    %314 = arith.addf %309, %313 : vector<8x512xf32>
    %cst_93 = arith.constant dense<0.000000e+00> : vector<8x512xf32>
    %315 = tpu.matmul %293, %5, %cst_93 {dimension_numbers = #tpu.dot_dimension_numbers<[1], [0], [0], [1], [0, 0, 1, 1], [], []>} : vector<8x128xf32>, vector<128x512xf32>, vector<8x512xf32> -> vector<8x512xf32>
    %316 = arith.addf %312, %315 : vector<8x512xf32>
    %317 = vector.extract_strided_slice %314 {offsets = [0, 0], sizes = [8, 128], strides = [1, 1]} : vector<8x512xf32> to vector<8x128xf32>
    %318 = arith.negf %317 : vector<8x128xf32>
    %319 = math.exp %318 : vector<8x128xf32>
    %cst_94 = arith.constant 1.000000e+00 : f32
    %320 = vector.broadcast %cst_94 : f32 to vector<8x128xf32>
    %321 = arith.addf %320, %319 : vector<8x128xf32>
    %322 = arith.divf %320, %321 : vector<8x128xf32>
    %323 = vector.extract_strided_slice %314 {offsets = [0, 128], sizes = [8, 128], strides = [1, 1]} : vector<8x512xf32> to vector<8x128xf32>
    %324 = arith.negf %323 : vector<8x128xf32>
    %325 = math.exp %324 : vector<8x128xf32>
    %cst_95 = arith.constant 1.000000e+00 : f32
    %326 = vector.broadcast %cst_95 : f32 to vector<8x128xf32>
    %327 = arith.addf %326, %325 : vector<8x128xf32>
    %328 = arith.divf %326, %327 : vector<8x128xf32>
    %329 = vector.extract_strided_slice %314 {offsets = [0, 256], sizes = [8, 128], strides = [1, 1]} : vector<8x512xf32> to vector<8x128xf32>
    %330 = math.tanh %329 : vector<8x128xf32>
    %331 = vector.extract_strided_slice %314 {offsets = [0, 384], sizes = [8, 128], strides = [1, 1]} : vector<8x512xf32> to vector<8x128xf32>
    %332 = arith.negf %331 : vector<8x128xf32>
    %333 = math.exp %332 : vector<8x128xf32>
    %cst_96 = arith.constant 1.000000e+00 : f32
    %334 = vector.broadcast %cst_96 : f32 to vector<8x128xf32>
    %335 = arith.addf %334, %333 : vector<8x128xf32>
    %336 = arith.divf %334, %335 : vector<8x128xf32>
    %337 = arith.mulf %328, %266 : vector<8x128xf32>
    %338 = arith.mulf %322, %330 : vector<8x128xf32>
    %339 = arith.addf %337, %338 : vector<8x128xf32>
    %340 = math.tanh %339 : vector<8x128xf32>
    %341 = arith.mulf %336, %340 : vector<8x128xf32>
    %342 = vector.extract_strided_slice %316 {offsets = [0, 0], sizes = [8, 128], strides = [1, 1]} : vector<8x512xf32> to vector<8x128xf32>
    %343 = arith.negf %342 : vector<8x128xf32>
    %344 = math.exp %343 : vector<8x128xf32>
    %cst_97 = arith.constant 1.000000e+00 : f32
    %345 = vector.broadcast %cst_97 : f32 to vector<8x128xf32>
    %346 = arith.addf %345, %344 : vector<8x128xf32>
    %347 = arith.divf %345, %346 : vector<8x128xf32>
    %348 = vector.extract_strided_slice %316 {offsets = [0, 128], sizes = [8, 128], strides = [1, 1]} : vector<8x512xf32> to vector<8x128xf32>
    %349 = arith.negf %348 : vector<8x128xf32>
    %350 = math.exp %349 : vector<8x128xf32>
    %cst_98 = arith.constant 1.000000e+00 : f32
    %351 = vector.broadcast %cst_98 : f32 to vector<8x128xf32>
    %352 = arith.addf %351, %350 : vector<8x128xf32>
    %353 = arith.divf %351, %352 : vector<8x128xf32>
    %354 = vector.extract_strided_slice %316 {offsets = [0, 256], sizes = [8, 128], strides = [1, 1]} : vector<8x512xf32> to vector<8x128xf32>
    %355 = math.tanh %354 : vector<8x128xf32>
    %356 = vector.extract_strided_slice %316 {offsets = [0, 384], sizes = [8, 128], strides = [1, 1]} : vector<8x512xf32> to vector<8x128xf32>
    %357 = arith.negf %356 : vector<8x128xf32>
    %358 = math.exp %357 : vector<8x128xf32>
    %cst_99 = arith.constant 1.000000e+00 : f32
    %359 = vector.broadcast %cst_99 : f32 to vector<8x128xf32>
    %360 = arith.addf %359, %358 : vector<8x128xf32>
    %361 = arith.divf %359, %360 : vector<8x128xf32>
    %362 = arith.mulf %353, %291 : vector<8x128xf32>
    %363 = arith.mulf %347, %355 : vector<8x128xf32>
    %364 = arith.addf %362, %363 : vector<8x128xf32>
    %365 = math.tanh %364 : vector<8x128xf32>
    %366 = arith.mulf %361, %365 : vector<8x128xf32>
    %367 = vector.shape_cast %341 : vector<8x128xf32> to vector<1x8x128xf32>
    %368 = arith.index_cast %c4_i32 : i32 to index
    %c0_100 = arith.constant 0 : index
    %c0_101 = arith.constant 0 : index
    %369 = vector.load %arg8[%368, %c0_100, %c0_101] : memref<8x8x256xf32, #tpu.memory_space<vmem>>, vector<1x8x128xf32>
    tpu.vector_store %arg8[%368, %c0_100, %c0_101], %367 {strides = array<i32>} : memref<8x8x256xf32, #tpu.memory_space<vmem>>, vector<1x8x128xf32>,
    %370 = vector.shape_cast %366 : vector<8x128xf32> to vector<1x8x128xf32>
    %371 = arith.index_cast %300 : i32 to index
    %c0_102 = arith.constant 0 : index
    %c128_103 = arith.constant 128 : index
    %372 = vector.load %arg8[%371, %c0_102, %c128_103] : memref<8x8x256xf32, #tpu.memory_space<vmem>>, vector<1x8x128xf32>
    tpu.vector_store %arg8[%371, %c0_102, %c128_103], %370 {strides = array<i32>} : memref<8x8x256xf32, #tpu.memory_space<vmem>>, vector<1x8x128xf32>,
    %c5_i32 = arith.constant 5 : i32
    %c7_i32_104 = arith.constant 7 : i32
    %373 = arith.subi %c7_i32_104, %c5_i32 : i32
    %374 = arith.index_cast %c5_i32 : i32 to index
    %c0_105 = arith.constant 0 : index
    %c0_106 = arith.constant 0 : index
    %375 = vector.load %arg1[%374, %c0_105, %c0_106] : memref<8x8x128xf32, #tpu.memory_space<vmem>>, vector<1x8x128xf32>
    %376 = vector.shape_cast %375 : vector<1x8x128xf32> to vector<8x128xf32>
    %377 = arith.index_cast %373 : i32 to index
    %c0_107 = arith.constant 0 : index
    %c0_108 = arith.constant 0 : index
    %378 = vector.load %arg1[%377, %c0_107, %c0_108] : memref<8x8x128xf32, #tpu.memory_space<vmem>>, vector<1x8x128xf32>
    %379 = vector.shape_cast %378 : vector<1x8x128xf32> to vector<8x128xf32>
    %cst_109 = arith.constant dense<0.000000e+00> : vector<8x512xf32>
    %380 = tpu.matmul %376, %0, %cst_109 {dimension_numbers = #tpu.dot_dimension_numbers<[1], [0], [0], [1], [0, 0, 1, 1], [], []>} : vector<8x128xf32>, vector<128x512xf32>, vector<8x512xf32> -> vector<8x512xf32>
    %381 = vector.broadcast %2 : vector<1x512xf32> to vector<8x512xf32>
    %382 = arith.addf %380, %381 : vector<8x512xf32>
    %cst_110 = arith.constant dense<0.000000e+00> : vector<8x512xf32>
    %383 = tpu.matmul %379, %1, %cst_110 {dimension_numbers = #tpu.dot_dimension_numbers<[1], [0], [0], [1], [0, 0, 1, 1], [], []>} : vector<8x128xf32>, vector<128x512xf32>, vector<8x512xf32> -> vector<8x512xf32>
    %384 = vector.broadcast %3 : vector<1x512xf32> to vector<8x512xf32>
    %385 = arith.addf %383, %384 : vector<8x512xf32>
    %cst_111 = arith.constant dense<0.000000e+00> : vector<8x512xf32>
    %386 = tpu.matmul %341, %4, %cst_111 {dimension_numbers = #tpu.dot_dimension_numbers<[1], [0], [0], [1], [0, 0, 1, 1], [], []>} : vector<8x128xf32>, vector<128x512xf32>, vector<8x512xf32> -> vector<8x512xf32>
    %387 = arith.addf %382, %386 : vector<8x512xf32>
    %cst_112 = arith.constant dense<0.000000e+00> : vector<8x512xf32>
    %388 = tpu.matmul %366, %5, %cst_112 {dimension_numbers = #tpu.dot_dimension_numbers<[1], [0], [0], [1], [0, 0, 1, 1], [], []>} : vector<8x128xf32>, vector<128x512xf32>, vector<8x512xf32> -> vector<8x512xf32>
    %389 = arith.addf %385, %388 : vector<8x512xf32>
    %390 = vector.extract_strided_slice %387 {offsets = [0, 0], sizes = [8, 128], strides = [1, 1]} : vector<8x512xf32> to vector<8x128xf32>
    %391 = arith.negf %390 : vector<8x128xf32>
    %392 = math.exp %391 : vector<8x128xf32>
    %cst_113 = arith.constant 1.000000e+00 : f32
    %393 = vector.broadcast %cst_113 : f32 to vector<8x128xf32>
    %394 = arith.addf %393, %392 : vector<8x128xf32>
    %395 = arith.divf %393, %394 : vector<8x128xf32>
    %396 = vector.extract_strided_slice %387 {offsets = [0, 128], sizes = [8, 128], strides = [1, 1]} : vector<8x512xf32> to vector<8x128xf32>
    %397 = arith.negf %396 : vector<8x128xf32>
    %398 = math.exp %397 : vector<8x128xf32>
    %cst_114 = arith.constant 1.000000e+00 : f32
    %399 = vector.broadcast %cst_114 : f32 to vector<8x128xf32>
    %400 = arith.addf %399, %398 : vector<8x128xf32>
    %401 = arith.divf %399, %400 : vector<8x128xf32>
    %402 = vector.extract_strided_slice %387 {offsets = [0, 256], sizes = [8, 128], strides = [1, 1]} : vector<8x512xf32> to vector<8x128xf32>
    %403 = math.tanh %402 : vector<8x128xf32>
    %404 = vector.extract_strided_slice %387 {offsets = [0, 384], sizes = [8, 128], strides = [1, 1]} : vector<8x512xf32> to vector<8x128xf32>
    %405 = arith.negf %404 : vector<8x128xf32>
    %406 = math.exp %405 : vector<8x128xf32>
    %cst_115 = arith.constant 1.000000e+00 : f32
    %407 = vector.broadcast %cst_115 : f32 to vector<8x128xf32>
    %408 = arith.addf %407, %406 : vector<8x128xf32>
    %409 = arith.divf %407, %408 : vector<8x128xf32>
    %410 = arith.mulf %401, %339 : vector<8x128xf32>
    %411 = arith.mulf %395, %403 : vector<8x128xf32>
    %412 = arith.addf %410, %411 : vector<8x128xf32>
    %413 = math.tanh %412 : vector<8x128xf32>
    %414 = arith.mulf %409, %413 : vector<8x128xf32>
    %415 = vector.extract_strided_slice %389 {offsets = [0, 0], sizes = [8, 128], strides = [1, 1]} : vector<8x512xf32> to vector<8x128xf32>
    %416 = arith.negf %415 : vector<8x128xf32>
    %417 = math.exp %416 : vector<8x128xf32>
    %cst_116 = arith.constant 1.000000e+00 : f32
    %418 = vector.broadcast %cst_116 : f32 to vector<8x128xf32>
    %419 = arith.addf %418, %417 : vector<8x128xf32>
    %420 = arith.divf %418, %419 : vector<8x128xf32>
    %421 = vector.extract_strided_slice %389 {offsets = [0, 128], sizes = [8, 128], strides = [1, 1]} : vector<8x512xf32> to vector<8x128xf32>
    %422 = arith.negf %421 : vector<8x128xf32>
    %423 = math.exp %422 : vector<8x128xf32>
    %cst_117 = arith.constant 1.000000e+00 : f32
    %424 = vector.broadcast %cst_117 : f32 to vector<8x128xf32>
    %425 = arith.addf %424, %423 : vector<8x128xf32>
    %426 = arith.divf %424, %425 : vector<8x128xf32>
    %427 = vector.extract_strided_slice %389 {offsets = [0, 256], sizes = [8, 128], strides = [1, 1]} : vector<8x512xf32> to vector<8x128xf32>
    %428 = math.tanh %427 : vector<8x128xf32>
    %429 = vector.extract_strided_slice %389 {offsets = [0, 384], sizes = [8, 128], strides = [1, 1]} : vector<8x512xf32> to vector<8x128xf32>
    %430 = arith.negf %429 : vector<8x128xf32>
    %431 = math.exp %430 : vector<8x128xf32>
    %cst_118 = arith.constant 1.000000e+00 : f32
    %432 = vector.broadcast %cst_118 : f32 to vector<8x128xf32>
    %433 = arith.addf %432, %431 : vector<8x128xf32>
    %434 = arith.divf %432, %433 : vector<8x128xf32>
    %435 = arith.mulf %426, %364 : vector<8x128xf32>
    %436 = arith.mulf %420, %428 : vector<8x128xf32>
    %437 = arith.addf %435, %436 : vector<8x128xf32>
    %438 = math.tanh %437 : vector<8x128xf32>
    %439 = arith.mulf %434, %438 : vector<8x128xf32>
    %440 = vector.shape_cast %414 : vector<8x128xf32> to vector<1x8x128xf32>
    %441 = arith.index_cast %c5_i32 : i32 to index
    %c0_119 = arith.constant 0 : index
    %c0_120 = arith.constant 0 : index
    %442 = vector.load %arg8[%441, %c0_119, %c0_120] : memref<8x8x256xf32, #tpu.memory_space<vmem>>, vector<1x8x128xf32>
    tpu.vector_store %arg8[%441, %c0_119, %c0_120], %440 {strides = array<i32>} : memref<8x8x256xf32, #tpu.memory_space<vmem>>, vector<1x8x128xf32>,
    %443 = vector.shape_cast %439 : vector<8x128xf32> to vector<1x8x128xf32>
    %444 = arith.index_cast %373 : i32 to index
    %c0_121 = arith.constant 0 : index
    %c128_122 = arith.constant 128 : index
    %445 = vector.load %arg8[%444, %c0_121, %c128_122] : memref<8x8x256xf32, #tpu.memory_space<vmem>>, vector<1x8x128xf32>
    tpu.vector_store %arg8[%444, %c0_121, %c128_122], %443 {strides = array<i32>} : memref<8x8x256xf32, #tpu.memory_space<vmem>>, vector<1x8x128xf32>,
    %c6_i32 = arith.constant 6 : i32
    %c7_i32_123 = arith.constant 7 : i32
    %446 = arith.subi %c7_i32_123, %c6_i32 : i32
    %447 = arith.index_cast %c6_i32 : i32 to index
    %c0_124 = arith.constant 0 : index
    %c0_125 = arith.constant 0 : index
    %448 = vector.load %arg1[%447, %c0_124, %c0_125] : memref<8x8x128xf32, #tpu.memory_space<vmem>>, vector<1x8x128xf32>
    %449 = vector.shape_cast %448 : vector<1x8x128xf32> to vector<8x128xf32>
    %450 = arith.index_cast %446 : i32 to index
    %c0_126 = arith.constant 0 : index
    %c0_127 = arith.constant 0 : index
    %451 = vector.load %arg1[%450, %c0_126, %c0_127] : memref<8x8x128xf32, #tpu.memory_space<vmem>>, vector<1x8x128xf32>
    %452 = vector.shape_cast %451 : vector<1x8x128xf32> to vector<8x128xf32>
    %cst_128 = arith.constant dense<0.000000e+00> : vector<8x512xf32>
    %453 = tpu.matmul %449, %0, %cst_128 {dimension_numbers = #tpu.dot_dimension_numbers<[1], [0], [0], [1], [0, 0, 1, 1], [], []>} : vector<8x128xf32>, vector<128x512xf32>, vector<8x512xf32> -> vector<8x512xf32>
    %454 = vector.broadcast %2 : vector<1x512xf32> to vector<8x512xf32>
    %455 = arith.addf %453, %454 : vector<8x512xf32>
    %cst_129 = arith.constant dense<0.000000e+00> : vector<8x512xf32>
    %456 = tpu.matmul %452, %1, %cst_129 {dimension_numbers = #tpu.dot_dimension_numbers<[1], [0], [0], [1], [0, 0, 1, 1], [], []>} : vector<8x128xf32>, vector<128x512xf32>, vector<8x512xf32> -> vector<8x512xf32>
    %457 = vector.broadcast %3 : vector<1x512xf32> to vector<8x512xf32>
    %458 = arith.addf %456, %457 : vector<8x512xf32>
    %cst_130 = arith.constant dense<0.000000e+00> : vector<8x512xf32>
    %459 = tpu.matmul %414, %4, %cst_130 {dimension_numbers = #tpu.dot_dimension_numbers<[1], [0], [0], [1], [0, 0, 1, 1], [], []>} : vector<8x128xf32>, vector<128x512xf32>, vector<8x512xf32> -> vector<8x512xf32>
    %460 = arith.addf %455, %459 : vector<8x512xf32>
    %cst_131 = arith.constant dense<0.000000e+00> : vector<8x512xf32>
    %461 = tpu.matmul %439, %5, %cst_131 {dimension_numbers = #tpu.dot_dimension_numbers<[1], [0], [0], [1], [0, 0, 1, 1], [], []>} : vector<8x128xf32>, vector<128x512xf32>, vector<8x512xf32> -> vector<8x512xf32>
    %462 = arith.addf %458, %461 : vector<8x512xf32>
    %463 = vector.extract_strided_slice %460 {offsets = [0, 0], sizes = [8, 128], strides = [1, 1]} : vector<8x512xf32> to vector<8x128xf32>
    %464 = arith.negf %463 : vector<8x128xf32>
    %465 = math.exp %464 : vector<8x128xf32>
    %cst_132 = arith.constant 1.000000e+00 : f32
    %466 = vector.broadcast %cst_132 : f32 to vector<8x128xf32>
    %467 = arith.addf %466, %465 : vector<8x128xf32>
    %468 = arith.divf %466, %467 : vector<8x128xf32>
    %469 = vector.extract_strided_slice %460 {offsets = [0, 128], sizes = [8, 128], strides = [1, 1]} : vector<8x512xf32> to vector<8x128xf32>
    %470 = arith.negf %469 : vector<8x128xf32>
    %471 = math.exp %470 : vector<8x128xf32>
    %cst_133 = arith.constant 1.000000e+00 : f32
    %472 = vector.broadcast %cst_133 : f32 to vector<8x128xf32>
    %473 = arith.addf %472, %471 : vector<8x128xf32>
    %474 = arith.divf %472, %473 : vector<8x128xf32>
    %475 = vector.extract_strided_slice %460 {offsets = [0, 256], sizes = [8, 128], strides = [1, 1]} : vector<8x512xf32> to vector<8x128xf32>
    %476 = math.tanh %475 : vector<8x128xf32>
    %477 = vector.extract_strided_slice %460 {offsets = [0, 384], sizes = [8, 128], strides = [1, 1]} : vector<8x512xf32> to vector<8x128xf32>
    %478 = arith.negf %477 : vector<8x128xf32>
    %479 = math.exp %478 : vector<8x128xf32>
    %cst_134 = arith.constant 1.000000e+00 : f32
    %480 = vector.broadcast %cst_134 : f32 to vector<8x128xf32>
    %481 = arith.addf %480, %479 : vector<8x128xf32>
    %482 = arith.divf %480, %481 : vector<8x128xf32>
    %483 = arith.mulf %474, %412 : vector<8x128xf32>
    %484 = arith.mulf %468, %476 : vector<8x128xf32>
    %485 = arith.addf %483, %484 : vector<8x128xf32>
    %486 = math.tanh %485 : vector<8x128xf32>
    %487 = arith.mulf %482, %486 : vector<8x128xf32>
    %488 = vector.extract_strided_slice %462 {offsets = [0, 0], sizes = [8, 128], strides = [1, 1]} : vector<8x512xf32> to vector<8x128xf32>
    %489 = arith.negf %488 : vector<8x128xf32>
    %490 = math.exp %489 : vector<8x128xf32>
    %cst_135 = arith.constant 1.000000e+00 : f32
    %491 = vector.broadcast %cst_135 : f32 to vector<8x128xf32>
    %492 = arith.addf %491, %490 : vector<8x128xf32>
    %493 = arith.divf %491, %492 : vector<8x128xf32>
    %494 = vector.extract_strided_slice %462 {offsets = [0, 128], sizes = [8, 128], strides = [1, 1]} : vector<8x512xf32> to vector<8x128xf32>
    %495 = arith.negf %494 : vector<8x128xf32>
    %496 = math.exp %495 : vector<8x128xf32>
    %cst_136 = arith.constant 1.000000e+00 : f32
    %497 = vector.broadcast %cst_136 : f32 to vector<8x128xf32>
    %498 = arith.addf %497, %496 : vector<8x128xf32>
    %499 = arith.divf %497, %498 : vector<8x128xf32>
    %500 = vector.extract_strided_slice %462 {offsets = [0, 256], sizes = [8, 128], strides = [1, 1]} : vector<8x512xf32> to vector<8x128xf32>
    %501 = math.tanh %500 : vector<8x128xf32>
    %502 = vector.extract_strided_slice %462 {offsets = [0, 384], sizes = [8, 128], strides = [1, 1]} : vector<8x512xf32> to vector<8x128xf32>
    %503 = arith.negf %502 : vector<8x128xf32>
    %504 = math.exp %503 : vector<8x128xf32>
    %cst_137 = arith.constant 1.000000e+00 : f32
    %505 = vector.broadcast %cst_137 : f32 to vector<8x128xf32>
    %506 = arith.addf %505, %504 : vector<8x128xf32>
    %507 = arith.divf %505, %506 : vector<8x128xf32>
    %508 = arith.mulf %499, %437 : vector<8x128xf32>
    %509 = arith.mulf %493, %501 : vector<8x128xf32>
    %510 = arith.addf %508, %509 : vector<8x128xf32>
    %511 = math.tanh %510 : vector<8x128xf32>
    %512 = arith.mulf %507, %511 : vector<8x128xf32>
    %513 = vector.shape_cast %487 : vector<8x128xf32> to vector<1x8x128xf32>
    %514 = arith.index_cast %c6_i32 : i32 to index
    %c0_138 = arith.constant 0 : index
    %c0_139 = arith.constant 0 : index
    %515 = vector.load %arg8[%514, %c0_138, %c0_139] : memref<8x8x256xf32, #tpu.memory_space<vmem>>, vector<1x8x128xf32>
    tpu.vector_store %arg8[%514, %c0_138, %c0_139], %513 {strides = array<i32>} : memref<8x8x256xf32, #tpu.memory_space<vmem>>, vector<1x8x128xf32>,
    %516 = vector.shape_cast %512 : vector<8x128xf32> to vector<1x8x128xf32>
    %517 = arith.index_cast %446 : i32 to index
    %c0_140 = arith.constant 0 : index
    %c128_141 = arith.constant 128 : index
    %518 = vector.load %arg8[%517, %c0_140, %c128_141] : memref<8x8x256xf32, #tpu.memory_space<vmem>>, vector<1x8x128xf32>
    tpu.vector_store %arg8[%517, %c0_140, %c128_141], %516 {strides = array<i32>} : memref<8x8x256xf32, #tpu.memory_space<vmem>>, vector<1x8x128xf32>,
    %c7_i32_142 = arith.constant 7 : i32
    %c7_i32_143 = arith.constant 7 : i32
    %519 = arith.subi %c7_i32_143, %c7_i32_142 : i32
    %520 = arith.index_cast %c7_i32_142 : i32 to index
    %c0_144 = arith.constant 0 : index
    %c0_145 = arith.constant 0 : index
    %521 = vector.load %arg1[%520, %c0_144, %c0_145] : memref<8x8x128xf32, #tpu.memory_space<vmem>>, vector<1x8x128xf32>
    %522 = vector.shape_cast %521 : vector<1x8x128xf32> to vector<8x128xf32>
    %523 = arith.index_cast %519 : i32 to index
    %c0_146 = arith.constant 0 : index
    %c0_147 = arith.constant 0 : index
    %524 = vector.load %arg1[%523, %c0_146, %c0_147] : memref<8x8x128xf32, #tpu.memory_space<vmem>>, vector<1x8x128xf32>
    %525 = vector.shape_cast %524 : vector<1x8x128xf32> to vector<8x128xf32>
    %cst_148 = arith.constant dense<0.000000e+00> : vector<8x512xf32>
    %526 = tpu.matmul %522, %0, %cst_148 {dimension_numbers = #tpu.dot_dimension_numbers<[1], [0], [0], [1], [0, 0, 1, 1], [], []>} : vector<8x128xf32>, vector<128x512xf32>, vector<8x512xf32> -> vector<8x512xf32>
    %527 = vector.broadcast %2 : vector<1x512xf32> to vector<8x512xf32>
    %528 = arith.addf %526, %527 : vector<8x512xf32>
    %cst_149 = arith.constant dense<0.000000e+00> : vector<8x512xf32>
    %529 = tpu.matmul %525, %1, %cst_149 {dimension_numbers = #tpu.dot_dimension_numbers<[1], [0], [0], [1], [0, 0, 1, 1], [], []>} : vector<8x128xf32>, vector<128x512xf32>, vector<8x512xf32> -> vector<8x512xf32>
    %530 = vector.broadcast %3 : vector<1x512xf32> to vector<8x512xf32>
    %531 = arith.addf %529, %530 : vector<8x512xf32>
    %cst_150 = arith.constant dense<0.000000e+00> : vector<8x512xf32>
    %532 = tpu.matmul %487, %4, %cst_150 {dimension_numbers = #tpu.dot_dimension_numbers<[1], [0], [0], [1], [0, 0, 1, 1], [], []>} : vector<8x128xf32>, vector<128x512xf32>, vector<8x512xf32> -> vector<8x512xf32>
    %533 = arith.addf %528, %532 : vector<8x512xf32>
    %cst_151 = arith.constant dense<0.000000e+00> : vector<8x512xf32>
    %534 = tpu.matmul %512, %5, %cst_151 {dimension_numbers = #tpu.dot_dimension_numbers<[1], [0], [0], [1], [0, 0, 1, 1], [], []>} : vector<8x128xf32>, vector<128x512xf32>, vector<8x512xf32> -> vector<8x512xf32>
    %535 = arith.addf %531, %534 : vector<8x512xf32>
    %536 = vector.extract_strided_slice %533 {offsets = [0, 0], sizes = [8, 128], strides = [1, 1]} : vector<8x512xf32> to vector<8x128xf32>
    %537 = arith.negf %536 : vector<8x128xf32>
    %538 = math.exp %537 : vector<8x128xf32>
    %cst_152 = arith.constant 1.000000e+00 : f32
    %539 = vector.broadcast %cst_152 : f32 to vector<8x128xf32>
    %540 = arith.addf %539, %538 : vector<8x128xf32>
    %541 = arith.divf %539, %540 : vector<8x128xf32>
    %542 = vector.extract_strided_slice %533 {offsets = [0, 128], sizes = [8, 128], strides = [1, 1]} : vector<8x512xf32> to vector<8x128xf32>
    %543 = arith.negf %542 : vector<8x128xf32>
    %544 = math.exp %543 : vector<8x128xf32>
    %cst_153 = arith.constant 1.000000e+00 : f32
    %545 = vector.broadcast %cst_153 : f32 to vector<8x128xf32>
    %546 = arith.addf %545, %544 : vector<8x128xf32>
    %547 = arith.divf %545, %546 : vector<8x128xf32>
    %548 = vector.extract_strided_slice %533 {offsets = [0, 256], sizes = [8, 128], strides = [1, 1]} : vector<8x512xf32> to vector<8x128xf32>
    %549 = math.tanh %548 : vector<8x128xf32>
    %550 = vector.extract_strided_slice %533 {offsets = [0, 384], sizes = [8, 128], strides = [1, 1]} : vector<8x512xf32> to vector<8x128xf32>
    %551 = arith.negf %550 : vector<8x128xf32>
    %552 = math.exp %551 : vector<8x128xf32>
    %cst_154 = arith.constant 1.000000e+00 : f32
    %553 = vector.broadcast %cst_154 : f32 to vector<8x128xf32>
    %554 = arith.addf %553, %552 : vector<8x128xf32>
    %555 = arith.divf %553, %554 : vector<8x128xf32>
    %556 = arith.mulf %547, %485 : vector<8x128xf32>
    %557 = arith.mulf %541, %549 : vector<8x128xf32>
    %558 = arith.addf %556, %557 : vector<8x128xf32>
    %559 = math.tanh %558 : vector<8x128xf32>
    %560 = arith.mulf %555, %559 : vector<8x128xf32>
    %561 = vector.extract_strided_slice %535 {offsets = [0, 0], sizes = [8, 128], strides = [1, 1]} : vector<8x512xf32> to vector<8x128xf32>
    %562 = arith.negf %561 : vector<8x128xf32>
    %563 = math.exp %562 : vector<8x128xf32>
    %cst_155 = arith.constant 1.000000e+00 : f32
    %564 = vector.broadcast %cst_155 : f32 to vector<8x128xf32>
    %565 = arith.addf %564, %563 : vector<8x128xf32>
    %566 = arith.divf %564, %565 : vector<8x128xf32>
    %567 = vector.extract_strided_slice %535 {offsets = [0, 128], sizes = [8, 128], strides = [1, 1]} : vector<8x512xf32> to vector<8x128xf32>
    %568 = arith.negf %567 : vector<8x128xf32>
    %569 = math.exp %568 : vector<8x128xf32>
    %cst_156 = arith.constant 1.000000e+00 : f32
    %570 = vector.broadcast %cst_156 : f32 to vector<8x128xf32>
    %571 = arith.addf %570, %569 : vector<8x128xf32>
    %572 = arith.divf %570, %571 : vector<8x128xf32>
    %573 = vector.extract_strided_slice %535 {offsets = [0, 256], sizes = [8, 128], strides = [1, 1]} : vector<8x512xf32> to vector<8x128xf32>
    %574 = math.tanh %573 : vector<8x128xf32>
    %575 = vector.extract_strided_slice %535 {offsets = [0, 384], sizes = [8, 128], strides = [1, 1]} : vector<8x512xf32> to vector<8x128xf32>
    %576 = arith.negf %575 : vector<8x128xf32>
    %577 = math.exp %576 : vector<8x128xf32>
    %cst_157 = arith.constant 1.000000e+00 : f32
    %578 = vector.broadcast %cst_157 : f32 to vector<8x128xf32>
    %579 = arith.addf %578, %577 : vector<8x128xf32>
    %580 = arith.divf %578, %579 : vector<8x128xf32>
    %581 = arith.mulf %572, %510 : vector<8x128xf32>
    %582 = arith.mulf %566, %574 : vector<8x128xf32>
    %583 = arith.addf %581, %582 : vector<8x128xf32>
    %584 = math.tanh %583 : vector<8x128xf32>
    %585 = arith.mulf %580, %584 : vector<8x128xf32>
    %586 = vector.shape_cast %560 : vector<8x128xf32> to vector<1x8x128xf32>
    %587 = arith.index_cast %c7_i32_142 : i32 to index
    %c0_158 = arith.constant 0 : index
    %c0_159 = arith.constant 0 : index
    %588 = vector.load %arg8[%587, %c0_158, %c0_159] : memref<8x8x256xf32, #tpu.memory_space<vmem>>, vector<1x8x128xf32>
    tpu.vector_store %arg8[%587, %c0_158, %c0_159], %586 {strides = array<i32>} : memref<8x8x256xf32, #tpu.memory_space<vmem>>, vector<1x8x128xf32>,
    %589 = vector.shape_cast %585 : vector<8x128xf32> to vector<1x8x128xf32>
    %590 = arith.index_cast %519 : i32 to index
    %c0_160 = arith.constant 0 : index
    %c128_161 = arith.constant 128 : index
    %591 = vector.load %arg8[%590, %c0_160, %c128_161] : memref<8x8x256xf32, #tpu.memory_space<vmem>>, vector<1x8x128xf32>
    tpu.vector_store %arg8[%590, %c0_160, %c128_161], %589 {strides = array<i32>} : memref<8x8x256xf32, #tpu.memory_space<vmem>>, vector<1x8x128xf32>,
    %c8_i32 = arith.constant 8 : i32
    %c0_162 = arith.constant 0 : index
    %c0_163 = arith.constant 0 : index
    %c0_164 = arith.constant 0 : index
    %592 = vector.load %arg8[%c0_162, %c0_163, %c0_164] : memref<8x8x256xf32, #tpu.memory_space<vmem>>, vector<8x8x256xf32>
    %593 = vector.shape_cast %592 : vector<8x8x256xf32> to vector<64x256xf32>
    %c0_165 = arith.constant 0 : index
    %c0_166 = arith.constant 0 : index
    %594 = vector.load %arg5[%c0_165, %c0_166] : memref<256x128xf32, #tpu.memory_space<vmem>>, vector<256x128xf32>
    %cst_167 = arith.constant dense<0.000000e+00> : vector<64x128xf32>
    %595 = tpu.matmul %593, %594, %cst_167 {dimension_numbers = #tpu.dot_dimension_numbers<[1], [0], [0], [1], [0, 0, 1, 1], [], []>} : vector<64x256xf32>, vector<256x128xf32>, vector<64x128xf32> -> vector<64x128xf32>
    %c0_168 = arith.constant 0 : index
    %c0_169 = arith.constant 0 : index
    %596 = vector.load %arg6[%c0_168, %c0_169] : memref<1x128xf32, #tpu.memory_space<vmem>>, vector<1x128xf32>
    %597 = vector.broadcast %596 : vector<1x128xf32> to vector<64x128xf32>
    %598 = arith.addf %595, %597 : vector<64x128xf32>
    %599 = vector.shape_cast %598 : vector<64x128xf32> to vector<8x8x128xf32>
    %c0_170 = arith.constant 0 : index
    %c0_171 = arith.constant 0 : index
    %c0_172 = arith.constant 0 : index
    %600 = vector.load %arg7[%c0_170, %c0_171, %c0_172] : memref<8x8x128xf32, #tpu.memory_space<vmem>>, vector<8x8x128xf32>
    tpu.vector_store %arg7[%c0_170, %c0_171, %c0_172], %599 {strides = array<i32>} : memref<8x8x128xf32, #tpu.memory_space<vmem>>, vector<8x8x128xf32>,
    return
  }
  func.func @transform_0(%arg0: i32) -> (i32, i32, i32) {
    %c0_i32 = arith.constant 0 : i32
    %c0_i32_0 = arith.constant 0 : i32
    %c0_i32_1 = arith.constant 0 : i32
    return %c0_i32, %arg0, %c0_i32_0 : i32, i32, i32
  }
  func.func @transform_1(%arg0: i32) -> (i32, i32) {
    %c0_i32 = arith.constant 0 : i32
    %c0_i32_0 = arith.constant 0 : i32
    %c0_i32_1 = arith.constant 0 : i32
    return %c0_i32, %c0_i32_0 : i32, i32
  }
  func.func @transform_2(%arg0: i32) -> (i32, i32) {
    %c0_i32 = arith.constant 0 : i32
    %c0_i32_0 = arith.constant 0 : i32
    %c0_i32_1 = arith.constant 0 : i32
    return %c0_i32, %c0_i32_0 : i32, i32
  }
  func.func @transform_3(%arg0: i32) -> (i32, i32) {
    %c0_i32 = arith.constant 0 : i32
    %c0_i32_0 = arith.constant 0 : i32
    %c0_i32_1 = arith.constant 0 : i32
    return %c0_i32, %c0_i32_0 : i32, i32
  }
  func.func @transform_4(%arg0: i32) -> (i32, i32) {
    %c0_i32 = arith.constant 0 : i32
    %c0_i32_0 = arith.constant 0 : i32
    %c0_i32_1 = arith.constant 0 : i32
    return %c0_i32, %c0_i32_0 : i32, i32
  }
  func.func @transform_5(%arg0: i32) -> (i32, i32) {
    %c0_i32 = arith.constant 0 : i32
    %c0_i32_0 = arith.constant 0 : i32
    %c0_i32_1 = arith.constant 0 : i32
    return %c0_i32, %c0_i32_0 : i32, i32
  }
  func.func @transform_6(%arg0: i32) -> (i32, i32, i32) {
    %c0_i32 = arith.constant 0 : i32
    %c0_i32_0 = arith.constant 0 : i32
    %c0_i32_1 = arith.constant 0 : i32
    return %c0_i32, %arg0, %c0_i32_0 : i32, i32, i32
  }
}

</mosaic_0001>

<bundles_post_ra>
// kernel: tpu_custom_call.1
= control target key start
LH: loop header
LB: loop body
LE: loop exit
PB: predicated region body
PF: predicated region fallthrough
CT: control target
= control target key end

     0   :  { %11 = vsyncpa [#allocation4], 0  ;;  %s10017_s0 = inlined_call_operand.hbm [shape: f32[8,8,128], index: 0, kind: input, shape index: {}]   ;;  %s10018_s1 = inlined_call_operand.hbm [shape: f32[128,1024], index: 1, kind: input, shape index: {}]   ;;  %s10019_s2 = inlined_call_operand.hbm [shape: f32[128,1024], index: 2, kind: input, shape index: {}]   ;;  %s10020_s3 = inlined_call_operand.vmem [shape: f32[1,1024], index: 3, kind: input, shape index: {}]   ;;  %s10021_s4 = inlined_call_operand.hbm [shape: f32[256,128], index: 4, kind: input, shape index: {}]   ;;  %s10022_s5 = inlined_call_operand.vmem [shape: f32[1,128], index: 5, kind: input, shape index: {}]   ;;  %s10023_s6 = inlined_call_operand.hbm [shape: f32[8,8,128], index: 6, kind: output, shape index: {}]  }
   0x1   :  { %12 = vsyncpa [#allocation7], 0 }
   0x2   :  { %13 = vsyncpa [#allocation10], 0 }
   0x3   :  { %14 = vsyncpa [#allocation5], 0  ;;  %s8301_s21 = smov [#allocation6]   ;;  %s8183_s25 = scalar_lea.hbm %s10018_s1, 16384 }
   0x4   :  { %s32_s22 = sshll.u32 %s8301_s21, 4  ;;  %p8184_p0 = scmp.ne.s32.totalorder %s10018_s1, %s8183_s25  ;;  %s33_s22 = int_to_ptr.vmem [resolvable:$true] %s32_s22 }
   0x5   :  { %p8187_p1 = scmp.lt.u32.totalorder %s8183_s25, %s10018_s1 }
   0x7   :  { %p8189_p2 = pnand %p8187_p1, %p8184_p0 }
   0x9   :  { %8192 = shalt.err (!%p8189_p2)
}
   0xa   :  { %s8193_s30 = scalar_lea.vmem %s33_s22, 16384  ;;  %p8198_p4 = scmp.lt.s32.totalorder %s33_s22, %s33_s22 }
   0xb   :  { %p8194_p3 = scmp.ne.s32.totalorder %s33_s22, %s8193_s30  ;;  %p8199_p5 = scmp.lt.s32.totalorder %s8193_s30, %s8193_s30 }
   0xd   :  { %p8200_p6 = por %p8199_p5, %p8198_p4 }
   0xf   :  { %p8201_p7 = pnand %p8200_p6, %p8194_p3 }
  0x11   :  { %8204 = shalt.err (!%p8201_p7)
}
  0x12   :  { %s8302_s7 = smov 1024   ;;  %s8303_s8 = smov 64  }
  0x13   :  { %38 = dma.hbm_to_vmem [thread:$0]  %s10018_s1, 16384, %s33_s22, [#allocation7], %s8302_s7, %s8302_s7, %s8303_s8  }
  0x14   :  { %s8304_s11 = smov [#allocation3]   ;;  %s8205_s15 = scalar_lea.hbm %s10017_s0, 1024 }
  0x15   :  { %s20_s12 = sshll.u32 %s8304_s11, 4  ;;  %p8206_p8 = scmp.ne.s32.totalorder %s10017_s0, %s8205_s15  ;;  %s21_s12 = int_to_ptr.vmem [resolvable:$true] %s20_s12 }
  0x16   :  { %p8209_p9 = scmp.lt.u32.totalorder %s8205_s15, %s10017_s0 }
  0x18   :  { %p8211_p10 = pnand %p8209_p9, %p8206_p8 }
  0x1a   :  { %8214 = shalt.err (!%p8211_p10)
}
  0x1b   :  { %s8215_s20 = scalar_lea.vmem %s21_s12, 1024  ;;  %p8220_p12 = scmp.lt.s32.totalorder %s21_s12, %s21_s12 }
  0x1c   :  { %p8216_p11 = scmp.ne.s32.totalorder %s21_s12, %s8215_s20  ;;  %p8221_p13 = scmp.lt.s32.totalorder %s8215_s20, %s8215_s20 }
  0x1e   :  { %p8222_p0 = por %p8221_p13, %p8220_p12 }
  0x20   :  { %p8223_p1 = pnand %p8222_p0, %p8216_p11 }
  0x22   :  { %8226 = shalt.err (!%p8223_p1)
}
  0x23   :  { %s8305_s1 = smov 128   ;;  %s8306_s21 = smov 8  }
  0x24   :  { %26 = dma.hbm_to_vmem [thread:$0]  %s10017_s0, 1024, %s21_s12, [#allocation4], %s8305_s1, %s8305_s1, %s8306_s21  }
  0x25   :  { %s8307_s24 = smov [#allocation8]   ;;  %s8308_s26 = smov [#allocation9]  }
  0x26   :  { %s44_s25 = sshll.u32 %s8307_s24, 4  ;;  %s58_s27 = sshll.u32 %s8308_s26, 4  ;;  %s45_s25 = int_to_ptr.vmem [resolvable:$true] %s44_s25  ;;  %s8376_s27 = int_to_ptr.vmem [resolvable:$true] %s58_s27 }
  0x27   :  { %s8227_s30 = scalar_lea.hbm %s10019_s2, 16384 }
  0x28   :  { %p8228_p2 = scmp.ne.s32.totalorder %s10019_s2, %s8227_s30  ;;  %p8231_p3 = scmp.lt.u32.totalorder %s8227_s30, %s10019_s2 }
  0x2a   :  { %p8233_p4 = pnand %p8231_p3, %p8228_p2 }
  0x2c   :  { %8236 = shalt.err (!%p8233_p4)
}
  0x2d   :  { %s8237_s0 = scalar_lea.vmem %s45_s25, 16384  ;;  %p8242_p6 = scmp.lt.s32.totalorder %s45_s25, %s45_s25 }
  0x2e   :  { %p8238_p5 = scmp.ne.s32.totalorder %s45_s25, %s8237_s0  ;;  %p8243_p7 = scmp.lt.s32.totalorder %s8237_s0, %s8237_s0 }
  0x30   :  { %p8244_p8 = por %p8243_p7, %p8242_p6 }
  0x32   :  { %p8245_p9 = pnand %p8244_p8, %p8238_p5 }
  0x34   :  { %8248 = shalt.err (!%p8245_p9)
}
  0x35   :  { %50 = dma.hbm_to_vmem [thread:$0]  %s10019_s2, 16384, %s45_s25, [#allocation7], %s8302_s7, %s8302_s7, %s8303_s8  }
  0x36   :  { %s8249_s17 = scalar_lea.hbm %s10021_s4, 4096 }
  0x37   :  { %p8250_p10 = scmp.ne.s32.totalorder %s10021_s4, %s8249_s17  ;;  %p8253_p11 = scmp.lt.u32.totalorder %s8249_s17, %s10021_s4 }
  0x39   :  { %p8255_p12 = pnand %p8253_p11, %p8250_p10 }
  0x3b   :  { %8258 = shalt.err (!%p8255_p12)
}
  0x3c   :  { %s8259_s23 = scalar_lea.vmem %s8376_s27, 4096  ;;  %p8264_p0 = scmp.lt.s32.totalorder %s8376_s27, %s8376_s27 }
  0x3d   :  { %p8260_p13 = scmp.ne.s32.totalorder %s8376_s27, %s8259_s23  ;;  %p8265_p1 = scmp.lt.s32.totalorder %s8259_s23, %s8259_s23 }
  0x3f   :  { %p8266_p2 = por %p8265_p1, %p8264_p0 }
  0x41   :  { %p8267_p3 = pnand %p8266_p2, %p8260_p13 }
  0x43   :  { %8270 = shalt.err (!%p8267_p3)
}
  0x44   :  { %64 = dma.hbm_to_vmem [thread:$0]  %s10021_s4, 4096, %s8376_s27, [#allocation10], %s8305_s1, %s8305_s1, %s8306_s21  }
  0x45   :  { %8293 = dma.done.wait [#allocation4], 1024  }
  0x46   :  { %8294 = vsyncadd [#allocation4], 4294966272 }
  0x47   :  { %8295 = dma.done.wait [#allocation7], 32768  }
  0x48   :  { %8296 = vsyncadd [#allocation7], 4294934528 }
  0x49   :  { %8297 = dma.done.wait [#allocation10], 4096  }
  0x4a   :  { %8298 = vsyncadd [#allocation10], 4294963200  ;;  %v10024_v0 = vmov 0.0   ;;  %v80_v1 = vld [vmem:[#allocation6 + $0x8] sm:$0xff]  ;;  %v79_v6 = vld [vmem:[#allocation6] sm:$0xff] }
  0x4b   :  { %425 = vmatprep.mubr.f32.mxu1 %v10024_v0  ;;  %588 = vmatprep.mubr.f32.mxu0 %v10024_v0  ;;  %v84_v2 = vld [vmem:[#allocation6 + $0x48] sm:$0xff]  ;;  %v83_v7 = vld [vmem:[#allocation6 + $0x40] sm:$0xff] }
  0x4c   :  { %v144_v3 = vld [vmem:[#allocation6 + $0x28] sm:$0xff]  ;;  %v8415_v4 = vpack.c.bf16 %v84_v2, %v80_v1  ;;  %v8419_v9 = vpack.c.bf16 %v83_v7, %v79_v6  ;;  %v143_v10 = vld [vmem:[#allocation6 + $0x20] sm:$0xff] }
  0x4d   :  { %v148_v5 = vld [vmem:[#allocation6 + $0x68] sm:$0xff]  ;;  %v147_v11 = vld [vmem:[#allocation6 + $0x60] sm:$0xff] }
  0x4e   :  { %10308 = vst [vmem:[#allocation16_spill] sm:$0xff] %v8415_v4  ;;  %v8417_v8 = vpack.c.bf16 %v148_v5, %v144_v3  ;;  %10310 = vst [vmem:[#allocation18_spill] sm:$0xff] %v8419_v9  ;;  %v88_v12 = vld [vmem:[#allocation6 + $0x88] sm:$0xff]  ;;  %5710 = vmatprep.subr.bf16.mxu1 %v8415_v4  ;;  %v8422_v13 = vpack.c.bf16 %v147_v11, %v143_v10  ;;  %v87_v19 = vld [vmem:[#allocation6 + $0x80] sm:$0xff] }
  0x4f   :  { %v92_v14 = vld [vmem:[#allocation6 + $0xc8] sm:$0xff]  ;;  %5712 = vmatpush1.bf16.msra.mxu1 %v8419_v9  ;;  %v91_v20 = vld [vmem:[#allocation6 + $0xc0] sm:$0xff] }
  0x50   :  { %10309 = vst [vmem:[#allocation17_spill] sm:$0xff] %v8417_v8  ;;  %10311 = vst [vmem:[#allocation19_spill] sm:$0xff] %v8422_v13  ;;  %v152_v15 = vld [vmem:[#allocation6 + $0xa8] sm:$0xff]  ;;  %5774 = vmatprep.subr.bf16.mxu0 %v8417_v8  ;;  %v8426_v17 = vpack.c.bf16 %v92_v14, %v88_v12  ;;  %v151_v21 = vld [vmem:[#allocation6 + $0xa0] sm:$0xff]  ;;  %v8431_v22 = vpack.c.bf16 %v91_v20, %v87_v19 }
  0x51   :  { %v156_v16 = vld [vmem:[#allocation6 + $0xe8] sm:$0xff]  ;;  %5776 = vmatpush1.bf16.msra.mxu0 %v8422_v13  ;;  %v155_v23 = vld [vmem:[#allocation6 + $0xe0] sm:$0xff] }
  0x52   :  { %10312 = vst [vmem:[#allocation20_spill] sm:$0xff] %v8426_v17  ;;  %v8428_v18 = vpack.c.bf16 %v156_v16, %v152_v15  ;;  %10314 = vst [vmem:[#allocation22_spill] sm:$0xff] %v8431_v22  ;;  %v96_v24 = vld [vmem:[#allocation6 + $0x108] sm:$0xff]  ;;  %5714 = vmatprep.subr.bf16.mxu1 %v8426_v17  ;;  %v8435_v26 = vpack.c.bf16 %v155_v23, %v151_v21  ;;  %v95_v30 = vld [vmem:[#allocation6 + $0x100] sm:$0xff] }
  0x53   :  { %v100_v25 = vld [vmem:[#allocation6 + $0x148] sm:$0xff]  ;;  %v99_v32 = vld [vmem:[#allocation6 + $0x140] sm:$0xff]  ;;  %5716 = vmatpush1.bf16.msra.mxu1 %v8431_v22 }
  0x54   :  { %10313 = vst [vmem:[#allocation21_spill] sm:$0xff] %v8428_v18  ;;  %5778 = vmatprep.subr.bf16.mxu0 %v8428_v18  ;;  %10315 = vst [vmem:[#allocation23_spill] sm:$0xff] %v8435_v26  ;;  %v8437_v27 = vpack.c.bf16 %v100_v25, %v96_v24  ;;  %v160_v28 = vld [vmem:[#allocation6 + $0x128] sm:$0xff]  ;;  %v159_v33 = vld [vmem:[#allocation6 + $0x120] sm:$0xff]  ;;  %v8442_v35 = vpack.c.bf16 %v99_v32, %v95_v30 }
  0x55   :  { %v164_v29 = vld [vmem:[#allocation6 + $0x168] sm:$0xff]  ;;  %v163_v34 = vld [vmem:[#allocation6 + $0x160] sm:$0xff]  ;;  %5780 = vmatpush1.bf16.msra.mxu0 %v8435_v26 }
  0x56   :  { %10316 = vst [vmem:[#allocation24_spill] sm:$0xff] %v8437_v27  ;;  %v8439_v31 = vpack.c.bf16 %v164_v29, %v160_v28  ;;  %10318 = vst [vmem:[#allocation26_spill] sm:$0xff] %v8442_v35  ;;  %v104_v36 = vld [vmem:[#allocation6 + $0x188] sm:$0xff]  ;;  %5718 = vmatprep.subr.bf16.mxu1 %v8437_v27  ;;  %v8446_v39 = vpack.c.bf16 %v163_v34, %v159_v33  ;;  %v103_v42 = vld [vmem:[#allocation6 + $0x180] sm:$0xff] }
  0x57   :  { %v108_v37 = vld [vmem:[#allocation6 + $0x1c8] sm:$0xff]  ;;  %v107_v43 = vld [vmem:[#allocation6 + $0x1c0] sm:$0xff]  ;;  %5720 = vmatpush1.bf16.msra.mxu1 %v8442_v35 }
  0x58   :  { %10317 = vst [vmem:[#allocation25_spill] sm:$0xff] %v8439_v31  ;;  %v168_v38 = vld [vmem:[#allocation6 + $0x1a8] sm:$0xff]  ;;  %10319 = vst [vmem:[#allocation27_spill] sm:$0xff] %v8446_v39  ;;  %v8448_v40 = vpack.c.bf16 %v108_v37, %v104_v36  ;;  %5782 = vmatprep.subr.bf16.mxu0 %v8439_v31  ;;  %v167_v45 = vld [vmem:[#allocation6 + $0x1a0] sm:$0xff]  ;;  %v8454_v51 = vpack.c.bf16 %v107_v43, %v103_v42 }
  0x59   :  { %v172_v41 = vld [vmem:[#allocation6 + $0x1e8] sm:$0xff]  ;;  %v171_v46 = vld [vmem:[#allocation6 + $0x1e0] sm:$0xff]  ;;  %5784 = vmatpush1.bf16.msra.mxu0 %v8446_v39 }
  0x5a   :  { %10320 = vst [vmem:[#allocation28_spill] sm:$0xff] %v8448_v40  ;;  %v8451_v44 = vpack.c.bf16 %v172_v41, %v168_v38  ;;  %v112_v47 = vld [vmem:[#allocation6 + $0x208] sm:$0xff]  ;;  %10322 = vst [vmem:[#allocation30_spill] sm:$0xff] %v8454_v51  ;;  %5722 = vmatprep.subr.bf16.mxu1 %v8448_v40  ;;  %v8458_v52 = vpack.c.bf16 %v171_v46, %v167_v45  ;;  %v111_v54 = vld [vmem:[#allocation6 + $0x200] sm:$0xff] }
  0x5b   :  { %v116_v48 = vld [vmem:[#allocation6 + $0x248] sm:$0xff]  ;;  %v115_v55 = vld [vmem:[#allocation6 + $0x240] sm:$0xff]  ;;  %5724 = vmatpush1.bf16.msra.mxu1 %v8454_v51  ;;  %v82_v46 = vld [vmem:[#allocation6 + $0x18] sm:$0xff] }
  0x5c   :  { %10321 = vst [vmem:[#allocation29_spill] sm:$0xff] %v8451_v44  ;;  %v176_v49 = vld [vmem:[#allocation6 + $0x228] sm:$0xff]  ;;  %10323 = vst [vmem:[#allocation31_spill] sm:$0xff] %v8458_v52  ;;  %v8460_v53 = vpack.c.bf16 %v116_v48, %v112_v47  ;;  %v175_v56 = vld [vmem:[#allocation6 + $0x220] sm:$0xff]  ;;  %5786 = vmatprep.subr.bf16.mxu0 %v8451_v44  ;;  %v8466_v63 = vpack.c.bf16 %v115_v55, %v111_v54 }
  0x5d   :  { %v180_v50 = vld [vmem:[#allocation6 + $0x268] sm:$0xff]  ;;  %v179_v58 = vld [vmem:[#allocation6 + $0x260] sm:$0xff]  ;;  %5788 = vmatpush1.bf16.msra.mxu0 %v8458_v52  ;;  %v86_v47 = vld [vmem:[#allocation6 + $0x58] sm:$0xff] }
  0x5e   :  { %10324 = vst [vmem:[#allocation32_spill] sm:$0xff] %v8460_v53  ;;  %v8463_v57 = vpack.c.bf16 %v180_v50, %v176_v49  ;;  %v120_v59 = vld [vmem:[#allocation6 + $0x288] sm:$0xff]  ;;  %10326 = vst [vmem:[#allocation34_spill] sm:$0xff] %v8466_v63  ;;  %5726 = vmatprep.subr.bf16.mxu1 %v8460_v53  ;;  %v8470_v1 = vpack.c.bf16 %v179_v58, %v175_v56  ;;  %v119_v3 = vld [vmem:[#allocation6 + $0x280] sm:$0xff]  ;;  %v8508_v55 = vpack.c.bf16 %v86_v47, %v82_v46 }
  0x5f   :  { %v124_v60 = vld [vmem:[#allocation6 + $0x2c8] sm:$0xff]  ;;  %v123_v5 = vld [vmem:[#allocation6 + $0x2c0] sm:$0xff]  ;;  %5728 = vmatpush1.bf16.msra.mxu1 %v8466_v63  ;;  %v81_v56 = vld [vmem:[#allocation6 + $0x10] sm:$0xff] }
  0x60   :  { %10325 = vst [vmem:[#allocation33_spill] sm:$0xff] %v8463_v57  ;;  %v184_v61 = vld [vmem:[#allocation6 + $0x2a8] sm:$0xff]  ;;  %10327 = vst [vmem:[#allocation35_spill] sm:$0xff] %v8470_v1  ;;  %v8472_v2 = vpack.c.bf16 %v124_v60, %v120_v59  ;;  %v183_v6 = vld [vmem:[#allocation6 + $0x2a0] sm:$0xff]  ;;  %5790 = vmatprep.subr.bf16.mxu0 %v8463_v57  ;;  %v8478_v16 = vpack.c.bf16 %v123_v5, %v119_v3 }
  0x61   :  { %v188_v62 = vld [vmem:[#allocation6 + $0x2e8] sm:$0xff]  ;;  %v187_v10 = vld [vmem:[#allocation6 + $0x2e0] sm:$0xff]  ;;  %5792 = vmatpush1.bf16.msra.mxu0 %v8470_v1  ;;  %v85_v58 = vld [vmem:[#allocation6 + $0x50] sm:$0xff] }
  0x62   :  { %10328 = vst [vmem:[#allocation36_spill] sm:$0xff] %v8472_v2  ;;  %v8475_v7 = vpack.c.bf16 %v188_v62, %v184_v61  ;;  %v128_v11 = vld [vmem:[#allocation6 + $0x308] sm:$0xff]  ;;  %10330 = vst [vmem:[#allocation38_spill] sm:$0xff] %v8478_v16  ;;  %5730 = vmatprep.subr.bf16.mxu1 %v8472_v2  ;;  %v8482_v19 = vpack.c.bf16 %v187_v10, %v183_v6  ;;  %v127_v21 = vld [vmem:[#allocation6 + $0x300] sm:$0xff] }
  0x63   :  { %v132_v12 = vld [vmem:[#allocation6 + $0x348] sm:$0xff]  ;;  %v131_v23 = vld [vmem:[#allocation6 + $0x340] sm:$0xff]  ;;  %5732 = vmatpush1.bf16.msra.mxu1 %v8478_v16  ;;  %v90_v62 = vld [vmem:[#allocation6 + $0x98] sm:$0xff] }
  0x64   :  { %10329 = vst [vmem:[#allocation37_spill] sm:$0xff] %v8475_v7  ;;  %v192_v14 = vld [vmem:[#allocation6 + $0x328] sm:$0xff]  ;;  %10331 = vst [vmem:[#allocation39_spill] sm:$0xff] %v8482_v19  ;;  %v8484_v20 = vpack.c.bf16 %v132_v12, %v128_v11  ;;  %v191_v24 = vld [vmem:[#allocation6 + $0x320] sm:$0xff]  ;;  %5794 = vmatprep.subr.bf16.mxu0 %v8475_v7  ;;  %v8490_v34 = vpack.c.bf16 %v131_v23, %v127_v21  ;;  %v8516_v11 = vpack.c.bf16 %v85_v58, %v81_v56 }
  0x65   :  { %v196_v15 = vld [vmem:[#allocation6 + $0x368] sm:$0xff]  ;;  %v195_v28 = vld [vmem:[#allocation6 + $0x360] sm:$0xff]  ;;  %5796 = vmatpush1.bf16.msra.mxu0 %v8482_v19  ;;  %v94_v3 = vld [vmem:[#allocation6 + $0xd8] sm:$0xff] }
  0x66   :  { %10332 = vst [vmem:[#allocation40_spill] sm:$0xff] %v8484_v20  ;;  %v8487_v25 = vpack.c.bf16 %v196_v15, %v192_v14  ;;  %v136_v29 = vld [vmem:[#allocation6 + $0x388] sm:$0xff]  ;;  %10334 = vst [vmem:[#allocation42_spill] sm:$0xff] %v8490_v34  ;;  %5734 = vmatprep.subr.bf16.mxu1 %v8484_v20  ;;  %v8494_v36 = vpack.c.bf16 %v195_v28, %v191_v24  ;;  %v135_v38 = vld [vmem:[#allocation6 + $0x380] sm:$0xff]  ;;  %v8524_v15 = vpack.c.bf16 %v94_v3, %v90_v62 }
  0x67   :  { %v140_v30 = vld [vmem:[#allocation6 + $0x3c8] sm:$0xff]  ;;  %v139_v41 = vld [vmem:[#allocation6 + $0x3c0] sm:$0xff]  ;;  %5736 = vmatpush1.bf16.msra.mxu1 %v8490_v34  ;;  %10341 = vst [vmem:[#allocation49_spill] sm:$0xff] %v8516_v11  ;;  %v8518_v12 = vld [vmem:[#allocation3 + $0x38] sm:$0xff] }
  0x68   :  { %10333 = vst [vmem:[#allocation41_spill] sm:$0xff] %v8487_v25  ;;  %v200_v32 = vld [vmem:[#allocation6 + $0x3a8] sm:$0xff]  ;;  %10335 = vst [vmem:[#allocation43_spill] sm:$0xff] %v8494_v36  ;;  %v8496_v37 = vpack.c.bf16 %v140_v30, %v136_v29  ;;  %v199_v42 = vld [vmem:[#allocation6 + $0x3a0] sm:$0xff]  ;;  %5798 = vmatprep.subr.bf16.mxu0 %v8487_v25  ;;  %v8502_v50 = vpack.c.bf16 %v139_v41, %v135_v38 }
  0x69   :  { %v204_v33 = vld [vmem:[#allocation6 + $0x3e8] sm:$0xff]  ;;  %v203_v45 = vld [vmem:[#allocation6 + $0x3e0] sm:$0xff]  ;;  %5800 = vmatpush1.bf16.msra.mxu0 %v8494_v36  ;;  %10343 = vst [vmem:[#allocation51_spill] sm:$0xff] %v8524_v15  ;;  %v89_v21 = vld [vmem:[#allocation6 + $0x90] sm:$0xff] }
  0x6a   :  { %10336 = vst [vmem:[#allocation44_spill] sm:$0xff] %v8496_v37  ;;  %v8499_v43 = vpack.c.bf16 %v204_v33, %v200_v32  ;;  %v210_v48 = vld [vmem:[#allocation8 + $0x8] sm:$0xff]  ;;  %10338 = vst [vmem:[#allocation46_spill] sm:$0xff] %v8502_v50  ;;  %5738 = vmatprep.subr.bf16.mxu1 %v8496_v37  ;;  %v8506_v54 = vpack.c.bf16 %v203_v45, %v199_v42  ;;  %v209_v59 = vld [vmem:[#allocation8] sm:$0xff] }
  0x6b   :  { %v214_v49 = vld [vmem:[#allocation8 + $0x48] sm:$0xff]  ;;  %v213_v61 = vld [vmem:[#allocation8 + $0x40] sm:$0xff]  ;;  %5740 = vmatpush1.bf16.msra.mxu1 %v8502_v50  ;;  %v93_v23 = vld [vmem:[#allocation6 + $0xd0] sm:$0xff] }
  0x6c   :  { %10337 = vst [vmem:[#allocation45_spill] sm:$0xff] %v8499_v43  ;;  %10339 = vst [vmem:[#allocation47_spill] sm:$0xff] %v8506_v54  ;;  %5802 = vmatprep.subr.bf16.mxu0 %v8499_v43  ;;  %v8511_v60 = vpack.c.bf16 %v214_v49, %v210_v48  ;;  %v218_v5 = vld [vmem:[#allocation8 + $0x88] sm:$0xff]  ;;  %v8514_v10 = vld [vmem:[#allocation3] sm:$0xff]  ;;  %5742 = vmatprep.subr.bf16.mxu1 %v8508_v55  ;;  %v8522_v14 = vpack.c.bf16 %v213_v61, %v209_v59 }
  0x6d   :  { %v222_v6 = vld [vmem:[#allocation8 + $0xc8] sm:$0xff]  ;;  %5804 = vmatpush1.bf16.msra.mxu0 %v8506_v54  ;;  %v217_v24 = vld [vmem:[#allocation8 + $0x80] sm:$0xff]  ;;  %v98_v30 = vld [vmem:[#allocation6 + $0x118] sm:$0xff]  ;;  %v8532_v41 = vpack.c.bf16 %v93_v23, %v89_v21 }
  0x6e   :  { %10340 = vst [vmem:[#allocation48_spill] sm:$0xff] %v8511_v60  ;;  %10342 = vst [vmem:[#allocation50_spill] sm:$0xff] %v8522_v14  ;;  %5838 = vmatprep.subr.bf16.mxu0 %v8511_v60  ;;  %v8527_v28 = vpack.c.bf16 %v222_v6, %v218_v5  ;;  %v221_v29 = vld [vmem:[#allocation8 + $0xc0] sm:$0xff]  ;;  %v102_v32 = vld [vmem:[#allocation6 + $0x158] sm:$0xff]  ;;  %426 = vmatmul.mubr.f32.vlgmr.msra.gmra.mrb[0].mxu1 %v8514_v10 }
  0x6f   :  { %v226_v33 = vld [vmem:[#allocation8 + $0x108] sm:$0xff]  ;;  %5744 = vmatpush1.bf16.msra.mxu1 %v8516_v11  ;;  %10345 = vst [vmem:[#allocation53_spill] sm:$0xff] %v8532_v41  ;;  %v8536_v42 = vpack.c.bf16 %v221_v29, %v217_v24  ;;  %v8538_v45 = vpack.c.bf16 %v102_v32, %v98_v30  ;;  %v97_v46 = vld [vmem:[#allocation6 + $0x110] sm:$0xff]  ;;  %v225_v48 = vld [vmem:[#allocation8 + $0x100] sm:$0xff]  ;;  %496 = vmatprep.mubr.f32.mxu1 %v10024_v0 }
  0x70   :  { %10344 = vst [vmem:[#allocation52_spill] sm:$0xff] %v8527_v28  ;;  %v230_v38 = vld [vmem:[#allocation8 + $0x148] sm:$0xff]  ;;  %589 = vmatmul.mubr.f32.vlgmr.msra.gmra.mrb[0].mxu0 %v8518_v12  ;;  %5746 = vmatprep.subr.bf16.mxu1 %v8524_v15  ;;  %v101_v47 = vld [vmem:[#allocation6 + $0x150] sm:$0xff]  ;;  %v229_v56 = vld [vmem:[#allocation8 + $0x140] sm:$0xff] }
  0x71   :  { %5840 = vmatpush1.bf16.msra.mxu0 %v8522_v14  ;;  %10346 = vst [vmem:[#allocation54_spill] sm:$0xff] %v8536_v42  ;;  %10347 = vst [vmem:[#allocation55_spill] sm:$0xff] %v8538_v45  ;;  %v8541_v49 = vpack.c.bf16 %v230_v38, %v226_v33  ;;  %v106_v58 = vld [vmem:[#allocation6 + $0x198] sm:$0xff]  ;;  %730 = vmatprep.mubr.f32.mxu0 %v10024_v0  ;;  %v234_v61 = vld [vmem:[#allocation8 + $0x188] sm:$0xff]  ;;  %v8546_v3 = vpack.c.bf16 %v101_v47, %v97_v46 }
  0x72   :  { %5842 = vmatprep.subr.bf16.mxu0 %v8527_v28  ;;  %v110_v59 = vld [vmem:[#allocation6 + $0x1d8] sm:$0xff]  ;;  %v238_v62 = vld [vmem:[#allocation8 + $0x1c8] sm:$0xff]  ;;  %v8550_v5 = vpack.c.bf16 %v229_v56, %v225_v48  ;;  %v105_v21 = vld [vmem:[#allocation6 + $0x190] sm:$0xff] }
  0x73   :  { %10348 = vst [vmem:[#allocation56_spill] sm:$0xff] %v8541_v49  ;;  %5748 = vmatpush1.bf16.msra.mxu1 %v8532_v41  ;;  %10349 = vst [vmem:[#allocation57_spill] sm:$0xff] %v8546_v3  ;;  %v8552_v6 = vpack.c.bf16 %v110_v59, %v106_v58  ;;  %v109_v23 = vld [vmem:[#allocation6 + $0x1d0] sm:$0xff]  ;;  %v233_v24 = vld [vmem:[#allocation8 + $0x180] sm:$0xff]  ;;  %v8555_v29 = vpack.c.bf16 %v238_v62, %v234_v61 }
  0x74   :  { %5750 = vmatprep.subr.bf16.mxu1 %v8538_v45  ;;  %10350 = vst [vmem:[#allocation58_spill] sm:$0xff] %v8550_v5  ;;  %v237_v30 = vld [vmem:[#allocation8 + $0x1c0] sm:$0xff]  ;;  %v114_v32 = vld [vmem:[#allocation6 + $0x218] sm:$0xff]  ;;  %v242_v38 = vld [vmem:[#allocation8 + $0x208] sm:$0xff]  ;;  %v8558_v47 = vpack.c.bf16 %v109_v23, %v105_v21 }
  0x75   :  { %5844 = vmatpush1.bf16.msra.mxu0 %v8536_v42  ;;  %10351 = vst [vmem:[#allocation59_spill] sm:$0xff] %v8552_v6  ;;  %10352 = vst [vmem:[#allocation60_spill] sm:$0xff] %v8555_v29  ;;  %v118_v33 = vld [vmem:[#allocation6 + $0x258] sm:$0xff]  ;;  %v246_v46 = vld [vmem:[#allocation8 + $0x248] sm:$0xff]  ;;  %v8562_v48 = vpack.c.bf16 %v237_v30, %v233_v24 }
  0x76   :  { %5846 = vmatprep.subr.bf16.mxu0 %v8541_v49  ;;  %10353 = vst [vmem:[#allocation61_spill] sm:$0xff] %v8558_v47  ;;  %v8564_v56 = vpack.c.bf16 %v118_v33, %v114_v32  ;;  %v113_v58 = vld [vmem:[#allocation6 + $0x210] sm:$0xff]  ;;  %v241_v61 = vld [vmem:[#allocation8 + $0x200] sm:$0xff]  ;;  %v8567_v62 = vpack.c.bf16 %v246_v46, %v242_v38  ;;  %v122_v49 = vld [vmem:[#allocation6 + $0x298] sm:$0xff] }
  0x77   :  { %5752 = vmatpush1.bf16.msra.mxu1 %v8546_v3  ;;  %10354 = vst [vmem:[#allocation62_spill] sm:$0xff] %v8562_v48  ;;  %v117_v59 = vld [vmem:[#allocation6 + $0x250] sm:$0xff]  ;;  %v245_v0 = vld [vmem:[#allocation8 + $0x240] sm:$0xff]  ;;  %v126_v42 = vld [vmem:[#allocation6 + $0x2d8] sm:$0xff] }
  0x78   :  { %5754 = vmatprep.subr.bf16.mxu1 %v8552_v6  ;;  %10355 = vst [vmem:[#allocation63_spill] sm:$0xff] %v8564_v56  ;;  %10356 = vst [vmem:[#allocation64_spill] sm:$0xff] %v8567_v62  ;;  %v250_v21 = vld [vmem:[#allocation8 + $0x288] sm:$0xff]  ;;  %v8574_v24 = vpack.c.bf16 %v245_v0, %v241_v61  ;;  %v8576_v30 = vpack.c.bf16 %v126_v42, %v122_v49  ;;  %v121_v32 = vld [vmem:[#allocation6 + $0x290] sm:$0xff] }
  0x79   :  { %5848 = vmatpush1.bf16.msra.mxu0 %v8550_v5  ;;  %v254_v23 = vld [vmem:[#allocation8 + $0x2c8] sm:$0xff]  ;;  %v8570_v5 = vpack.c.bf16 %v117_v59, %v113_v58  ;;  %v125_v33 = vld [vmem:[#allocation6 + $0x2d0] sm:$0xff]  ;;  %v249_v38 = vld [vmem:[#allocation8 + $0x280] sm:$0xff] }
  0x7a   :  { %5850 = vmatprep.subr.bf16.mxu0 %v8555_v29  ;;  %10358 = vst [vmem:[#allocation66_spill] sm:$0xff] %v8574_v24  ;;  %10359 = vst [vmem:[#allocation67_spill] sm:$0xff] %v8576_v30  ;;  %v8579_v46 = vpack.c.bf16 %v254_v23, %v250_v21  ;;  %v253_v29 = vld [vmem:[#allocation8 + $0x2c0] sm:$0xff]  ;;  %v130_v28 = vld [vmem:[#allocation6 + $0x318] sm:$0xff] }
  0x7b   :  { %5756 = vmatpush1.bf16.msra.mxu1 %v8558_v47  ;;  %10357 = vst [vmem:[#allocation65_spill] sm:$0xff] %v8570_v5  ;;  %v134_v14 = vld [vmem:[#allocation6 + $0x358] sm:$0xff]  ;;  %v258_v58 = vld [vmem:[#allocation8 + $0x308] sm:$0xff]  ;;  %v8586_v0 = vpack.c.bf16 %v253_v29, %v249_v38  ;;  %v129_v49 = vld [vmem:[#allocation6 + $0x310] sm:$0xff] }
  0x7c   :  { %5758 = vmatprep.subr.bf16.mxu1 %v8564_v56  ;;  %10360 = vst [vmem:[#allocation68_spill] sm:$0xff] %v8579_v46  ;;  %v262_v59 = vld [vmem:[#allocation8 + $0x348] sm:$0xff]  ;;  %v8588_v42 = vpack.c.bf16 %v134_v14, %v130_v28  ;;  %v133_v61 = vld [vmem:[#allocation6 + $0x350] sm:$0xff]  ;;  %v257_v21 = vld [vmem:[#allocation8 + $0x300] sm:$0xff] }
  0x7d   :  { %5852 = vmatpush1.bf16.msra.mxu0 %v8562_v48  ;;  %v8582_v48 = vpack.c.bf16 %v125_v33, %v121_v32  ;;  %10362 = vst [vmem:[#allocation70_spill] sm:$0xff] %v8586_v0  ;;  %v8591_v23 = vpack.c.bf16 %v262_v59, %v258_v58  ;;  %v138_v60 = vld [vmem:[#allocation6 + $0x398] sm:$0xff]  ;;  %v266_v32 = vld [vmem:[#allocation8 + $0x388] sm:$0xff]  ;;  %v137_v29 = vld [vmem:[#allocation6 + $0x390] sm:$0xff] }
  0x7e   :  { %5854 = vmatprep.subr.bf16.mxu0 %v8567_v62  ;;  %10363 = vst [vmem:[#allocation71_spill] sm:$0xff] %v8588_v42  ;;  %v261_v62 = vld [vmem:[#allocation8 + $0x340] sm:$0xff]  ;;  %v142_v54 = vld [vmem:[#allocation6 + $0x3d8] sm:$0xff]  ;;  %v270_v33 = vld [vmem:[#allocation8 + $0x3c8] sm:$0xff] }
  0x7f   :  { %5760 = vmatpush1.bf16.msra.mxu1 %v8570_v5  ;;  %10361 = vst [vmem:[#allocation69_spill] sm:$0xff] %v8582_v48  ;;  %10364 = vst [vmem:[#allocation72_spill] sm:$0xff] %v8591_v23  ;;  %v8598_v14 = vpack.c.bf16 %v261_v62, %v257_v21  ;;  %v8600_v28 = vpack.c.bf16 %v142_v54, %v138_v60  ;;  %v141_v38 = vld [vmem:[#allocation6 + $0x3d0] sm:$0xff]  ;;  %v265_v58 = vld [vmem:[#allocation8 + $0x380] sm:$0xff]  ;;  %v8603_v59 = vpack.c.bf16 %v270_v33, %v266_v32 }
  0x80   :  { %5762 = vmatprep.subr.bf16.mxu1 %v8576_v30  ;;  %v146_v43 = vld [vmem:[#allocation6 + $0x38] sm:$0xff]  ;;  %v145_v62 = vld [vmem:[#allocation6 + $0x30] sm:$0xff]  ;;  %v273_v32 = vld [vmem:[#allocation8 + $0x20] sm:$0xff] }
  0x81   :  { %5856 = vmatpush1.bf16.msra.mxu0 %v8574_v24  ;;  %v8594_v24 = vpack.c.bf16 %v133_v61, %v129_v49  ;;  %10366 = vst [vmem:[#allocation74_spill] sm:$0xff] %v8598_v14  ;;  %10367 = vst [vmem:[#allocation75_spill] sm:$0xff] %v8600_v28  ;;  %v150_v36 = vld [vmem:[#allocation6 + $0x78] sm:$0xff]  ;;  %v274_v49 = vld [vmem:[#allocation8 + $0x28] sm:$0xff] }
  0x82   :  { %5858 = vmatprep.subr.bf16.mxu0 %v8579_v46  ;;  %10368 = vst [vmem:[#allocation76_spill] sm:$0xff] %v8603_v59  ;;  %v269_v46 = vld [vmem:[#allocation8 + $0x3c0] sm:$0xff]  ;;  %v278_v61 = vld [vmem:[#allocation8 + $0x68] sm:$0xff]  ;;  %v8612_v60 = vpack.c.bf16 %v150_v36, %v146_v43  ;;  %v149_v21 = vld [vmem:[#allocation6 + $0x70] sm:$0xff] }
  0x83   :  { %5764 = vmatpush1.bf16.msra.mxu1 %v8582_v48  ;;  %10365 = vst [vmem:[#allocation73_spill] sm:$0xff] %v8594_v24  ;;  %v8610_v54 = vpack.c.bf16 %v269_v46, %v265_v58  ;;  %v8615_v33 = vpack.c.bf16 %v278_v61, %v274_v49  ;;  %v154_v25 = vld [vmem:[#allocation6 + $0xb8] sm:$0xff]  ;;  %v153_v46 = vld [vmem:[#allocation6 + $0xb0] sm:$0xff]  ;;  %v281_v49 = vld [vmem:[#allocation8 + $0xa0] sm:$0xff] }
  0x84   :  { %5766 = vmatprep.subr.bf16.mxu1 %v8588_v42  ;;  %10371 = vst [vmem:[#allocation79_spill] sm:$0xff] %v8612_v60  ;;  %v158_v19 = vld [vmem:[#allocation6 + $0xf8] sm:$0xff]  ;;  %v157_v58 = vld [vmem:[#allocation6 + $0xf0] sm:$0xff] }
  0x85   :  { %5860 = vmatpush1.bf16.msra.mxu0 %v8586_v0  ;;  %v8606_v0 = vpack.c.bf16 %v141_v38, %v137_v29  ;;  %10370 = vst [vmem:[#allocation78_spill] sm:$0xff] %v8610_v54  ;;  %10372 = vst [vmem:[#allocation80_spill] sm:$0xff] %v8615_v33  ;;  %v282_v29 = vld [vmem:[#allocation8 + $0xa8] sm:$0xff]  ;;  %v8624_v43 = vpack.c.bf16 %v158_v19, %v154_v25  ;;  %v162_v7 = vld [vmem:[#allocation6 + $0x138] sm:$0xff]  ;;  %v8632_v19 = vpack.c.bf16 %v157_v58, %v153_v46 }
  0x86   :  { %5862 = vmatprep.subr.bf16.mxu0 %v8591_v23  ;;  %v277_v23 = vld [vmem:[#allocation8 + $0x60] sm:$0xff]  ;;  %v286_v38 = vld [vmem:[#allocation8 + $0xe8] sm:$0xff]  ;;  %v166_v1 = vld [vmem:[#allocation6 + $0x178] sm:$0xff] }
  0x87   :  { %5768 = vmatpush1.bf16.msra.mxu1 %v8594_v24  ;;  %10369 = vst [vmem:[#allocation77_spill] sm:$0xff] %v8606_v0  ;;  %v8622_v36 = vpack.c.bf16 %v277_v23, %v273_v32  ;;  %10375 = vst [vmem:[#allocation83_spill] sm:$0xff] %v8624_v43  ;;  %v8627_v61 = vpack.c.bf16 %v286_v38, %v282_v29  ;;  %v8638_v23 = vpack.c.bf16 %v166_v1, %v162_v7  ;;  %v161_v32 = vld [vmem:[#allocation6 + $0x130] sm:$0xff]  ;;  %v289_v38 = vld [vmem:[#allocation8 + $0x120] sm:$0xff] }
  0x88   :  { %5770 = vmatprep.subr.bf16.mxu1 %v8600_v28  ;;  %10378 = vst [vmem:[#allocation85_spill] sm:$0xff] %v8632_v19  ;;  %v165_v29 = vld [vmem:[#allocation6 + $0x170] sm:$0xff]  ;;  %v170_v57 = vld [vmem:[#allocation6 + $0x1b8] sm:$0xff]  ;;  %v298_v46 = vld [vmem:[#allocation8 + $0x1a8] sm:$0xff] }
  0x89   :  { %5864 = vmatpush1.bf16.msra.mxu0 %v8598_v14  ;;  %v8618_v14 = vpack.c.bf16 %v149_v21, %v145_v62  ;;  %10374 = vst [vmem:[#allocation82_spill] sm:$0xff] %v8622_v36  ;;  %10376 = vst [vmem:[#allocation84_spill] sm:$0xff] %v8627_v61  ;;  %v290_v62 = vld [vmem:[#allocation8 + $0x128] sm:$0xff]  ;;  %v174_v52 = vld [vmem:[#allocation6 + $0x1f8] sm:$0xff]  ;;  %v8646_v1 = vpack.c.bf16 %v165_v29, %v161_v32 }
  0x8a   :  { %5866 = vmatprep.subr.bf16.mxu0 %v8603_v59  ;;  %v285_v59 = vld [vmem:[#allocation8 + $0xe0] sm:$0xff]  ;;  %v294_v21 = vld [vmem:[#allocation8 + $0x168] sm:$0xff]  ;;  %10380 = vst [vmem:[#allocation87_spill] sm:$0xff] %v8638_v23 }
  0x8b   :  { %5772 = vmatpush1.bf16.msra.mxu1 %v8606_v0  ;;  %10373 = vst [vmem:[#allocation81_spill] sm:$0xff] %v8618_v14  ;;  %v8636_v25 = vpack.c.bf16 %v285_v59, %v281_v49  ;;  %v302_v58 = vld [vmem:[#allocation8 + $0x1e8] sm:$0xff]  ;;  %10382 = vst [vmem:[#allocation89_spill] sm:$0xff] %v8646_v1  ;;  %v8652_v59 = vpack.c.bf16 %v174_v52, %v170_v57  ;;  %v169_v49 = vld [vmem:[#allocation6 + $0x1b0] sm:$0xff] }
  0x8c   :  { %5806 = vmatprep.subr.bf16.mxu1 %v8612_v60  ;;  %v306_v32 = vld [vmem:[#allocation8 + $0x228] sm:$0xff] }
  0x8d   :  { %5868 = vmatpush1.bf16.msra.mxu0 %v8610_v54  ;;  %v10377_v54 = vmov 0.0   ;;  %10379 = vst [vmem:[#allocation86_spill] sm:$0xff] %v8636_v25  ;;  %10384 = vst [vmem:[#allocation91_spill] sm:$0xff] %v8652_v59  ;;  %v310_v29 = vld [vmem:[#allocation8 + $0x268] sm:$0xff] }
  0x8e   :  { %5902 = vmatprep.subr.bf16.mxu0 %v8615_v33  ;;  %497 = vmatmul.mubr.f32.vlgmr.msra.gmra.mrb[2].mxu1 %v8514_v10  ;;  %v8641_v10 = vpack.c.bf16 %v294_v21, %v290_v62  ;;  %v293_v33 = vld [vmem:[#allocation8 + $0x160] sm:$0xff]  ;;  %v173_v62 = vld [vmem:[#allocation6 + $0x1f0] sm:$0xff] }
  0x8f   :  { %5808 = vmatpush1.bf16.msra.mxu1 %v8618_v14  ;;  %659 = vmatprep.mubr.f32.mxu1 %v10377_v54  ;;  %v8650_v7 = vpack.c.bf16 %v293_v33, %v289_v38  ;;  %v297_v21 = vld [vmem:[#allocation8 + $0x1a0] sm:$0xff]  ;;  %v177_v33 = vld [vmem:[#allocation6 + $0x230] sm:$0xff] }
  0x90   :  { %731 = vmatmul.mubr.f32.vlgmr.msra.gmra.mrb[2].mxu0 %v10377_v54  ;;  %5810 = vmatprep.subr.bf16.mxu1 %v8624_v43  ;;  %10381 = vst [vmem:[#allocation88_spill] sm:$0xff] %v8641_v10  ;;  %v178_v43 = vld [vmem:[#allocation6 + $0x238] sm:$0xff]  ;;  %v181_v38 = vld [vmem:[#allocation6 + $0x270] sm:$0xff] }
  0x91   :  { %5904 = vmatpush1.bf16.msra.mxu0 %v8622_v36  ;;  %876 = vmatprep.mubr.f32.mxu0 %v10377_v54  ;;  %10383 = vst [vmem:[#allocation90_spill] sm:$0xff] %v8650_v7  ;;  %v301_v36 = vld [vmem:[#allocation8 + $0x1e0] sm:$0xff] }
  0x92   :  { %5906 = vmatprep.subr.bf16.mxu0 %v8627_v61  ;;  %v8655_v61 = vpack.c.bf16 %v302_v58, %v298_v46  ;;  %v8662_v52 = vpack.c.bf16 %v301_v36, %v297_v21  ;;  %v305_v46 = vld [vmem:[#allocation8 + $0x220] sm:$0xff]  ;;  %v8667_v58 = vpack.c.bf16 %v310_v29, %v306_v32  ;;  %v189_v21 = vld [vmem:[#allocation6 + $0x2f0] sm:$0xff] }
  0x93   :  { %5812 = vmatpush1.bf16.msra.mxu1 %v8632_v19  ;;  %v182_v19 = vld [vmem:[#allocation6 + $0x278] sm:$0xff]  ;;  %v313_v32 = vld [vmem:[#allocation8 + $0x2a0] sm:$0xff] }
  0x94   :  { %5814 = vmatprep.subr.bf16.mxu1 %v8638_v23  ;;  %10385 = vst [vmem:[#allocation92_spill] sm:$0xff] %v8655_v61  ;;  %10387 = vst [vmem:[#allocation94_spill] sm:$0xff] %v8662_v52  ;;  %v8664_v57 = vpack.c.bf16 %v182_v19, %v178_v43  ;;  %v186_v23 = vld [vmem:[#allocation6 + $0x2b8] sm:$0xff]  ;;  %v185_v19 = vld [vmem:[#allocation6 + $0x2b0] sm:$0xff] }
  0x95   :  { %5908 = vmatpush1.bf16.msra.mxu0 %v8636_v25  ;;  %v8658_v25 = vpack.c.bf16 %v173_v62, %v169_v49  ;;  %10389 = vst [vmem:[#allocation96_spill] sm:$0xff] %v8667_v58  ;;  %v314_v49 = vld [vmem:[#allocation8 + $0x2a8] sm:$0xff] }
  0x96   :  { %5910 = vmatprep.subr.bf16.mxu0 %v8641_v10  ;;  %10388 = vst [vmem:[#allocation95_spill] sm:$0xff] %v8664_v57  ;;  %v309_v10 = vld [vmem:[#allocation8 + $0x260] sm:$0xff]  ;;  %v318_v62 = vld [vmem:[#allocation8 + $0x2e8] sm:$0xff] }
  0x97   :  { %5816 = vmatpush1.bf16.msra.mxu1 %v8646_v1  ;;  %10386 = vst [vmem:[#allocation93_spill] sm:$0xff] %v8658_v25  ;;  %v190_v1 = vld [vmem:[#allocation6 + $0x2f8] sm:$0xff]  ;;  %v8674_v36 = vpack.c.bf16 %v309_v10, %v305_v46  ;;  %v8679_v29 = vpack.c.bf16 %v318_v62, %v314_v49  ;;  %v197_v46 = vld [vmem:[#allocation6 + $0x370] sm:$0xff]  ;;  %v321_v49 = vld [vmem:[#allocation8 + $0x320] sm:$0xff] }
  0x98   :  { %5818 = vmatprep.subr.bf16.mxu1 %v8652_v59  ;;  %v8676_v43 = vpack.c.bf16 %v190_v1, %v186_v23  ;;  %v194_v59 = vld [vmem:[#allocation6 + $0x338] sm:$0xff]  ;;  %v193_v1 = vld [vmem:[#allocation6 + $0x330] sm:$0xff] }
  0x99   :  { %5912 = vmatpush1.bf16.msra.mxu0 %v8650_v7  ;;  %v8670_v7 = vpack.c.bf16 %v181_v38, %v177_v33  ;;  %10391 = vst [vmem:[#allocation98_spill] sm:$0xff] %v8674_v36  ;;  %10393 = vst [vmem:[#allocation100_spill] sm:$0xff] %v8679_v29  ;;  %v322_v33 = vld [vmem:[#allocation8 + $0x328] sm:$0xff] }
  0x9a   :  { %5914 = vmatprep.subr.bf16.mxu0 %v8655_v61  ;;  %10392 = vst [vmem:[#allocation99_spill] sm:$0xff] %v8676_v43  ;;  %v317_v61 = vld [vmem:[#allocation8 + $0x2e0] sm:$0xff]  ;;  %v326_v38 = vld [vmem:[#allocation8 + $0x368] sm:$0xff] }
  0x9b   :  { %5820 = vmatpush1.bf16.msra.mxu1 %v8658_v25  ;;  %10390 = vst [vmem:[#allocation97_spill] sm:$0xff] %v8670_v7  ;;  %v198_v25 = vld [vmem:[#allocation6 + $0x378] sm:$0xff]  ;;  %v8686_v23 = vpack.c.bf16 %v317_v61, %v313_v32  ;;  %v8691_v62 = vpack.c.bf16 %v326_v38, %v322_v33  ;;  %v205_v32 = vld [vmem:[#allocation6 + $0x3f0] sm:$0xff]  ;;  %v329_v33 = vld [vmem:[#allocation8 + $0x3a0] sm:$0xff] }
  0x9c   :  { %5822 = vmatprep.subr.bf16.mxu1 %v8664_v57  ;;  %v8688_v10 = vpack.c.bf16 %v198_v25, %v194_v59  ;;  %v202_v57 = vld [vmem:[#allocation6 + $0x3b8] sm:$0xff]  ;;  %v201_v59 = vld [vmem:[#allocation6 + $0x3b0] sm:$0xff] }
  0x9d   :  { %5916 = vmatpush1.bf16.msra.mxu0 %v8662_v52  ;;  %v8682_v52 = vpack.c.bf16 %v189_v21, %v185_v19  ;;  %10395 = vst [vmem:[#allocation102_spill] sm:$0xff] %v8686_v23  ;;  %10397 = vst [vmem:[#allocation104_spill] sm:$0xff] %v8691_v62  ;;  %v330_v19 = vld [vmem:[#allocation8 + $0x3a8] sm:$0xff] }
  0x9e   :  { %5918 = vmatprep.subr.bf16.mxu0 %v8667_v58  ;;  %10396 = vst [vmem:[#allocation103_spill] sm:$0xff] %v8688_v10  ;;  %v325_v58 = vld [vmem:[#allocation8 + $0x360] sm:$0xff]  ;;  %v334_v21 = vld [vmem:[#allocation8 + $0x3e8] sm:$0xff] }
  0x9f   :  { %5824 = vmatpush1.bf16.msra.mxu1 %v8670_v7  ;;  %10394 = vst [vmem:[#allocation101_spill] sm:$0xff] %v8682_v52  ;;  %v206_v7 = vld [vmem:[#allocation6 + $0x3f8] sm:$0xff]  ;;  %v8698_v61 = vpack.c.bf16 %v325_v58, %v321_v49  ;;  %v8703_v38 = vpack.c.bf16 %v334_v21, %v330_v19  ;;  %v211_v58 = vld [vmem:[#allocation8 + $0x10] sm:$0xff] }
  0xa0   :  { %5826 = vmatprep.subr.bf16.mxu1 %v8676_v43  ;;  %v8700_v25 = vpack.c.bf16 %v206_v7, %v202_v57  ;;  %v212_v43 = vld [vmem:[#allocation8 + $0x18] sm:$0xff] }
  0xa1   :  { %5920 = vmatpush1.bf16.msra.mxu0 %v8674_v36  ;;  %v8694_v36 = vpack.c.bf16 %v197_v46, %v193_v1  ;;  %10399 = vst [vmem:[#allocation106_spill] sm:$0xff] %v8698_v61  ;;  %10401 = vst [vmem:[#allocation108_spill] sm:$0xff] %v8703_v38  ;;  %v8706_v1 = vpack.c.bf16 %v205_v32, %v201_v59  ;;  %v215_v46 = vld [vmem:[#allocation8 + $0x50] sm:$0xff]  ;;  %v220_v49 = vld [vmem:[#allocation8 + $0x98] sm:$0xff] }
  0xa2   :  { %5922 = vmatprep.subr.bf16.mxu0 %v8679_v29  ;;  %10400 = vst [vmem:[#allocation107_spill] sm:$0xff] %v8700_v25  ;;  %v333_v29 = vld [vmem:[#allocation8 + $0x3e0] sm:$0xff]  ;;  %v224_v19 = vld [vmem:[#allocation8 + $0xd8] sm:$0xff]  ;;  %v8716_v21 = vpack.c.bf16 %v215_v46, %v211_v58  ;;  %v223_v32 = vld [vmem:[#allocation8 + $0xd0] sm:$0xff] }
  0xa3   :  { %5828 = vmatpush1.bf16.msra.mxu1 %v8682_v52  ;;  %10398 = vst [vmem:[#allocation105_spill] sm:$0xff] %v8694_v36  ;;  %v216_v52 = vld [vmem:[#allocation8 + $0x58] sm:$0xff]  ;;  %10402 = vst [vmem:[#allocation109_spill] sm:$0xff] %v8706_v1  ;;  %v8710_v7 = vpack.c.bf16 %v333_v29, %v329_v33  ;;  %v8720_v59 = vpack.c.bf16 %v224_v19, %v220_v49  ;;  %v219_v29 = vld [vmem:[#allocation8 + $0x90] sm:$0xff] }
  0xa4   :  { %5830 = vmatprep.subr.bf16.mxu1 %v8688_v10  ;;  %v8712_v57 = vpack.c.bf16 %v216_v52, %v212_v43  ;;  %10405 = vst [vmem:[#allocation112_spill] sm:$0xff] %v8716_v21  ;;  %v228_v52 = vld [vmem:[#allocation8 + $0x118] sm:$0xff]  ;;  %v8726_v33 = vpack.c.bf16 %v223_v32, %v219_v29  ;;  %v227_v46 = vld [vmem:[#allocation8 + $0x110] sm:$0xff] }
  0xa5   :  { %5924 = vmatpush1.bf16.msra.mxu0 %v8686_v23  ;;  %10403 = vst [vmem:[#allocation110_spill] sm:$0xff] %v8710_v7  ;;  %10406 = vst [vmem:[#allocation113_spill] sm:$0xff] %v8720_v59  ;;  %v232_v43 = vld [vmem:[#allocation8 + $0x158] sm:$0xff]  ;;  %v231_v49 = vld [vmem:[#allocation8 + $0x150] sm:$0xff] }
  0xa6   :  { %5926 = vmatprep.subr.bf16.mxu0 %v8691_v62  ;;  %10404 = vst [vmem:[#allocation111_spill] sm:$0xff] %v8712_v57  ;;  %10407 = vst [vmem:[#allocation114_spill] sm:$0xff] %v8726_v33  ;;  %v8729_v58 = vpack.c.bf16 %v232_v43, %v228_v52  ;;  %v236_v19 = vld [vmem:[#allocation8 + $0x198] sm:$0xff]  ;;  %v235_v32 = vld [vmem:[#allocation8 + $0x190] sm:$0xff] }
  0xa7   :  { %5832 = vmatpush1.bf16.msra.mxu1 %v8694_v36  ;;  %v239_v52 = vld [vmem:[#allocation8 + $0x1d0] sm:$0xff]  ;;  %v244_v43 = vld [vmem:[#allocation8 + $0x218] sm:$0xff] }
  0xa8   :  { %5834 = vmatprep.subr.bf16.mxu1 %v8700_v25  ;;  %10408 = vst [vmem:[#allocation115_spill] sm:$0xff] %v8729_v58  ;;  %v307_v62 = vld [vmem:[#allocation8 + $0x230] sm:$0xff] }
  0xa9   :  { %5928 = vmatpush1.bf16.msra.mxu0 %v8698_v61  ;;  %v312_v61 = vld [vmem:[#allocation8 + $0x278] sm:$0xff]  ;;  %v311_v23 = vld [vmem:[#allocation8 + $0x270] sm:$0xff] }
  0xaa   :  { %5930 = vmatprep.subr.bf16.mxu0 %v8703_v38  ;;  %v308_v38 = vld [vmem:[#allocation8 + $0x238] sm:$0xff] }
  0xab   :  { %5836 = vmatpush1.bf16.msra.mxu1 %v8706_v1 }
  0xac   :  { %5870 = vmatprep.subr.bf16.mxu1 %v8712_v57 }
  0xad   :  { %5932 = vmatpush1.bf16.msra.mxu0 %v8710_v7  ;;  %v240_v7 = vld [vmem:[#allocation8 + $0x1d8] sm:$0xff] }
  0xae   :  { %5966 = vmatprep.subr.bf16.mxu0 %v8415_v4  ;;  %660 = vmatmul.mubr.f32.vlgmr.msra.gmra.mrb[4].mxu1 %v8518_v12  ;;  %v8736_v12 = vpack.c.bf16 %v231_v49, %v227_v46  ;;  %v8739_v29 = vpack.c.bf16 %v240_v7, %v236_v19  ;;  %v248_v4 = vld [vmem:[#allocation8 + $0x258] sm:$0xff]  ;;  %v243_v49 = vld [vmem:[#allocation8 + $0x210] sm:$0xff] }
  0xaf   :  { %5872 = vmatpush1.bf16.msra.mxu1 %v8716_v21  ;;  %801 = vmatprep.mubr.f32.mxu1 %v10377_v54  ;;  %v8747_v46 = vpack.c.bf16 %v248_v4, %v244_v43  ;;  %v252_v7 = vld [vmem:[#allocation8 + $0x298] sm:$0xff] }
  0xb0   :  { %877 = vmatmul.mubr.f32.vlgmr.msra.gmra.mrb[0].mxu0 %v10377_v54  ;;  %5874 = vmatprep.subr.bf16.mxu1 %v8720_v59  ;;  %10409 = vst [vmem:[#allocation116_spill] sm:$0xff] %v8736_v12  ;;  %10410 = vst [vmem:[#allocation117_spill] sm:$0xff] %v8739_v29  ;;  %v256_v19 = vld [vmem:[#allocation8 + $0x2d8] sm:$0xff] }
  0xb1   :  { %5968 = vmatpush1.bf16.msra.mxu0 %v8419_v9  ;;  %1077 = vmatprep.mubr.f32.mxu0 %v10377_v54  ;;  %v8744_v9 = vpack.c.bf16 %v239_v52, %v235_v32  ;;  %10412 = vst [vmem:[#allocation119_spill] sm:$0xff] %v8747_v46  ;;  %v8755_v32 = vpack.c.bf16 %v256_v19, %v252_v7  ;;  %v251_v52 = vld [vmem:[#allocation8 + $0x290] sm:$0xff]  ;;  %v260_v4 = vld [vmem:[#allocation8 + $0x318] sm:$0xff] }
  0xb2   :  { %5970 = vmatprep.subr.bf16.mxu0 %v8426_v17  ;;  %v247_v17 = vld [vmem:[#allocation8 + $0x250] sm:$0xff]  ;;  %v264_v43 = vld [vmem:[#allocation8 + $0x358] sm:$0xff] }
  0xb3   :  { %5876 = vmatpush1.bf16.msra.mxu1 %v8726_v33  ;;  %10411 = vst [vmem:[#allocation118_spill] sm:$0xff] %v8744_v9  ;;  %10414 = vst [vmem:[#allocation121_spill] sm:$0xff] %v8755_v32  ;;  %v268_v7 = vld [vmem:[#allocation8 + $0x398] sm:$0xff] }
  0xb4   :  { %5878 = vmatprep.subr.bf16.mxu1 %v8729_v58  ;;  %v272_v19 = vld [vmem:[#allocation8 + $0x3d8] sm:$0xff] }
  0xb5   :  { %5972 = vmatpush1.bf16.msra.mxu0 %v8431_v22  ;;  %v8752_v22 = vpack.c.bf16 %v247_v17, %v243_v49  ;;  %v8763_v17 = vpack.c.bf16 %v264_v43, %v260_v4  ;;  %v259_v49 = vld [vmem:[#allocation8 + $0x310] sm:$0xff]  ;;  %v276_v4 = vld [vmem:[#allocation8 + $0x38] sm:$0xff] }
  0xb6   :  { %5974 = vmatprep.subr.bf16.mxu0 %v8437_v27  ;;  %v255_v27 = vld [vmem:[#allocation8 + $0x2d0] sm:$0xff]  ;;  %v280_v43 = vld [vmem:[#allocation8 + $0x78] sm:$0xff] }
  0xb7   :  { %5880 = vmatpush1.bf16.msra.mxu1 %v8736_v12  ;;  %10413 = vst [vmem:[#allocation120_spill] sm:$0xff] %v8752_v22  ;;  %10416 = vst [vmem:[#allocation123_spill] sm:$0xff] %v8763_v17 }
  0xb8   :  { %5882 = vmatprep.subr.bf16.mxu1 %v8739_v29 }
  0xb9   :  { %5976 = vmatpush1.bf16.msra.mxu0 %v8442_v35  ;;  %v8760_v35 = vpack.c.bf16 %v255_v27, %v251_v52  ;;  %v8771_v27 = vpack.c.bf16 %v272_v19, %v268_v7  ;;  %v267_v52 = vld [vmem:[#allocation8 + $0x390] sm:$0xff]  ;;  %v284_v7 = vld [vmem:[#allocation8 + $0xb8] sm:$0xff] }
  0xba   :  { %5978 = vmatprep.subr.bf16.mxu0 %v8448_v40  ;;  %v263_v40 = vld [vmem:[#allocation8 + $0x350] sm:$0xff]  ;;  %v288_v19 = vld [vmem:[#allocation8 + $0xf8] sm:$0xff] }
  0xbb   :  { %5884 = vmatpush1.bf16.msra.mxu1 %v8744_v9  ;;  %10415 = vst [vmem:[#allocation122_spill] sm:$0xff] %v8760_v35  ;;  %10418 = vst [vmem:[#allocation125_spill] sm:$0xff] %v8771_v27 }
  0xbc   :  { %5886 = vmatprep.subr.bf16.mxu1 %v8747_v46 }
  0xbd   :  { %5980 = vmatpush1.bf16.msra.mxu0 %v8454_v51  ;;  %v8768_v51 = vpack.c.bf16 %v263_v40, %v259_v49  ;;  %v8779_v40 = vpack.c.bf16 %v280_v43, %v276_v4  ;;  %v275_v49 = vld [vmem:[#allocation8 + $0x30] sm:$0xff]  ;;  %v292_v4 = vld [vmem:[#allocation8 + $0x138] sm:$0xff] }
  0xbe   :  { %5982 = vmatprep.subr.bf16.mxu0 %v8460_v53  ;;  %v271_v53 = vld [vmem:[#allocation8 + $0x3d0] sm:$0xff]  ;;  %v296_v43 = vld [vmem:[#allocation8 + $0x178] sm:$0xff] }
  0xbf   :  { %5888 = vmatpush1.bf16.msra.mxu1 %v8752_v22  ;;  %10417 = vst [vmem:[#allocation124_spill] sm:$0xff] %v8768_v51  ;;  %10420 = vst [vmem:[#allocation127_spill] sm:$0xff] %v8779_v40 }
  0xc0   :  { %5890 = vmatprep.subr.bf16.mxu1 %v8755_v32 }
  0xc1   :  { %5984 = vmatpush1.bf16.msra.mxu0 %v8466_v63  ;;  %v8776_v63 = vpack.c.bf16 %v271_v53, %v267_v52  ;;  %v8787_v53 = vpack.c.bf16 %v288_v19, %v284_v7  ;;  %v283_v52 = vld [vmem:[#allocation8 + $0xb0] sm:$0xff]  ;;  %v300_v19 = vld [vmem:[#allocation8 + $0x1b8] sm:$0xff] }
  0xc2   :  { %5986 = vmatprep.subr.bf16.mxu0 %v8472_v2  ;;  %v279_v2 = vld [vmem:[#allocation8 + $0x70] sm:$0xff] }
  0xc3   :  { %5892 = vmatpush1.bf16.msra.mxu1 %v8760_v35  ;;  %10419 = vst [vmem:[#allocation126_spill] sm:$0xff] %v8776_v63  ;;  %v295_v7 = vld [vmem:[#allocation8 + $0x170] sm:$0xff] }
  0xc4   :  { %5894 = vmatprep.subr.bf16.mxu1 %v8763_v17 }
  0xc5   :  { %5988 = vmatpush1.bf16.msra.mxu0 %v8478_v16  ;;  %v8784_v16 = vpack.c.bf16 %v279_v2, %v275_v49  ;;  %v8797_v2 = vpack.c.bf16 %v296_v43, %v292_v4  ;;  %v291_v49 = vld [vmem:[#allocation8 + $0x130] sm:$0xff]  ;;  %v8809_v43 = vpack.c.bf16 %v312_v61, %v308_v38 }
  0xc6   :  { %5990 = vmatprep.subr.bf16.mxu0 %v8484_v20  ;;  %v287_v20 = vld [vmem:[#allocation8 + $0xf0] sm:$0xff] }
  0xc7   :  { %5896 = vmatpush1.bf16.msra.mxu1 %v8768_v51  ;;  %10421 = vst [vmem:[#allocation128_spill] sm:$0xff] %v8797_v2  ;;  %10425 = vst [vmem:[#allocation132_spill] sm:$0xff] %v8809_v43 }
  0xc8   :  { %5898 = vmatprep.subr.bf16.mxu1 %v8771_v27 }
  0xc9   :  { %5992 = vmatpush1.bf16.msra.mxu0 %v8490_v34  ;;  %v304_v34 = vld [vmem:[#allocation8 + $0x1f8] sm:$0xff] }
  0xca   :  { %5994 = vmatprep.subr.bf16.mxu0 %v8496_v37  ;;  %v8793_v37 = vpack.c.bf16 %v287_v20, %v283_v52  ;;  %v299_v20 = vld [vmem:[#allocation8 + $0x1b0] sm:$0xff] }
  0xcb   :  { %5900 = vmatpush1.bf16.msra.mxu1 %v8776_v63  ;;  %v303_v52 = vld [vmem:[#allocation8 + $0x1f0] sm:$0xff] }
  0xcc   :  { %5934 = vmatprep.subr.bf16.mxu1 %v8779_v40  ;;  %v8806_v4 = vpack.c.bf16 %v303_v52, %v299_v20  ;;  %v324_v20 = vld [vmem:[#allocation8 + $0x338] sm:$0xff] }
  0xcd   :  { %5996 = vmatpush1.bf16.msra.mxu0 %v8502_v50  ;;  %v8800_v50 = vpack.c.bf16 %v295_v7, %v291_v49  ;;  %v316_v49 = vld [vmem:[#allocation8 + $0x2b8] sm:$0xff] }
  0xce   :  { %802 = vmatmul.mubr.f32.vlgmr.msra.gmra.mrb[2].mxu1 %v10377_v54  ;;  %6030 = vmatprep.subr.bf16.mxu0 %v8417_v8  ;;  %v8803_v8 = vpack.c.bf16 %v304_v34, %v300_v19  ;;  %10424 = vst [vmem:[#allocation131_spill] sm:$0xff] %v8806_v4  ;;  %v320_v7 = vld [vmem:[#allocation8 + $0x2f8] sm:$0xff]  ;;  %v8812_v34 = vpack.c.bf16 %v311_v23, %v307_v62 }
  0xcf   :  { %5936 = vmatpush1.bf16.msra.mxu1 %v8784_v16  ;;  %947 = vmatprep.mubr.f32.mxu1 %v10377_v54  ;;  %10422 = vst [vmem:[#allocation129_spill] sm:$0xff] %v8800_v50  ;;  %v8815_v19 = vpack.c.bf16 %v320_v7, %v316_v49  ;;  %v328_v52 = vld [vmem:[#allocation8 + $0x378] sm:$0xff] }
  0xd0   :  { %5938 = vmatprep.subr.bf16.mxu1 %v8787_v53  ;;  %10423 = vst [vmem:[#allocation130_spill] sm:$0xff] %v8803_v8  ;;  %10426 = vst [vmem:[#allocation133_spill] sm:$0xff] %v8812_v34  ;;  %v8821_v38 = vpack.c.bf16 %v328_v52, %v324_v20  ;;  %v332_v23 = vld [vmem:[#allocation8 + $0x3b8] sm:$0xff] }
  0xd1   :  { %10427 = vst [vmem:[#allocation134_spill] sm:$0xff] %v8815_v19  ;;  %v336_v62 = vld [vmem:[#allocation8 + $0x3f8] sm:$0xff] }
  0xd2   :  { %v8827_v7 = vpack.c.bf16 %v336_v62, %v332_v23  ;;  %v10435_v20 = vld [vmem:[#allocation87_spill] sm:$0xff]  ;;  %v10437_v23 = vld [vmem:[#allocation37_spill] sm:$0xff] }
  0xd3   :  { %5940 = vmatpush1.bf16.msra.mxu1 %v8793_v37  ;;  %v10436_v52 = vld [vmem:[#allocation35_spill] sm:$0xff]  ;;  %v10438_v62 = vld [vmem:[#allocation89_spill] sm:$0xff] }
  0xd4   :  { %5942 = vmatprep.subr.bf16.mxu1 %v8797_v2  ;;  %v315_v2 = vld [vmem:[#allocation8 + $0x2b0] sm:$0xff]  ;;  %10430 = vst [vmem:[#allocation137_spill] sm:$0xff] %v8827_v7 }
  0xd7   :  { %5944 = vmatpush1.bf16.msra.mxu1 %v8800_v50  ;;  %v319_v50 = vld [vmem:[#allocation8 + $0x2f0] sm:$0xff] }
  0xd8   :  { %5946 = vmatprep.subr.bf16.mxu1 %v8803_v8  ;;  %v8818_v61 = vpack.c.bf16 %v319_v50, %v315_v2  ;;  %v323_v8 = vld [vmem:[#allocation8 + $0x330] sm:$0xff]  ;;  %v10431_v2 = vld [vmem:[#allocation83_spill] sm:$0xff] }
  0xda   :  { %10428 = vst [vmem:[#allocation135_spill] sm:$0xff] %v8818_v61 }
  0xdb   :  { %5948 = vmatpush1.bf16.msra.mxu1 %v8806_v4  ;;  %v327_v4 = vld [vmem:[#allocation8 + $0x370] sm:$0xff] }
  0xdc   :  { %5950 = vmatprep.subr.bf16.mxu1 %v8809_v43  ;;  %v8824_v49 = vpack.c.bf16 %v327_v4, %v323_v8  ;;  %v331_v43 = vld [vmem:[#allocation8 + $0x3b0] sm:$0xff]  ;;  %v1010_v8 = vld [vmem:[#allocation3 + $0x8] sm:$0xff]  ;;  %v10432_v4 = vld [vmem:[#allocation31_spill] sm:$0xff] }
  0xdd   :  { %1078 = vmatmul.mubr.f32.vlgmr.msra.gmra.mrb[4].mxu0 %v1010_v8 }
  0xde   :  { %10429 = vst [vmem:[#allocation136_spill] sm:$0xff] %v8824_v49  ;;  %6032 = vmatpush1.bf16.msra.mxu0 %v8422_v13  ;;  %1219 = vmatprep.mubr.f32.mxu0 %v10377_v54 }
  0xdf   :  { %5952 = vmatpush1.bf16.msra.mxu1 %v8812_v34  ;;  %v335_v34 = vld [vmem:[#allocation8 + $0x3f0] sm:$0xff]  ;;  %6034 = vmatprep.subr.bf16.mxu0 %v8428_v18 }
  0xe0   :  { %5954 = vmatprep.subr.bf16.mxu1 %v8815_v19  ;;  %v8830_v50 = vpack.c.bf16 %v335_v34, %v331_v43  ;;  %v10433_v43 = vld [vmem:[#allocation33_spill] sm:$0xff] }
  0xe1   :  { %v10434_v34 = vld [vmem:[#allocation85_spill] sm:$0xff] }
  0xe2   :  { %6036 = vmatpush1.bf16.msra.mxu0 %v8435_v26 }
  0xe3   :  { %5956 = vmatpush1.bf16.msra.mxu1 %v8818_v61  ;;  %6038 = vmatprep.subr.bf16.mxu0 %v8439_v31  ;;  %v10442_v31 = vld [vmem:[#allocation93_spill] sm:$0xff] }
  0xe4   :  { %5958 = vmatprep.subr.bf16.mxu1 %v8821_v38 }
  0xe6   :  { %6040 = vmatpush1.bf16.msra.mxu0 %v8446_v39  ;;  %v10441_v39 = vld [vmem:[#allocation41_spill] sm:$0xff] }
  0xe7   :  { %5960 = vmatpush1.bf16.msra.mxu1 %v8824_v49  ;;  %6042 = vmatprep.subr.bf16.mxu0 %v8451_v44  ;;  %v10440_v44 = vld [vmem:[#allocation39_spill] sm:$0xff] }
  0xe8   :  { %5962 = vmatprep.subr.bf16.mxu1 %v8827_v7 }
  0xea   :  { %6044 = vmatpush1.bf16.msra.mxu0 %v10432_v4  ;;  %v10443_v4 = vld [vmem:[#allocation95_spill] sm:$0xff] }
  0xeb   :  { %5964 = vmatpush1.bf16.msra.mxu1 %v8830_v50  ;;  %6046 = vmatprep.subr.bf16.mxu0 %v10433_v43  ;;  %v10444_v43 = vld [vmem:[#allocation43_spill] sm:$0xff] }
  0xec   :  { %5998 = vmatprep.subr.bf16.mxu1 %v8508_v55 }
  0xee   :  { %948 = vmatmul.mubr.f32.vlgmr.msra.gmra.mrb[4].mxu1 %v10377_v54  ;;  %6048 = vmatpush1.bf16.msra.mxu0 %v10436_v52  ;;  %v10447_v52 = vld [vmem:[#allocation99_spill] sm:$0xff] }
  0xef   :  { %6000 = vmatpush1.bf16.msra.mxu1 %v8516_v11  ;;  %1148 = vmatprep.mubr.f32.mxu1 %v10377_v54 }
  0xf0   :  { %6002 = vmatprep.subr.bf16.mxu1 %v8524_v15  ;;  %6050 = vmatprep.subr.bf16.mxu0 %v10437_v23  ;;  %v10448_v23 = vld [vmem:[#allocation47_spill] sm:$0xff] }
  0xf2   :  { %6052 = vmatpush1.bf16.msra.mxu0 %v10440_v44  ;;  %v10450_v44 = vld [vmem:[#allocation101_spill] sm:$0xff] }
  0xf3   :  { %6004 = vmatpush1.bf16.msra.mxu1 %v8532_v41  ;;  %6054 = vmatprep.subr.bf16.mxu0 %v10441_v39  ;;  %v10451_v39 = vld [vmem:[#allocation50_spill] sm:$0xff] }
  0xf4   :  { %6006 = vmatprep.subr.bf16.mxu1 %v8538_v45 }
  0xf6   :  { %6056 = vmatpush1.bf16.msra.mxu0 %v10444_v43  ;;  %v10456_v43 = vld [vmem:[#allocation60_spill] sm:$0xff] }
  0xf7   :  { %6008 = vmatpush1.bf16.msra.mxu1 %v8546_v3 }
  0xf8   :  { %6010 = vmatprep.subr.bf16.mxu1 %v8552_v6 }
  0xfb   :  { %6012 = vmatpush1.bf16.msra.mxu1 %v8558_v47 }
  0xfc   :  { %6014 = vmatprep.subr.bf16.mxu1 %v8564_v56 }
  0xff   :  { %6016 = vmatpush1.bf16.msra.mxu1 %v8570_v5 }
 0x100   :  { %6018 = vmatprep.subr.bf16.mxu1 %v8576_v30 }
 0x103   :  { %6020 = vmatpush1.bf16.msra.mxu1 %v8582_v48 }
 0x104   :  { %6022 = vmatprep.subr.bf16.mxu1 %v8588_v42 }
 0x107   :  { %6024 = vmatpush1.bf16.msra.mxu1 %v8594_v24 }
 0x108   :  { %6026 = vmatprep.subr.bf16.mxu1 %v8600_v28 }
 0x10b   :  { %6028 = vmatpush1.bf16.msra.mxu1 %v8606_v0 }
 0x10c   :  { %6062 = vmatprep.subr.bf16.mxu1 %v8612_v60 }
 0x10e   :  { %1149 = vmatmul.mubr.f32.vlgmr.msra.gmra.mrb[6].mxu1 %v1010_v8  ;;  %v10439_v8 = vld [vmem:[#allocation91_spill] sm:$0xff] }
 0x10f   :  { %6064 = vmatpush1.bf16.msra.mxu1 %v8618_v14  ;;  %1290 = vmatprep.mubr.f32.mxu1 %v10377_v54 }
 0x110   :  { %6066 = vmatprep.subr.bf16.mxu1 %v10431_v2 }
 0x113   :  { %6068 = vmatpush1.bf16.msra.mxu1 %v10434_v34  ;;  %v10445_v34 = vld [vmem:[#allocation45_spill] sm:$0xff] }
 0x114   :  { %6070 = vmatprep.subr.bf16.mxu1 %v10435_v20  ;;  %6058 = vmatprep.subr.bf16.mxu0 %v10445_v34  ;;  %v10446_v20 = vld [vmem:[#allocation97_spill] sm:$0xff]  ;;  %v10453_v34 = vld [vmem:[#allocation54_spill] sm:$0xff] }
 0x115   :  { %6060 = vmatpush1.bf16.msra.mxu0 %v10448_v23  ;;  %v10454_v23 = vld [vmem:[#allocation56_spill] sm:$0xff] }
 0x117   :  { %6072 = vmatpush1.bf16.msra.mxu1 %v10438_v62  ;;  %v10449_v62 = vld [vmem:[#allocation48_spill] sm:$0xff] }
 0x118   :  { %6074 = vmatprep.subr.bf16.mxu1 %v10439_v8  ;;  %6094 = vmatprep.subr.bf16.mxu0 %v10449_v62  ;;  %v1012_v8 = vld [vmem:[#allocation3 + $0x30] sm:$0xff] }
 0x119   :  { %1220 = vmatmul.mubr.f32.vlgmr.msra.gmra.mrb[6].mxu0 %v1012_v8  ;;  %v10455_v62 = vld [vmem:[#allocation58_spill] sm:$0xff] }
 0x11a   :  { %6096 = vmatpush1.bf16.msra.mxu0 %v10451_v39  ;;  %1361 = vmatprep.mubr.f32.mxu0 %v10377_v54 }
 0x11b   :  { %6076 = vmatpush1.bf16.msra.mxu1 %v10442_v31 }
 0x11c   :  { %6078 = vmatprep.subr.bf16.mxu1 %v10443_v4  ;;  %v10452_v4 = vld [vmem:[#allocation52_spill] sm:$0xff] }
 0x11d   :  { %6098 = vmatprep.subr.bf16.mxu0 %v10452_v4  ;;  %v10457_v4 = vld [vmem:[#allocation62_spill] sm:$0xff] }
 0x11e   :  { %6100 = vmatpush1.bf16.msra.mxu0 %v10453_v34  ;;  %v10458_v34 = vld [vmem:[#allocation64_spill] sm:$0xff] }
 0x11f   :  { %6080 = vmatpush1.bf16.msra.mxu1 %v10446_v20  ;;  %6102 = vmatprep.subr.bf16.mxu0 %v10454_v23  ;;  %v10459_v23 = vld [vmem:[#allocation66_spill] sm:$0xff] }
 0x120   :  { %6082 = vmatprep.subr.bf16.mxu1 %v10447_v52 }
 0x122   :  { %6104 = vmatpush1.bf16.msra.mxu0 %v10455_v62  ;;  %v10460_v62 = vld [vmem:[#allocation68_spill] sm:$0xff] }
 0x123   :  { %6084 = vmatpush1.bf16.msra.mxu1 %v10450_v44  ;;  %6106 = vmatprep.subr.bf16.mxu0 %v10456_v43  ;;  %v10462_v43 = vld [vmem:[#allocation72_spill] sm:$0xff] }
 0x124   :  { %6086 = vmatprep.subr.bf16.mxu1 %v8688_v10 }
 0x126   :  { %6108 = vmatpush1.bf16.msra.mxu0 %v10457_v4  ;;  %v10464_v4 = vld [vmem:[#allocation76_spill] sm:$0xff] }
 0x127   :  { %6088 = vmatpush1.bf16.msra.mxu1 %v8694_v36  ;;  %6110 = vmatprep.subr.bf16.mxu0 %v10458_v34  ;;  %v10463_v34 = vld [vmem:[#allocation74_spill] sm:$0xff] }
 0x128   :  { %6090 = vmatprep.subr.bf16.mxu1 %v8700_v25 }
 0x12a   :  { %6112 = vmatpush1.bf16.msra.mxu0 %v10459_v23 }
 0x12b   :  { %6092 = vmatpush1.bf16.msra.mxu1 %v8706_v1  ;;  %6114 = vmatprep.subr.bf16.mxu0 %v10460_v62  ;;  %v10465_v62 = vld [vmem:[#allocation78_spill] sm:$0xff] }
 0x12c   :  { %6126 = vmatprep.subr.bf16.mxu1 %v8712_v57 }
 0x12e   :  { %1291 = vmatmul.mubr.f32.vlgmr.msra.gmra.mrb[8].mxu1 %v1012_v8  ;;  %v10461_v8 = vld [vmem:[#allocation70_spill] sm:$0xff] }
 0x12f   :  { %6128 = vmatpush1.bf16.msra.mxu1 %v8716_v21  ;;  %1432 = vmatprep.mubr.f32.mxu1 %v10377_v54 }
 0x130   :  { %6130 = vmatprep.subr.bf16.mxu1 %v8720_v59  ;;  %6116 = vmatpush1.bf16.msra.mxu0 %v10461_v8 }
 0x131   :  { %6118 = vmatprep.subr.bf16.mxu0 %v10462_v43 }
 0x133   :  { %6132 = vmatpush1.bf16.msra.mxu1 %v8726_v33 }
 0x134   :  { %6134 = vmatprep.subr.bf16.mxu1 %v8729_v58  ;;  %6120 = vmatpush1.bf16.msra.mxu0 %v10463_v34 }
 0x135   :  { %6122 = vmatprep.subr.bf16.mxu0 %v10464_v4  ;;  %v341_v4 = vlaneseq }
 0x137   :  { %6136 = vmatpush1.bf16.msra.mxu1 %v8736_v12  ;;  %v8921_v34 = vshrl.u32 %v341_v4, 7 }
 0x138   :  { %6138 = vmatprep.subr.bf16.mxu1 %v8739_v29  ;;  %6124 = vmatpush1.bf16.msra.mxu0 %v10465_v62  ;;  %v10466_v29 = vld [vmem:[#allocation80_spill] sm:$0xff] }
 0x139   :  { %6158 = vmatprep.subr.bf16.mxu0 %v10466_v29  ;;  %v343_v62 = vsub.s32 0, %v8921_v34  ;;  %v207_v29 = vld [vmem:[%s10020_s3] sm:$0xf]  ;;  %v347_v43 = vsub.s32 1, %v8921_v34  ;;  %v351_v58 = vsub.s32 2, %v8921_v34  ;;  %v355_v59 = vsub.s32 3, %v8921_v34 }
 0x13b   :  { %6140 = vmatpush1.bf16.msra.mxu1 %v8744_v9 }
 0x13c   :  { %6142 = vmatprep.subr.bf16.mxu1 %v8747_v46 }
 0x13f   :  { %6144 = vmatpush1.bf16.msra.mxu1 %v8752_v22 }
 0x140   :  { %6146 = vmatprep.subr.bf16.mxu1 %v8755_v32 }
 0x141   :  { %v427_v23 = vpop.f32.mrb[0].mxu1 }
 0x142   :  { %v429_v8 = vpop.f32.mrb[1].mxu1 }
 0x143   :  { %6148 = vmatpush1.bf16.msra.mxu1 %v8760_v35 }
 0x144   :  { %6150 = vmatprep.subr.bf16.mxu1 %v8763_v17  ;;  %v8928_v17 = vrot.slane %v207_v29, %v343_v62 }
 0x146   :  { %10467 = vst [vmem:[#allocation138_spill] sm:$0xff] %v8928_v17 }
 0x147   :  { %6152 = vmatpush1.bf16.msra.mxu1 %v8768_v51  ;;  %v8930_v51 = vrot.slane %v207_v29, %v347_v43 }
 0x148   :  { %6154 = vmatprep.subr.bf16.mxu1 %v8771_v27  ;;  %v428_v27 = vadd.f32 %v427_v23, %v8928_v17  ;;  %v8936_v23 = vrot.slane %v207_v29, %v351_v58 }
 0x149   :  { %10468 = vst [vmem:[#allocation139_spill] sm:$0xff] %v8930_v51 }
 0x14a   :  { %10469 = vst [vmem:[#allocation140_spill] sm:$0xff] %v8936_v23 }
 0x14b   :  { %6156 = vmatpush1.bf16.msra.mxu1 %v8776_v63  ;;  %v430_v63 = vadd.f32 %v429_v8, %v8930_v51  ;;  %v8938_v51 = vrot.slane %v207_v29, %v355_v59 }
 0x14c   :  { %6190 = vmatprep.subr.bf16.mxu1 %v8779_v40 }
 0x163   :  { %v732_v40 = vpop.f32.mrb[2].mxu0 }
 0x164   :  { %v808_v35 = vadd.f32 %v732_v40, %v428_v27  ;;  %v734_v4 = vpop.f32.mrb[3].mxu0 }
 0x165   :  { %v809_v32 = vadd.f32 %v734_v4, %v430_v63 }
 0x166   :  { %v5604_v12 = vmul.f32 -1.442695, %v808_v35  ;;  %v208_v35 = vld [vmem:[%s10020_s3 + $0x4] sm:$0xf] }
 0x167   :  { %v5605_v9 = vmul.f32 -1.442695, %v809_v32  ;;  %v8945_v32 = vrot.slane %v208_v35, %v347_v43  ;;  %v8947_v40 = vrot.slane %v208_v35, %v343_v62 }
 0x169   :  { %7927 = vpow2.f32 %v5605_v9 }
 0x16a   :  { %7929 = vpow2.f32 %v5604_v12 }
 0x173   :  { %v7928_v33 = vpop.eup %7927 }
 0x174   :  { %v7930_v21 = vpop.eup %7929  ;;  %v967_v39 = vadd.f32 1.0, %v7928_v33 }
 0x175   :  { %v961_v8 = vadd.f32 1.0, %v7930_v21 }
 0x176   :  { %7931 = vrcp.f32 %v967_v39 }
 0x177   :  { %7933 = vrcp.f32 %v961_v8 }
 0x180   :  { %v7932_v29 = vpop.eup %7931 }
 0x181   :  { %v7934_v34 = vpop.eup %7933 }
 0x183   :  { %v878_v22 = vpop.f32.mrb[0].mxu0 }
 0x184   :  { %v880_v46 = vpop.f32.mrb[1].mxu0  ;;  %v7795_v39 = vadd.f32 %v878_v22, %v8947_v40 }
 0x185   :  { %v7796_v21 = vadd.f32 %v880_v46, %v8945_v32 }
 0x187   :  { %v5608_v4 = vmul.f32 -1.442695, %v7796_v21 }
 0x1a1   :  { %v803_v27 = vpop.f32.mrb[2].mxu1 }
 0x1a2   :  { %v7793_v9 = vadd.f32 %v803_v27, %v8936_v23  ;;  %v805_v63 = vpop.f32.mrb[3].mxu1  ;;  %v5607_v27 = vmul.f32 -1.442695, %v7795_v39  ;;  %v977_v23 = vmul.f32 0.0, %v7932_v29 }
 0x1a3   :  { %v7794_v12 = vadd.f32 %v805_v63, %v8938_v51 }
 0x1a4   :  { %7935 = vtanh.f32 %v7793_v9 }
 0x1a5   :  { %v5606_v33 = vmul.f32 -1.442695, %v7794_v12 }
 0x1a7   :  { %7937 = vpow2.f32 %v5606_v33  ;;  %v8954_v33 = vrot.slane %v208_v35, %v351_v58 }
 0x1a8   :  { %7939 = vpow2.f32 %v5608_v4  ;;  %v10472_v4 = vld [vmem:[#allocation84_spill] sm:$0xff] }
 0x1a9   :  { %7941 = vpow2.f32 %v5607_v27  ;;  %v10474_v27 = vld [vmem:[#allocation88_spill] sm:$0xff] }
 0x1ae   :  { %v7936_v17 = vpop.eup %7935 }
 0x1af   :  { %v978_v8 = vmul.f32 %v7936_v17, %v7934_v34  ;;  %v8958_v17 = vrot.slane %v208_v35, %v355_v59  ;;  %v10471_v34 = vld [vmem:[#allocation82_spill] sm:$0xff] }
 0x1b0   :  { %v10473_v35 = vld [vmem:[#allocation86_spill] sm:$0xff] }
 0x1b1   :  { %v7938_v57 = vpop.eup %7937  ;;  %v8951_v9 = vadd.f32 %v978_v8, %v977_v23  ;;  %v10475_v8 = vld [vmem:[#allocation128_spill] sm:$0xff] }
 0x1b2   :  { %v974_v43 = vadd.f32 1.0, %v7938_v57  ;;  %v7940_v62 = vpop.eup %7939 }
 0x1b3   :  { %7943 = vtanh.f32 %v8951_v9  ;;  %v7942_v46 = vpop.eup %7941  ;;  %v991_v12 = vadd.f32 1.0, %v7940_v62  ;;  %v10477_v62 = vld [vmem:[#allocation129_spill] sm:$0xff] }
 0x1b4   :  { %7945 = vrcp.f32 %v974_v43  ;;  %v985_v21 = vadd.f32 1.0, %v7942_v46  ;;  %v10476_v43 = vld [vmem:[#allocation90_spill] sm:$0xff]  ;;  %v10478_v46 = vld [vmem:[#allocation92_spill] sm:$0xff] }
 0x1b5   :  { %7947 = vrcp.f32 %v991_v12 }
 0x1b6   :  { %7949 = vrcp.f32 %v985_v21 }
 0x1bd   :  { %v7944_v63 = vpop.eup %7943 }
 0x1be   :  { %v7946_v22 = vpop.eup %7945 }
 0x1bf   :  { %v8956_v39 = vmul.f32 %v7946_v22, %v7944_v63  ;;  %v10479_v63 = vld [vmem:[#allocation130_spill] sm:$0xff]  ;;  %v7948_v22 = vpop.eup %7947 }
 0x1c0   :  { %v7950_v12 = vpop.eup %7949 }
 0x1c1   :  { %10470 = vst [vmem:[#allocation141_spill] sm:$0xff] %v8956_v39  ;;  %v949_v29 = vpop.f32.mrb[4].mxu1  ;;  %1362 = vmatmul.mubr.f32.vlgmr.msra.gmra.mrb[4].mxu0 %v8956_v39  ;;  %1433 = vmatmul.mubr.f32.vlgmr.msra.gmra.mrb[6].mxu1 %v8956_v39  ;;  %v10483_v39 = vld [vmem:[#allocation132_spill] sm:$0xff] }
 0x1c2   :  { %v7797_v57 = vadd.f32 %v949_v29, %v8954_v33  ;;  %v951_v23 = vpop.f32.mrb[5].mxu1  ;;  %6160 = vmatpush1.bf16.msra.mxu0 %v10471_v34  ;;  %6192 = vmatpush1.bf16.msra.mxu1 %v8784_v16  ;;  %v10480_v29 = vld [vmem:[#allocation94_spill] sm:$0xff] }
 0x1c3   :  { %v7798_v58 = vadd.f32 %v951_v23, %v8958_v17  ;;  %6162 = vmatprep.subr.bf16.mxu0 %v10472_v4  ;;  %6194 = vmatprep.subr.bf16.mxu1 %v8787_v53  ;;  %v1001_v23 = vmul.f32 0.0, %v7948_v22  ;;  %v10487_v22 = vld [vmem:[#allocation102_spill] sm:$0xff] }
 0x1c4   :  { %7951 = vtanh.f32 %v7797_v57  ;;  %1507 = vmatprep.mubr.f32.mxu0 %v10377_v54  ;;  %1578 = vmatprep.mubr.f32.mxu1 %v10377_v54  ;;  %v10481_v57 = vld [vmem:[#allocation131_spill] sm:$0xff] }
 0x1c5   :  { %v5609_v59 = vmul.f32 -1.442695, %v7798_v58 }
 0x1c6   :  { %6164 = vmatpush1.bf16.msra.mxu0 %v10473_v35  ;;  %6196 = vmatpush1.bf16.msra.mxu1 %v8793_v37 }
 0x1c7   :  { %7953 = vpow2.f32 %v5609_v59  ;;  %6166 = vmatprep.subr.bf16.mxu0 %v10474_v27  ;;  %6198 = vmatprep.subr.bf16.mxu1 %v10475_v8  ;;  %v10482_v59 = vld [vmem:[#allocation96_spill] sm:$0xff] }
 0x1c8   :  { %v10486_v27 = vld [vmem:[#allocation100_spill] sm:$0xff] }
 0x1ca   :  { %6168 = vmatpush1.bf16.msra.mxu0 %v10476_v43  ;;  %6200 = vmatpush1.bf16.msra.mxu1 %v10477_v62 }
 0x1cb   :  { %6170 = vmatprep.subr.bf16.mxu0 %v10478_v46  ;;  %6202 = vmatprep.subr.bf16.mxu1 %v10479_v63  ;;  %v10484_v46 = vld [vmem:[#allocation98_spill] sm:$0xff]  ;;  %v10485_v63 = vld [vmem:[#allocation133_spill] sm:$0xff] }
 0x1ce   :  { %v7952_v21 = vpop.eup %7951  ;;  %6172 = vmatpush1.bf16.msra.mxu0 %v10480_v29  ;;  %6204 = vmatpush1.bf16.msra.mxu1 %v10481_v57 }
 0x1cf   :  { %v1002_v58 = vmul.f32 %v7952_v21, %v7950_v12  ;;  %6174 = vmatprep.subr.bf16.mxu0 %v10482_v59  ;;  %6206 = vmatprep.subr.bf16.mxu1 %v10483_v39  ;;  %v10488_v12 = vld [vmem:[#allocation104_spill] sm:$0xff] }
 0x1d0   :  { %v10490_v21 = vld [vmem:[#allocation108_spill] sm:$0xff] }
 0x1d1   :  { %v7954_v43 = vpop.eup %7953  ;;  %v8982_v8 = vadd.f32 %v1002_v58, %v1001_v23 }
 0x1d2   :  { %v998_v62 = vadd.f32 1.0, %v7954_v43  ;;  %6176 = vmatpush1.bf16.msra.mxu0 %v10484_v46  ;;  %6208 = vmatpush1.bf16.msra.mxu1 %v10485_v63  ;;  %v10489_v43 = vld [vmem:[#allocation106_spill] sm:$0xff] }
 0x1d3   :  { %7955 = vtanh.f32 %v8982_v8  ;;  %6178 = vmatprep.subr.bf16.mxu0 %v10486_v27  ;;  %6210 = vmatprep.subr.bf16.mxu1 %v8815_v19  ;;  %v10491_v19 = vld [vmem:[#allocation110_spill] sm:$0xff] }
 0x1d4   :  { %7957 = vrcp.f32 %v998_v62 }
 0x1d6   :  { %6180 = vmatpush1.bf16.msra.mxu0 %v10487_v22  ;;  %6212 = vmatpush1.bf16.msra.mxu1 %v8818_v61  ;;  %v10493_v61 = vld [vmem:[#allocation16_spill] sm:$0xff] }
 0x1d7   :  { %6182 = vmatprep.subr.bf16.mxu0 %v10488_v12  ;;  %6214 = vmatprep.subr.bf16.mxu1 %v8821_v38 }
 0x1da   :  { %6184 = vmatpush1.bf16.msra.mxu0 %v10489_v43  ;;  %6216 = vmatpush1.bf16.msra.mxu1 %v8824_v49  ;;  %v10494_v49 = vld [vmem:[#allocation18_spill] sm:$0xff] }
 0x1db   :  { %6186 = vmatprep.subr.bf16.mxu0 %v10490_v21  ;;  %6218 = vmatprep.subr.bf16.mxu1 %v8827_v7  ;;  %v10495_v7 = vld [vmem:[#allocation20_spill] sm:$0xff] }
 0x1dd   :  { %v7956_v23 = vpop.eup %7955 }
 0x1de   :  { %v7958_v58 = vpop.eup %7957  ;;  %6188 = vmatpush1.bf16.msra.mxu0 %v10491_v19  ;;  %6220 = vmatpush1.bf16.msra.mxu1 %v8830_v50 }
 0x1df   :  { %v8999_v62 = vmul.f32 %v7958_v58, %v7956_v23  ;;  %6222 = vmatprep.subr.bf16.mxu0 %v10493_v61  ;;  %6254 = vmatprep.subr.bf16.mxu1 %v8508_v55  ;;  %v10496_v23 = vld [vmem:[#allocation22_spill] sm:$0xff]  ;;  %v10497_v58 = vld [vmem:[#allocation24_spill] sm:$0xff] }
 0x1e1   :  { %10492 = vst [vmem:[#allocation82_spill] sm:$0xff] %v8999_v62  ;;  %1508 = vmatmul.mubr.f32.vlgmr.msra.gmra.mrb[6].mxu0 %v8999_v62  ;;  %1579 = vmatmul.mubr.f32.vlgmr.msra.gmra.mrb[8].mxu1 %v8999_v62  ;;  %v10498_v62 = vld [vmem:[#allocation26_spill] sm:$0xff] }
 0x1e2   :  { %6224 = vmatpush1.bf16.msra.mxu0 %v10494_v49  ;;  %6256 = vmatpush1.bf16.msra.mxu1 %v8516_v11  ;;  %v10499_v11 = vld [vmem:[#allocation28_spill] sm:$0xff] }
 0x1e3   :  { %6226 = vmatprep.subr.bf16.mxu0 %v10495_v7  ;;  %6258 = vmatprep.subr.bf16.mxu1 %v8524_v15  ;;  %v10500_v15 = vld [vmem:[#allocation30_spill] sm:$0xff]  ;;  %v10501_v7 = vld [vmem:[#allocation32_spill] sm:$0xff] }
 0x1e4   :  { %1709 = vmatprep.mubr.f32.mxu0 %v10377_v54  ;;  %1780 = vmatprep.mubr.f32.mxu1 %v10377_v54 }
 0x1e6   :  { %6228 = vmatpush1.bf16.msra.mxu0 %v10496_v23  ;;  %6260 = vmatpush1.bf16.msra.mxu1 %v8532_v41  ;;  %v10502_v41 = vld [vmem:[#allocation34_spill] sm:$0xff] }
 0x1e7   :  { %6230 = vmatprep.subr.bf16.mxu0 %v10497_v58  ;;  %6262 = vmatprep.subr.bf16.mxu1 %v8538_v45  ;;  %v10503_v45 = vld [vmem:[#allocation36_spill] sm:$0xff] }
 0x1ea   :  { %6232 = vmatpush1.bf16.msra.mxu0 %v10498_v62  ;;  %6264 = vmatpush1.bf16.msra.mxu1 %v8546_v3  ;;  %v10504_v3 = vld [vmem:[#allocation38_spill] sm:$0xff] }
 0x1eb   :  { %6234 = vmatprep.subr.bf16.mxu0 %v10499_v11  ;;  %6266 = vmatprep.subr.bf16.mxu1 %v8552_v6  ;;  %v10505_v6 = vld [vmem:[#allocation40_spill] sm:$0xff] }
 0x1ee   :  { %6236 = vmatpush1.bf16.msra.mxu0 %v10500_v15  ;;  %6268 = vmatpush1.bf16.msra.mxu1 %v8558_v47  ;;  %v10506_v47 = vld [vmem:[#allocation42_spill] sm:$0xff] }
 0x1ef   :  { %6238 = vmatprep.subr.bf16.mxu0 %v10501_v7  ;;  %6270 = vmatprep.subr.bf16.mxu1 %v8564_v56  ;;  %v10507_v56 = vld [vmem:[#allocation44_spill] sm:$0xff] }
 0x1f2   :  { %6240 = vmatpush1.bf16.msra.mxu0 %v10502_v41  ;;  %6272 = vmatpush1.bf16.msra.mxu1 %v8570_v5  ;;  %v10508_v5 = vld [vmem:[#allocation46_spill] sm:$0xff] }
 0x1f3   :  { %6242 = vmatprep.subr.bf16.mxu0 %v10503_v45  ;;  %6274 = vmatprep.subr.bf16.mxu1 %v8576_v30  ;;  %v1642_v30 = vld [vmem:[#allocation3 + $0x10] sm:$0xff] }
 0x1f6   :  { %6244 = vmatpush1.bf16.msra.mxu0 %v10504_v3  ;;  %6276 = vmatpush1.bf16.msra.mxu1 %v8582_v48  ;;  %v10509_v3 = vld [vmem:[#allocation17_spill] sm:$0xff] }
 0x1f7   :  { %6246 = vmatprep.subr.bf16.mxu0 %v10505_v6  ;;  %6278 = vmatprep.subr.bf16.mxu1 %v8588_v42 }
 0x1fa   :  { %6248 = vmatpush1.bf16.msra.mxu0 %v10506_v47  ;;  %6280 = vmatpush1.bf16.msra.mxu1 %v8594_v24 }
 0x1fb   :  { %6250 = vmatprep.subr.bf16.mxu0 %v10507_v56  ;;  %6282 = vmatprep.subr.bf16.mxu1 %v8600_v28 }
 0x1fe   :  { %6252 = vmatpush1.bf16.msra.mxu0 %v10508_v5  ;;  %6284 = vmatpush1.bf16.msra.mxu1 %v8606_v0  ;;  %v10510_v0 = vld [vmem:[#allocation85_spill] sm:$0xff] }
 0x1ff   :  { %6286 = vmatprep.subr.bf16.mxu0 %v10509_v3  ;;  %6318 = vmatprep.subr.bf16.mxu1 %v8612_v60  ;;  %v10511_v3 = vld [vmem:[#allocation25_spill] sm:$0xff]  ;;  %v10512_v60 = vld [vmem:[#allocation87_spill] sm:$0xff] }
 0x200   :  { %v10518_v5 = vld [vmem:[#allocation33_spill] sm:$0xff] }
 0x201   :  { %1710 = vmatmul.mubr.f32.vlgmr.msra.gmra.mrb[8].mxu0 %v1642_v30  ;;  %1781 = vmatmul.mubr.f32.vlgmr.msra.gmra.mrb[10].mxu1 %v1642_v30  ;;  %v10513_v30 = vld [vmem:[#allocation27_spill] sm:$0xff] }
 0x202   :  { %6288 = vmatpush1.bf16.msra.mxu0 %v8422_v13  ;;  %6320 = vmatpush1.bf16.msra.mxu1 %v8618_v14  ;;  %v10514_v13 = vld [vmem:[#allocation89_spill] sm:$0xff] }
 0x203   :  { %6290 = vmatprep.subr.bf16.mxu0 %v8428_v18  ;;  %6322 = vmatprep.subr.bf16.mxu1 %v10431_v2  ;;  %v10515_v14 = vld [vmem:[#allocation29_spill] sm:$0xff]  ;;  %v10516_v18 = vld [vmem:[#allocation91_spill] sm:$0xff] }
 0x204   :  { %1851 = vmatprep.mubr.f32.mxu0 %v10377_v54  ;;  %1922 = vmatprep.mubr.f32.mxu1 %v10377_v54  ;;  %v10517_v2 = vld [vmem:[#allocation31_spill] sm:$0xff] }
 0x206   :  { %6292 = vmatpush1.bf16.msra.mxu0 %v8435_v26  ;;  %6324 = vmatpush1.bf16.msra.mxu1 %v10510_v0  ;;  %v10519_v26 = vld [vmem:[#allocation95_spill] sm:$0xff] }
 0x207   :  { %6294 = vmatprep.subr.bf16.mxu0 %v10511_v3  ;;  %6326 = vmatprep.subr.bf16.mxu1 %v10512_v60  ;;  %v10520_v0 = vld [vmem:[#allocation35_spill] sm:$0xff]  ;;  %v10521_v60 = vld [vmem:[#allocation37_spill] sm:$0xff] }
 0x20a   :  { %6296 = vmatpush1.bf16.msra.mxu0 %v10513_v30  ;;  %6328 = vmatpush1.bf16.msra.mxu1 %v10514_v13  ;;  %v10522_v13 = vld [vmem:[#allocation39_spill] sm:$0xff] }
 0x20b   :  { %6298 = vmatprep.subr.bf16.mxu0 %v10515_v14  ;;  %6330 = vmatprep.subr.bf16.mxu1 %v10516_v18  ;;  %v10523_v18 = vld [vmem:[#allocation41_spill] sm:$0xff] }
 0x20e   :  { %6300 = vmatpush1.bf16.msra.mxu0 %v10517_v2  ;;  %6332 = vmatpush1.bf16.msra.mxu1 %v10442_v31  ;;  %v10524_v31 = vld [vmem:[#allocation43_spill] sm:$0xff] }
 0x20f   :  { %6302 = vmatprep.subr.bf16.mxu0 %v10518_v5  ;;  %6334 = vmatprep.subr.bf16.mxu1 %v10519_v26  ;;  %v10525_v26 = vld [vmem:[#allocation45_spill] sm:$0xff]  ;;  %v10562_v5 = vld [vmem:[#allocation139_spill] sm:$0xff] }
 0x212   :  { %6304 = vmatpush1.bf16.msra.mxu0 %v10520_v0  ;;  %6336 = vmatpush1.bf16.msra.mxu1 %v10446_v20  ;;  %v10526_v20 = vld [vmem:[#allocation47_spill] sm:$0xff] }
 0x213   :  { %6306 = vmatprep.subr.bf16.mxu0 %v10521_v60  ;;  %6338 = vmatprep.subr.bf16.mxu1 %v10447_v52  ;;  %v10527_v52 = vld [vmem:[#allocation48_spill] sm:$0xff]  ;;  %v10561_v60 = vld [vmem:[#allocation138_spill] sm:$0xff] }
 0x216   :  { %6308 = vmatpush1.bf16.msra.mxu0 %v10522_v13  ;;  %6340 = vmatpush1.bf16.msra.mxu1 %v10450_v44  ;;  %v10528_v13 = vld [vmem:[#allocation111_spill] sm:$0xff]  ;;  %v1644_v44 = vld [vmem:[#allocation3 + $0x28] sm:$0xff] }
 0x217   :  { %6310 = vmatprep.subr.bf16.mxu0 %v10523_v18  ;;  %6342 = vmatprep.subr.bf16.mxu1 %v8688_v10  ;;  %v10529_v10 = vld [vmem:[#allocation50_spill] sm:$0xff]  ;;  %v10543_v18 = vld [vmem:[#allocation64_spill] sm:$0xff] }
 0x21a   :  { %6312 = vmatpush1.bf16.msra.mxu0 %v10524_v31  ;;  %6344 = vmatpush1.bf16.msra.mxu1 %v8694_v36  ;;  %v10530_v31 = vld [vmem:[#allocation112_spill] sm:$0xff] }
 0x21b   :  { %6314 = vmatprep.subr.bf16.mxu0 %v10525_v26  ;;  %6346 = vmatprep.subr.bf16.mxu1 %v8700_v25  ;;  %v10531_v36 = vld [vmem:[#allocation52_spill] sm:$0xff]  ;;  %v10532_v26 = vld [vmem:[#allocation113_spill] sm:$0xff]  ;;  %v10542_v25 = vld [vmem:[#allocation118_spill] sm:$0xff] }
 0x21e   :  { %6316 = vmatpush1.bf16.msra.mxu0 %v10526_v20  ;;  %6348 = vmatpush1.bf16.msra.mxu1 %v8706_v1  ;;  %v10533_v1 = vld [vmem:[#allocation54_spill] sm:$0xff]  ;;  %v10536_v20 = vld [vmem:[#allocation115_spill] sm:$0xff] }
 0x21f   :  { %6350 = vmatprep.subr.bf16.mxu0 %v10527_v52  ;;  %6382 = vmatprep.subr.bf16.mxu1 %v10528_v13  ;;  %v10534_v52 = vld [vmem:[#allocation114_spill] sm:$0xff]  ;;  %v10535_v13 = vld [vmem:[#allocation56_spill] sm:$0xff] }
 0x221   :  { %1852 = vmatmul.mubr.f32.vlgmr.msra.gmra.mrb[10].mxu0 %v1644_v44  ;;  %1923 = vmatmul.mubr.f32.vlgmr.msra.gmra.mrb[12].mxu1 %v1644_v44  ;;  %v10537_v44 = vld [vmem:[#allocation58_spill] sm:$0xff] }
 0x222   :  { %6352 = vmatpush1.bf16.msra.mxu0 %v10529_v10  ;;  %6384 = vmatpush1.bf16.msra.mxu1 %v10530_v31  ;;  %v10538_v10 = vld [vmem:[#allocation116_spill] sm:$0xff] }
 0x223   :  { %6354 = vmatprep.subr.bf16.mxu0 %v10531_v36  ;;  %6386 = vmatprep.subr.bf16.mxu1 %v10532_v26  ;;  %v10539_v31 = vld [vmem:[#allocation60_spill] sm:$0xff]  ;;  %v10540_v36 = vld [vmem:[#allocation117_spill] sm:$0xff]  ;;  %v10541_v26 = vld [vmem:[#allocation62_spill] sm:$0xff] }
 0x224   :  { %1993 = vmatprep.mubr.f32.mxu0 %v10377_v54  ;;  %2064 = vmatprep.mubr.f32.mxu1 %v10377_v54 }
 0x226   :  { %6356 = vmatpush1.bf16.msra.mxu0 %v10533_v1  ;;  %6388 = vmatpush1.bf16.msra.mxu1 %v10534_v52  ;;  %v10544_v1 = vld [vmem:[#allocation119_spill] sm:$0xff]  ;;  %v10545_v52 = vld [vmem:[#allocation66_spill] sm:$0xff] }
 0x227   :  { %6358 = vmatprep.subr.bf16.mxu0 %v10535_v13  ;;  %6390 = vmatprep.subr.bf16.mxu1 %v10536_v20  ;;  %v10546_v13 = vld [vmem:[#allocation120_spill] sm:$0xff] }
 0x228   :  { %v10547_v20 = vld [vmem:[#allocation68_spill] sm:$0xff] }
 0x22a   :  { %6360 = vmatpush1.bf16.msra.mxu0 %v10537_v44  ;;  %6392 = vmatpush1.bf16.msra.mxu1 %v10538_v10  ;;  %v10548_v44 = vld [vmem:[#allocation121_spill] sm:$0xff]  ;;  %v10549_v10 = vld [vmem:[#allocation70_spill] sm:$0xff] }
 0x22b   :  { %6362 = vmatprep.subr.bf16.mxu0 %v10539_v31  ;;  %6394 = vmatprep.subr.bf16.mxu1 %v10540_v36  ;;  %v10550_v31 = vld [vmem:[#allocation122_spill] sm:$0xff]  ;;  %v10551_v36 = vld [vmem:[#allocation72_spill] sm:$0xff] }
 0x22e   :  { %6364 = vmatpush1.bf16.msra.mxu0 %v10541_v26  ;;  %6396 = vmatpush1.bf16.msra.mxu1 %v10542_v25  ;;  %v10552_v26 = vld [vmem:[#allocation123_spill] sm:$0xff]  ;;  %v10553_v25 = vld [vmem:[#allocation74_spill] sm:$0xff] }
 0x22f   :  { %6366 = vmatprep.subr.bf16.mxu0 %v10543_v18  ;;  %6398 = vmatprep.subr.bf16.mxu1 %v10544_v1  ;;  %v10554_v18 = vld [vmem:[#allocation124_spill] sm:$0xff] }
 0x230   :  { %v10555_v1 = vld [vmem:[#allocation76_spill] sm:$0xff] }
 0x232   :  { %6368 = vmatpush1.bf16.msra.mxu0 %v10545_v52  ;;  %6400 = vmatpush1.bf16.msra.mxu1 %v10546_v13  ;;  %v10556_v52 = vld [vmem:[#allocation125_spill] sm:$0xff]  ;;  %v10557_v13 = vld [vmem:[#allocation78_spill] sm:$0xff] }
 0x233   :  { %6370 = vmatprep.subr.bf16.mxu0 %v10547_v20  ;;  %6402 = vmatprep.subr.bf16.mxu1 %v10548_v44  ;;  %v10558_v20 = vld [vmem:[#allocation126_spill] sm:$0xff]  ;;  %v10559_v44 = vld [vmem:[#allocation80_spill] sm:$0xff] }
 0x236   :  { %6372 = vmatpush1.bf16.msra.mxu0 %v10549_v10  ;;  %6404 = vmatpush1.bf16.msra.mxu1 %v10550_v31  ;;  %v10560_v10 = vld [vmem:[#allocation127_spill] sm:$0xff] }
 0x237   :  { %6374 = vmatprep.subr.bf16.mxu0 %v10551_v36  ;;  %6406 = vmatprep.subr.bf16.mxu1 %v10552_v26 }
 0x23a   :  { %6376 = vmatpush1.bf16.msra.mxu0 %v10553_v25  ;;  %6408 = vmatpush1.bf16.msra.mxu1 %v10554_v18 }
 0x23b   :  { %6378 = vmatprep.subr.bf16.mxu0 %v10555_v1  ;;  %6410 = vmatprep.subr.bf16.mxu1 %v10556_v52 }
 0x23e   :  { %6380 = vmatpush1.bf16.msra.mxu0 %v10557_v13  ;;  %6412 = vmatpush1.bf16.msra.mxu1 %v10558_v20  ;;  %v10563_v20 = vld [vmem:[#allocation140_spill] sm:$0xff] }
 0x23f   :  { %6414 = vmatprep.subr.bf16.mxu0 %v10559_v44  ;;  %6446 = vmatprep.subr.bf16.mxu1 %v10560_v10 }
 0x294   :  { %v1363_v31 = vpop.f32.mrb[4].mxu0  ;;  %v1434_v36 = vpop.f32.mrb[6].mxu1 }
 0x295   :  { %v7799_v26 = vadd.f32 %v1363_v31, %v10561_v60  ;;  %v1365_v0 = vpop.f32.mrb[5].mxu0  ;;  %v1436_v25 = vpop.f32.mrb[7].mxu1  ;;  %v7801_v14 = vadd.f32 %v1434_v36, %v10563_v20 }
 0x296   :  { %v7800_v18 = vadd.f32 %v1365_v0, %v10562_v5  ;;  %v7802_v13 = vadd.f32 %v1436_v25, %v8938_v51 }
 0x297   :  { %v5610_v2 = vmul.f32 -1.442695, %v7799_v26 }
 0x298   :  { %v5611_v1 = vmul.f32 -1.442695, %v7800_v18  ;;  %v5612_v52 = vmul.f32 -1.442695, %v7802_v13 }
 0x299   :  { %7959 = vpow2.f32 %v5610_v2 }
 0x29a   :  { %7961 = vpow2.f32 %v5611_v1 }
 0x29b   :  { %7963 = vpow2.f32 %v5612_v52 }
 0x29c   :  { %7965 = vtanh.f32 %v7801_v14 }
 0x2a3   :  { %v7960_v44 = vpop.eup %7959 }
 0x2a4   :  { %v7962_v30 = vpop.eup %7961  ;;  %v1592_v10 = vadd.f32 1.0, %v7960_v44 }
 0x2a5   :  { %v1598_v3 = vadd.f32 1.0, %v7962_v30  ;;  %v7964_v31 = vpop.eup %7963 }
 0x2a6   :  { %7967 = vrcp.f32 %v1592_v10  ;;  %v7966_v60 = vpop.eup %7965  ;;  %v1605_v2 = vadd.f32 1.0, %v7964_v31 }
 0x2a7   :  { %7969 = vrcp.f32 %v1598_v3 }
 0x2a8   :  { %7971 = vrcp.f32 %v1605_v2 }
 0x2b0   :  { %v7968_v0 = vpop.eup %7967 }
 0x2b1   :  { %v7970_v26 = vpop.eup %7969  ;;  %v1609_v18 = vmul.f32 %v7968_v0, %v7966_v60 }
 0x2b2   :  { %v1608_v1 = vmul.f32 %v7970_v26, %v8951_v9  ;;  %v7972_v9 = vpop.eup %7971 }
 0x2b4   :  { %v9112_v25 = vadd.f32 %v1609_v18, %v1608_v1  ;;  %v1509_v13 = vpop.f32.mrb[6].mxu0  ;;  %v1580_v36 = vpop.f32.mrb[8].mxu1 }
 0x2b5   :  { %v7803_v44 = vadd.f32 %v1509_v13, %v8947_v40  ;;  %v1511_v52 = vpop.f32.mrb[7].mxu0  ;;  %v1582_v14 = vpop.f32.mrb[9].mxu1  ;;  %v7805_v26 = vadd.f32 %v1580_v36, %v8954_v33  ;;  %v10565_v36 = vld [vmem:[#allocation88_spill] sm:$0xff] }
 0x2b6   :  { %v7804_v10 = vadd.f32 %v1511_v52, %v8945_v32  ;;  %7973 = vtanh.f32 %v9112_v25  ;;  %v7806_v60 = vadd.f32 %v1582_v14, %v8958_v17  ;;  %v10566_v52 = vld [vmem:[#allocation128_spill] sm:$0xff]  ;;  %v10567_v14 = vld [vmem:[#allocation90_spill] sm:$0xff] }
 0x2b7   :  { %v5613_v3 = vmul.f32 -1.442695, %v7803_v44 }
 0x2b8   :  { %v5614_v30 = vmul.f32 -1.442695, %v7804_v10  ;;  %v5615_v0 = vmul.f32 -1.442695, %v7806_v60  ;;  %v10568_v10 = vld [vmem:[#allocation129_spill] sm:$0xff] }
 0x2b9   :  { %7975 = vpow2.f32 %v5613_v3  ;;  %v10569_v3 = vld [vmem:[#allocation92_spill] sm:$0xff] }
 0x2ba   :  { %7977 = vpow2.f32 %v5614_v30  ;;  %v10570_v30 = vld [vmem:[#allocation130_spill] sm:$0xff] }
 0x2bb   :  { %7979 = vpow2.f32 %v5615_v0 }
 0x2bc   :  { %7981 = vtanh.f32 %v7805_v26 }
 0x2c0   :  { %v7974_v31 = vpop.eup %7973 }
 0x2c1   :  { %v9119_v18 = vmul.f32 %v7974_v31, %v7972_v9 }
 0x2c3   :  { %10564 = vst [vmem:[#allocation84_spill] sm:$0xff] %v9119_v18  ;;  %v7976_v2 = vpop.eup %7975  ;;  %1994 = vmatmul.mubr.f32.vlgmr.msra.gmra.mrb[8].mxu0 %v9119_v18  ;;  %2065 = vmatmul.mubr.f32.vlgmr.msra.gmra.mrb[10].mxu1 %v9119_v18  ;;  %v10578_v18 = vld [vmem:[#allocation51_spill] sm:$0xff] }
 0x2c4   :  { %v7978_v1 = vpop.eup %7977  ;;  %v1616_v13 = vadd.f32 1.0, %v7976_v2  ;;  %6416 = vmatpush1.bf16.msra.mxu0 %v10471_v34  ;;  %6448 = vmatpush1.bf16.msra.mxu1 %v8784_v16 }
 0x2c5   :  { %v1622_v44 = vadd.f32 1.0, %v7978_v1  ;;  %6418 = vmatprep.subr.bf16.mxu0 %v10472_v4  ;;  %6450 = vmatprep.subr.bf16.mxu1 %v8787_v53  ;;  %v7980_v60 = vpop.eup %7979 }
 0x2c6   :  { %7983 = vrcp.f32 %v1616_v13  ;;  %2139 = vmatprep.mubr.f32.mxu0 %v10377_v54  ;;  %2210 = vmatprep.mubr.f32.mxu1 %v10377_v54  ;;  %v7982_v9 = vpop.eup %7981  ;;  %v1629_v2 = vadd.f32 1.0, %v7980_v60  ;;  %v10572_v60 = vld [vmem:[#allocation135_spill] sm:$0xff] }
 0x2c7   :  { %7985 = vrcp.f32 %v1622_v44  ;;  %v10571_v44 = vld [vmem:[#allocation134_spill] sm:$0xff] }
 0x2c8   :  { %6420 = vmatpush1.bf16.msra.mxu0 %v10473_v35  ;;  %6452 = vmatpush1.bf16.msra.mxu1 %v8793_v37  ;;  %7987 = vrcp.f32 %v1629_v2  ;;  %v10576_v2 = vld [vmem:[#allocation49_spill] sm:$0xff] }
 0x2c9   :  { %6422 = vmatprep.subr.bf16.mxu0 %v10565_v36  ;;  %6454 = vmatprep.subr.bf16.mxu1 %v10566_v52 }
 0x2cc   :  { %6424 = vmatpush1.bf16.msra.mxu0 %v10567_v14  ;;  %6456 = vmatpush1.bf16.msra.mxu1 %v10568_v10 }
 0x2cd   :  { %6426 = vmatprep.subr.bf16.mxu0 %v10569_v3  ;;  %6458 = vmatprep.subr.bf16.mxu1 %v10570_v30 }
 0x2d0   :  { %v7984_v31 = vpop.eup %7983  ;;  %6428 = vmatpush1.bf16.msra.mxu0 %v10480_v29  ;;  %6460 = vmatpush1.bf16.msra.mxu1 %v10481_v57 }
 0x2d1   :  { %v7986_v0 = vpop.eup %7985  ;;  %v1633_v26 = vmul.f32 %v7984_v31, %v7982_v9  ;;  %6430 = vmatprep.subr.bf16.mxu0 %v10482_v59  ;;  %6462 = vmatprep.subr.bf16.mxu1 %v10483_v39  ;;  %v10574_v9 = vld [vmem:[#allocation137_spill] sm:$0xff] }
 0x2d2   :  { %v1632_v1 = vmul.f32 %v7986_v0, %v8982_v8  ;;  %v10573_v8 = vld [vmem:[#allocation136_spill] sm:$0xff]  ;;  %v7988_v31 = vpop.eup %7987 }
 0x2d4   :  { %v9142_v13 = vadd.f32 %v1633_v26, %v1632_v1  ;;  %6432 = vmatpush1.bf16.msra.mxu0 %v10484_v46  ;;  %6464 = vmatpush1.bf16.msra.mxu1 %v10485_v63  ;;  %v10577_v1 = vld [vmem:[#allocation20_spill] sm:$0xff] }
 0x2d5   :  { %6434 = vmatprep.subr.bf16.mxu0 %v10486_v27  ;;  %6466 = vmatprep.subr.bf16.mxu1 %v10571_v44 }
 0x2d6   :  { %7989 = vtanh.f32 %v9142_v13 }
 0x2d8   :  { %6436 = vmatpush1.bf16.msra.mxu0 %v10487_v22  ;;  %6468 = vmatpush1.bf16.msra.mxu1 %v10572_v60 }
 0x2d9   :  { %6438 = vmatprep.subr.bf16.mxu0 %v10488_v12  ;;  %6470 = vmatprep.subr.bf16.mxu1 %v8821_v38 }
 0x2dc   :  { %6440 = vmatpush1.bf16.msra.mxu0 %v10489_v43  ;;  %6472 = vmatpush1.bf16.msra.mxu1 %v10573_v8 }
 0x2dd   :  { %6442 = vmatprep.subr.bf16.mxu0 %v10490_v21  ;;  %6474 = vmatprep.subr.bf16.mxu1 %v10574_v9 }
 0x2e0   :  { %v7990_v0 = vpop.eup %7989  ;;  %6444 = vmatpush1.bf16.msra.mxu0 %v10491_v19  ;;  %6476 = vmatpush1.bf16.msra.mxu1 %v8830_v50 }
 0x2e1   :  { %v9159_v26 = vmul.f32 %v7990_v0, %v7988_v31  ;;  %6478 = vmatprep.subr.bf16.mxu0 %v10493_v61  ;;  %6510 = vmatprep.subr.bf16.mxu1 %v8508_v55  ;;  %v10579_v31 = vld [vmem:[#allocation53_spill] sm:$0xff]  ;;  %v10580_v0 = vld [vmem:[#allocation55_spill] sm:$0xff] }
 0x2e3   :  { %10575 = vst [vmem:[#allocation86_spill] sm:$0xff] %v9159_v26  ;;  %2140 = vmatmul.mubr.f32.vlgmr.msra.gmra.mrb[10].mxu0 %v9159_v26  ;;  %2211 = vmatmul.mubr.f32.vlgmr.msra.gmra.mrb[12].mxu1 %v9159_v26  ;;  %v10581_v26 = vld [vmem:[#allocation57_spill] sm:$0xff] }
 0x2e4   :  { %6480 = vmatpush1.bf16.msra.mxu0 %v10494_v49  ;;  %6512 = vmatpush1.bf16.msra.mxu1 %v10576_v2 }
 0x2e5   :  { %6482 = vmatprep.subr.bf16.mxu0 %v10577_v1  ;;  %6514 = vmatprep.subr.bf16.mxu1 %v10578_v18  ;;  %v10582_v1 = vld [vmem:[#allocation59_spill] sm:$0xff]  ;;  %v10583_v18 = vld [vmem:[#allocation61_spill] sm:$0xff] }
 0x2e6   :  { %2341 = vmatprep.mubr.f32.mxu0 %v10377_v54  ;;  %2412 = vmatprep.mubr.f32.mxu1 %v10377_v54 }
 0x2e8   :  { %6484 = vmatpush1.bf16.msra.mxu0 %v10496_v23  ;;  %6516 = vmatpush1.bf16.msra.mxu1 %v10579_v31  ;;  %v10584_v23 = vld [vmem:[#allocation63_spill] sm:$0xff] }
 0x2e9   :  { %6486 = vmatprep.subr.bf16.mxu0 %v10497_v58  ;;  %6518 = vmatprep.subr.bf16.mxu1 %v10580_v0  ;;  %v10585_v58 = vld [vmem:[#allocation65_spill] sm:$0xff] }
 0x2ec   :  { %6488 = vmatpush1.bf16.msra.mxu0 %v10498_v62  ;;  %6520 = vmatpush1.bf16.msra.mxu1 %v10581_v26  ;;  %v10586_v62 = vld [vmem:[#allocation67_spill] sm:$0xff]  ;;  %v10587_v26 = vld [vmem:[#allocation38_spill] sm:$0xff] }
 0x2ed   :  { %6490 = vmatprep.subr.bf16.mxu0 %v10499_v11  ;;  %6522 = vmatprep.subr.bf16.mxu1 %v10582_v1 }
 0x2f0   :  { %6492 = vmatpush1.bf16.msra.mxu0 %v10500_v15  ;;  %6524 = vmatpush1.bf16.msra.mxu1 %v10583_v18 }
 0x2f1   :  { %6494 = vmatprep.subr.bf16.mxu0 %v10501_v7  ;;  %6526 = vmatprep.subr.bf16.mxu1 %v10584_v23 }
 0x2f4   :  { %6496 = vmatpush1.bf16.msra.mxu0 %v10502_v41  ;;  %6528 = vmatpush1.bf16.msra.mxu1 %v10585_v58  ;;  %v10588_v58 = vld [vmem:[#allocation46_spill] sm:$0xff] }
 0x2f5   :  { %6498 = vmatprep.subr.bf16.mxu0 %v10503_v45  ;;  %6530 = vmatprep.subr.bf16.mxu1 %v10586_v62  ;;  %v10589_v45 = vld [vmem:[#allocation77_spill] sm:$0xff]  ;;  %v9197_v62 = vld [vmem:[#allocation3 + $0x18] sm:$0xff]  ;;  %v10658_v41 = vld [vmem:[#allocation138_spill] sm:$0xff] }
 0x2f6   :  { %10590 = vst [vmem:[#allocation94_spill] sm:$0xff] %v9197_v62 }
 0x2f8   :  { %6500 = vmatpush1.bf16.msra.mxu0 %v10587_v26  ;;  %6532 = vmatpush1.bf16.msra.mxu1 %v8582_v48  ;;  %v10591_v26 = vld [vmem:[#allocation17_spill] sm:$0xff]  ;;  %v10592_v48 = vld [vmem:[#allocation79_spill] sm:$0xff] }
 0x2f9   :  { %6502 = vmatprep.subr.bf16.mxu0 %v10505_v6  ;;  %6534 = vmatprep.subr.bf16.mxu1 %v8588_v42  ;;  %v10606_v42 = vld [vmem:[#allocation93_spill] sm:$0xff] }
 0x2fa   :  { %v10607_v6 = vld [vmem:[#allocation33_spill] sm:$0xff] }
 0x2fc   :  { %6504 = vmatpush1.bf16.msra.mxu0 %v10506_v47  ;;  %6536 = vmatpush1.bf16.msra.mxu1 %v8594_v24  ;;  %v10593_v47 = vld [vmem:[#allocation19_spill] sm:$0xff]  ;;  %v10594_v24 = vld [vmem:[#allocation81_spill] sm:$0xff] }
 0x2fd   :  { %6506 = vmatprep.subr.bf16.mxu0 %v10507_v56  ;;  %6538 = vmatprep.subr.bf16.mxu1 %v8600_v28  ;;  %v10595_v56 = vld [vmem:[#allocation21_spill] sm:$0xff]  ;;  %v10596_v28 = vld [vmem:[#allocation83_spill] sm:$0xff] }
 0x300   :  { %6508 = vmatpush1.bf16.msra.mxu0 %v10588_v58  ;;  %6540 = vmatpush1.bf16.msra.mxu1 %v10589_v45  ;;  %v10597_v45 = vld [vmem:[#allocation23_spill] sm:$0xff] }
 0x301   :  { %6542 = vmatprep.subr.bf16.mxu0 %v10591_v26  ;;  %6574 = vmatprep.subr.bf16.mxu1 %v10592_v48  ;;  %v10598_v26 = vld [vmem:[#allocation85_spill] sm:$0xff]  ;;  %v10600_v58 = vld [vmem:[#allocation87_spill] sm:$0xff] }
 0x302   :  { %v10599_v48 = vld [vmem:[#allocation25_spill] sm:$0xff] }
 0x303   :  { %2342 = vmatmul.mubr.f32.vlgmr.msra.gmra.mrb[12].mxu0 %v9197_v62  ;;  %2413 = vmatmul.mubr.f32.vlgmr.msra.gmra.mrb[14].mxu1 %v9197_v62  ;;  %v10601_v62 = vld [vmem:[#allocation27_spill] sm:$0xff] }
 0x304   :  { %6544 = vmatpush1.bf16.msra.mxu0 %v10593_v47  ;;  %6576 = vmatpush1.bf16.msra.mxu1 %v10594_v24  ;;  %v10602_v47 = vld [vmem:[#allocation89_spill] sm:$0xff] }
 0x305   :  { %6546 = vmatprep.subr.bf16.mxu0 %v10595_v56  ;;  %6578 = vmatprep.subr.bf16.mxu1 %v10596_v28  ;;  %v10603_v24 = vld [vmem:[#allocation29_spill] sm:$0xff]  ;;  %v10604_v56 = vld [vmem:[#allocation91_spill] sm:$0xff] }
 0x306   :  { %2483 = vmatprep.mubr.f32.mxu0 %v10377_v54  ;;  %2554 = vmatprep.mubr.f32.mxu1 %v10377_v54  ;;  %v10605_v28 = vld [vmem:[#allocation31_spill] sm:$0xff] }
 0x308   :  { %6548 = vmatpush1.bf16.msra.mxu0 %v10597_v45  ;;  %6580 = vmatpush1.bf16.msra.mxu1 %v10598_v26  ;;  %v10608_v45 = vld [vmem:[#allocation95_spill] sm:$0xff] }
 0x309   :  { %6550 = vmatprep.subr.bf16.mxu0 %v10599_v48  ;;  %6582 = vmatprep.subr.bf16.mxu1 %v10600_v58  ;;  %v10609_v26 = vld [vmem:[#allocation35_spill] sm:$0xff]  ;;  %v10610_v48 = vld [vmem:[#allocation97_spill] sm:$0xff] }
 0x30a   :  { %v10611_v58 = vld [vmem:[#allocation37_spill] sm:$0xff] }
 0x30c   :  { %6552 = vmatpush1.bf16.msra.mxu0 %v10601_v62  ;;  %6584 = vmatpush1.bf16.msra.mxu1 %v10602_v47  ;;  %v10612_v62 = vld [vmem:[#allocation99_spill] sm:$0xff] }
 0x30d   :  { %6554 = vmatprep.subr.bf16.mxu0 %v10603_v24  ;;  %6586 = vmatprep.subr.bf16.mxu1 %v10604_v56  ;;  %v10613_v47 = vld [vmem:[#allocation39_spill] sm:$0xff]  ;;  %v10614_v24 = vld [vmem:[#allocation101_spill] sm:$0xff] }
 0x30e   :  { %v10615_v56 = vld [vmem:[#allocation41_spill] sm:$0xff] }
 0x310   :  { %6556 = vmatpush1.bf16.msra.mxu0 %v10605_v28  ;;  %6588 = vmatpush1.bf16.msra.mxu1 %v10606_v42  ;;  %v10616_v28 = vld [vmem:[#allocation103_spill] sm:$0xff] }
 0x311   :  { %6558 = vmatprep.subr.bf16.mxu0 %v10607_v6  ;;  %6590 = vmatprep.subr.bf16.mxu1 %v10608_v45  ;;  %v10617_v42 = vld [vmem:[#allocation43_spill] sm:$0xff]  ;;  %v10618_v6 = vld [vmem:[#allocation105_spill] sm:$0xff] }
 0x312   :  { %v10619_v45 = vld [vmem:[#allocation45_spill] sm:$0xff] }
 0x314   :  { %6560 = vmatpush1.bf16.msra.mxu0 %v10609_v26  ;;  %6592 = vmatpush1.bf16.msra.mxu1 %v10610_v48  ;;  %v10620_v26 = vld [vmem:[#allocation107_spill] sm:$0xff] }
 0x315   :  { %6562 = vmatprep.subr.bf16.mxu0 %v10611_v58  ;;  %6594 = vmatprep.subr.bf16.mxu1 %v10612_v62  ;;  %v10621_v48 = vld [vmem:[#allocation47_spill] sm:$0xff]  ;;  %v10622_v58 = vld [vmem:[#allocation109_spill] sm:$0xff]  ;;  %v10623_v62 = vld [vmem:[#allocation48_spill] sm:$0xff] }
 0x318   :  { %6564 = vmatpush1.bf16.msra.mxu0 %v10613_v47  ;;  %6596 = vmatpush1.bf16.msra.mxu1 %v10614_v24  ;;  %v10624_v47 = vld [vmem:[#allocation111_spill] sm:$0xff]  ;;  %v9237_v24 = vld [vmem:[#allocation3 + $0x20] sm:$0xff] }
 0x319   :  { %6566 = vmatprep.subr.bf16.mxu0 %v10615_v56  ;;  %6598 = vmatprep.subr.bf16.mxu1 %v10616_v28  ;;  %10625 = vst [vmem:[#allocation131_spill] sm:$0xff] %v9237_v24  ;;  %v10634_v28 = vld [vmem:[#allocation58_spill] sm:$0xff] }
 0x31a   :  { %v10639_v56 = vld [vmem:[#allocation118_spill] sm:$0xff] }
 0x31c   :  { %6568 = vmatpush1.bf16.msra.mxu0 %v10617_v42  ;;  %6600 = vmatpush1.bf16.msra.mxu1 %v10618_v6  ;;  %v10626_v42 = vld [vmem:[#allocation50_spill] sm:$0xff]  ;;  %v10627_v6 = vld [vmem:[#allocation112_spill] sm:$0xff] }
 0x31d   :  { %6570 = vmatprep.subr.bf16.mxu0 %v10619_v45  ;;  %6602 = vmatprep.subr.bf16.mxu1 %v10620_v26  ;;  %v10628_v45 = vld [vmem:[#allocation52_spill] sm:$0xff]  ;;  %v10629_v26 = vld [vmem:[#allocation113_spill] sm:$0xff] }
 0x320   :  { %6572 = vmatpush1.bf16.msra.mxu0 %v10621_v48  ;;  %6604 = vmatpush1.bf16.msra.mxu1 %v10622_v58  ;;  %v10632_v58 = vld [vmem:[#allocation56_spill] sm:$0xff]  ;;  %v10633_v48 = vld [vmem:[#allocation115_spill] sm:$0xff] }
 0x321   :  { %6606 = vmatprep.subr.bf16.mxu0 %v10623_v62  ;;  %6638 = vmatprep.subr.bf16.mxu1 %v10624_v47  ;;  %v10630_v62 = vld [vmem:[#allocation54_spill] sm:$0xff] }
 0x322   :  { %v10631_v47 = vld [vmem:[#allocation114_spill] sm:$0xff] }
 0x323   :  { %2484 = vmatmul.mubr.f32.vlgmr.msra.gmra.mrb[14].mxu0 %v9237_v24  ;;  %2555 = vmatmul.mubr.f32.vlgmr.msra.gmra.mrb[16].mxu1 %v9237_v24  ;;  %v10640_v24 = vld [vmem:[#allocation64_spill] sm:$0xff] }
 0x324   :  { %6608 = vmatpush1.bf16.msra.mxu0 %v10626_v42  ;;  %6640 = vmatpush1.bf16.msra.mxu1 %v10627_v6  ;;  %v10635_v42 = vld [vmem:[#allocation116_spill] sm:$0xff] }
 0x325   :  { %6610 = vmatprep.subr.bf16.mxu0 %v10628_v45  ;;  %6642 = vmatprep.subr.bf16.mxu1 %v10629_v26  ;;  %v10636_v6 = vld [vmem:[#allocation60_spill] sm:$0xff]  ;;  %v10637_v45 = vld [vmem:[#allocation117_spill] sm:$0xff]  ;;  %v10638_v26 = vld [vmem:[#allocation62_spill] sm:$0xff] }
 0x326   :  { %2625 = vmatprep.mubr.f32.mxu0 %v10377_v54  ;;  %2696 = vmatprep.mubr.f32.mxu1 %v10377_v54 }
 0x328   :  { %6612 = vmatpush1.bf16.msra.mxu0 %v10630_v62  ;;  %6644 = vmatpush1.bf16.msra.mxu1 %v10631_v47  ;;  %v10641_v62 = vld [vmem:[#allocation119_spill] sm:$0xff]  ;;  %v10642_v47 = vld [vmem:[#allocation66_spill] sm:$0xff] }
 0x329   :  { %6614 = vmatprep.subr.bf16.mxu0 %v10632_v58  ;;  %6646 = vmatprep.subr.bf16.mxu1 %v10633_v48  ;;  %v10643_v58 = vld [vmem:[#allocation120_spill] sm:$0xff] }
 0x32a   :  { %v10644_v48 = vld [vmem:[#allocation68_spill] sm:$0xff] }
 0x32c   :  { %6616 = vmatpush1.bf16.msra.mxu0 %v10634_v28  ;;  %6648 = vmatpush1.bf16.msra.mxu1 %v10635_v42  ;;  %v10645_v28 = vld [vmem:[#allocation121_spill] sm:$0xff]  ;;  %v10646_v42 = vld [vmem:[#allocation70_spill] sm:$0xff] }
 0x32d   :  { %6618 = vmatprep.subr.bf16.mxu0 %v10636_v6  ;;  %6650 = vmatprep.subr.bf16.mxu1 %v10637_v45  ;;  %v10647_v6 = vld [vmem:[#allocation122_spill] sm:$0xff]  ;;  %v10648_v45 = vld [vmem:[#allocation72_spill] sm:$0xff] }
 0x330   :  { %6620 = vmatpush1.bf16.msra.mxu0 %v10638_v26  ;;  %6652 = vmatpush1.bf16.msra.mxu1 %v10639_v56  ;;  %v10649_v26 = vld [vmem:[#allocation123_spill] sm:$0xff]  ;;  %v10650_v56 = vld [vmem:[#allocation74_spill] sm:$0xff] }
 0x331   :  { %6622 = vmatprep.subr.bf16.mxu0 %v10640_v24  ;;  %6654 = vmatprep.subr.bf16.mxu1 %v10641_v62  ;;  %v10651_v24 = vld [vmem:[#allocation124_spill] sm:$0xff] }
 0x332   :  { %v10652_v62 = vld [vmem:[#allocation76_spill] sm:$0xff] }
 0x334   :  { %6624 = vmatpush1.bf16.msra.mxu0 %v10642_v47  ;;  %6656 = vmatpush1.bf16.msra.mxu1 %v10643_v58  ;;  %v10653_v47 = vld [vmem:[#allocation125_spill] sm:$0xff]  ;;  %v10654_v58 = vld [vmem:[#allocation78_spill] sm:$0xff] }
 0x335   :  { %6626 = vmatprep.subr.bf16.mxu0 %v10644_v48  ;;  %6658 = vmatprep.subr.bf16.mxu1 %v10645_v28  ;;  %v10655_v48 = vld [vmem:[#allocation126_spill] sm:$0xff]  ;;  %v10656_v28 = vld [vmem:[#allocation80_spill] sm:$0xff] }
 0x338   :  { %6628 = vmatpush1.bf16.msra.mxu0 %v10646_v42  ;;  %6660 = vmatpush1.bf16.msra.mxu1 %v10647_v6  ;;  %v10657_v42 = vld [vmem:[#allocation127_spill] sm:$0xff] }
 0x339   :  { %6630 = vmatprep.subr.bf16.mxu0 %v10648_v45  ;;  %6662 = vmatprep.subr.bf16.mxu1 %v10649_v26 }
 0x33c   :  { %6632 = vmatpush1.bf16.msra.mxu0 %v10650_v56  ;;  %6664 = vmatpush1.bf16.msra.mxu1 %v10651_v24 }
 0x33d   :  { %6634 = vmatprep.subr.bf16.mxu0 %v10652_v62  ;;  %6666 = vmatprep.subr.bf16.mxu1 %v10653_v47 }
 0x340   :  { %6636 = vmatpush1.bf16.msra.mxu0 %v10654_v58  ;;  %6668 = vmatpush1.bf16.msra.mxu1 %v10655_v48 }
 0x341   :  { %6670 = vmatprep.subr.bf16.mxu0 %v10656_v28  ;;  %6702 = vmatprep.subr.bf16.mxu1 %v10657_v42 }
 0x396   :  { %v1995_v6 = vpop.f32.mrb[8].mxu0  ;;  %v2066_v45 = vpop.f32.mrb[10].mxu1 }
 0x397   :  { %v7807_v26 = vadd.f32 %v1995_v6, %v10658_v41  ;;  %v1997_v23 = vpop.f32.mrb[9].mxu0  ;;  %v2068_v56 = vpop.f32.mrb[11].mxu1  ;;  %v7809_v48 = vadd.f32 %v2066_v45, %v10563_v20 }
 0x398   :  { %v7808_v24 = vadd.f32 %v1997_v23, %v10562_v5  ;;  %v7810_v58 = vadd.f32 %v2068_v56, %v8938_v51 }
 0x399   :  { %v5616_v7 = vmul.f32 -1.442695, %v7807_v26 }
 0x39a   :  { %v5617_v62 = vmul.f32 -1.442695, %v7808_v24  ;;  %v5618_v47 = vmul.f32 -1.442695, %v7810_v58 }
 0x39b   :  { %7991 = vpow2.f32 %v5616_v7 }
 0x39c   :  { %7993 = vpow2.f32 %v5617_v62 }
 0x39d   :  { %7995 = vpow2.f32 %v5618_v47 }
 0x39e   :  { %7997 = vtanh.f32 %v7809_v48 }
 0x3a5   :  { %v7992_v28 = vpop.eup %7991 }
 0x3a6   :  { %v7994_v18 = vpop.eup %7993  ;;  %v2224_v42 = vadd.f32 1.0, %v7992_v28 }
 0x3a7   :  { %v2230_v15 = vadd.f32 1.0, %v7994_v18  ;;  %v7996_v6 = vpop.eup %7995 }
 0x3a8   :  { %7999 = vrcp.f32 %v2224_v42  ;;  %v7998_v41 = vpop.eup %7997  ;;  %v2237_v7 = vadd.f32 1.0, %v7996_v6 }
 0x3a9   :  { %8001 = vrcp.f32 %v2230_v15 }
 0x3aa   :  { %8003 = vrcp.f32 %v2237_v7 }
 0x3b2   :  { %v8000_v23 = vpop.eup %7999 }
 0x3b3   :  { %v8002_v26 = vpop.eup %8001  ;;  %v2241_v24 = vmul.f32 %v8000_v23, %v7998_v41 }
 0x3b4   :  { %v2240_v62 = vmul.f32 %v8002_v26, %v9112_v25  ;;  %v8004_v25 = vpop.eup %8003 }
 0x3b6   :  { %v9280_v56 = vadd.f32 %v2241_v24, %v2240_v62  ;;  %v2141_v58 = vpop.f32.mrb[10].mxu0  ;;  %v2212_v45 = vpop.f32.mrb[12].mxu1 }
 0x3b7   :  { %v7811_v28 = vadd.f32 %v2141_v58, %v8947_v40  ;;  %v2143_v47 = vpop.f32.mrb[11].mxu0  ;;  %v2214_v48 = vpop.f32.mrb[13].mxu1  ;;  %v7813_v26 = vadd.f32 %v2212_v45, %v8954_v33 }
 0x3b8   :  { %v7812_v42 = vadd.f32 %v2143_v47, %v8945_v32  ;;  %8005 = vtanh.f32 %v9280_v56  ;;  %v7814_v41 = vadd.f32 %v2214_v48, %v8958_v17 }
 0x3b9   :  { %v5619_v15 = vmul.f32 -1.442695, %v7811_v28 }
 0x3ba   :  { %v5620_v18 = vmul.f32 -1.442695, %v7812_v42  ;;  %v5621_v23 = vmul.f32 -1.442695, %v7814_v41 }
 0x3bb   :  { %8007 = vpow2.f32 %v5619_v15 }
 0x3bc   :  { %8009 = vpow2.f32 %v5620_v18 }
 0x3bd   :  { %8011 = vpow2.f32 %v5621_v23 }
 0x3be   :  { %8013 = vtanh.f32 %v7813_v26  ;;  %v10661_v26 = vld [vmem:[#allocation20_spill] sm:$0xff] }
 0x3c2   :  { %v8006_v6 = vpop.eup %8005 }
 0x3c3   :  { %v9287_v24 = vmul.f32 %v8006_v6, %v8004_v25 }
 0x3c5   :  { %10659 = vst [vmem:[#allocation96_spill] sm:$0xff] %v9287_v24  ;;  %v8008_v7 = vpop.eup %8007  ;;  %2626 = vmatmul.mubr.f32.vlgmr.msra.gmra.mrb[12].mxu0 %v9287_v24  ;;  %2697 = vmatmul.mubr.f32.vlgmr.msra.gmra.mrb[14].mxu1 %v9287_v24  ;;  %v10676_v24 = vld [vmem:[#allocation69_spill] sm:$0xff] }
 0x3c6   :  { %v8010_v62 = vpop.eup %8009  ;;  %v2248_v58 = vadd.f32 1.0, %v8008_v7  ;;  %6672 = vmatpush1.bf16.msra.mxu0 %v10471_v34  ;;  %6704 = vmatpush1.bf16.msra.mxu1 %v8784_v16  ;;  %v10662_v7 = vld [vmem:[#allocation51_spill] sm:$0xff] }
 0x3c7   :  { %v2254_v28 = vadd.f32 1.0, %v8010_v62  ;;  %6674 = vmatprep.subr.bf16.mxu0 %v10472_v4  ;;  %6706 = vmatprep.subr.bf16.mxu1 %v8787_v53  ;;  %v8012_v45 = vpop.eup %8011  ;;  %v10663_v62 = vld [vmem:[#allocation22_spill] sm:$0xff] }
 0x3c8   :  { %8015 = vrcp.f32 %v2248_v58  ;;  %2771 = vmatprep.mubr.f32.mxu0 %v10377_v54  ;;  %2842 = vmatprep.mubr.f32.mxu1 %v10377_v54  ;;  %v8014_v47 = vpop.eup %8013  ;;  %v2261_v18 = vadd.f32 1.0, %v8012_v45  ;;  %v10664_v58 = vld [vmem:[#allocation24_spill] sm:$0xff]  ;;  %v10666_v45 = vld [vmem:[#allocation57_spill] sm:$0xff] }
 0x3c9   :  { %8017 = vrcp.f32 %v2254_v28  ;;  %v10665_v28 = vld [vmem:[#allocation26_spill] sm:$0xff] }
 0x3ca   :  { %6676 = vmatpush1.bf16.msra.mxu0 %v10473_v35  ;;  %6708 = vmatpush1.bf16.msra.mxu1 %v8793_v37  ;;  %8019 = vrcp.f32 %v2261_v18  ;;  %v10671_v18 = vld [vmem:[#allocation34_spill] sm:$0xff] }
 0x3cb   :  { %6678 = vmatprep.subr.bf16.mxu0 %v10565_v36  ;;  %6710 = vmatprep.subr.bf16.mxu1 %v10566_v52 }
 0x3ce   :  { %6680 = vmatpush1.bf16.msra.mxu0 %v10567_v14  ;;  %6712 = vmatpush1.bf16.msra.mxu1 %v10568_v10 }
 0x3cf   :  { %6682 = vmatprep.subr.bf16.mxu0 %v10569_v3  ;;  %6714 = vmatprep.subr.bf16.mxu1 %v10570_v30 }
 0x3d2   :  { %v8016_v48 = vpop.eup %8015  ;;  %6684 = vmatpush1.bf16.msra.mxu0 %v10480_v29  ;;  %6716 = vmatpush1.bf16.msra.mxu1 %v10481_v57 }
 0x3d3   :  { %v8018_v42 = vpop.eup %8017  ;;  %v2265_v15 = vmul.f32 %v8016_v48, %v8014_v47  ;;  %6686 = vmatprep.subr.bf16.mxu0 %v10482_v59  ;;  %6718 = vmatprep.subr.bf16.mxu1 %v10483_v39  ;;  %v10667_v47 = vld [vmem:[#allocation30_spill] sm:$0xff]  ;;  %v10668_v48 = vld [vmem:[#allocation61_spill] sm:$0xff] }
 0x3d4   :  { %v2264_v41 = vmul.f32 %v8018_v42, %v9142_v13  ;;  %v8020_v13 = vpop.eup %8019  ;;  %v10669_v42 = vld [vmem:[#allocation32_spill] sm:$0xff] }
 0x3d6   :  { %v9310_v25 = vadd.f32 %v2265_v15, %v2264_v41  ;;  %6688 = vmatpush1.bf16.msra.mxu0 %v10484_v46  ;;  %6720 = vmatpush1.bf16.msra.mxu1 %v10485_v63  ;;  %v10670_v15 = vld [vmem:[#allocation63_spill] sm:$0xff]  ;;  %v10672_v41 = vld [vmem:[#allocation65_spill] sm:$0xff] }
 0x3d7   :  { %6690 = vmatprep.subr.bf16.mxu0 %v10486_v27  ;;  %6722 = vmatprep.subr.bf16.mxu1 %v10571_v44 }
 0x3d8   :  { %8021 = vtanh.f32 %v9310_v25 }
 0x3da   :  { %6692 = vmatpush1.bf16.msra.mxu0 %v10487_v22  ;;  %6724 = vmatpush1.bf16.msra.mxu1 %v10572_v60 }
 0x3db   :  { %6694 = vmatprep.subr.bf16.mxu0 %v10488_v12  ;;  %6726 = vmatprep.subr.bf16.mxu1 %v8821_v38 }
 0x3de   :  { %6696 = vmatpush1.bf16.msra.mxu0 %v10489_v43  ;;  %6728 = vmatpush1.bf16.msra.mxu1 %v10573_v8 }
 0x3df   :  { %6698 = vmatprep.subr.bf16.mxu0 %v10490_v21  ;;  %6730 = vmatprep.subr.bf16.mxu1 %v10574_v9 }
 0x3e2   :  { %v8022_v6 = vpop.eup %8021  ;;  %6700 = vmatpush1.bf16.msra.mxu0 %v10491_v19  ;;  %6732 = vmatpush1.bf16.msra.mxu1 %v8830_v50 }
 0x3e3   :  { %v9327_v23 = vmul.f32 %v8022_v6, %v8020_v13  ;;  %6734 = vmatprep.subr.bf16.mxu0 %v10493_v61  ;;  %6766 = vmatprep.subr.bf16.mxu1 %v8508_v55  ;;  %v10673_v13 = vld [vmem:[#allocation36_spill] sm:$0xff]  ;;  %v10674_v6 = vld [vmem:[#allocation67_spill] sm:$0xff] }
 0x3e5   :  { %10660 = vst [vmem:[#allocation132_spill] sm:$0xff] %v9327_v23  ;;  %2772 = vmatmul.mubr.f32.vlgmr.msra.gmra.mrb[14].mxu0 %v9327_v23  ;;  %2843 = vmatmul.mubr.f32.vlgmr.msra.gmra.mrb[16].mxu1 %v9327_v23  ;;  %v10675_v23 = vld [vmem:[#allocation38_spill] sm:$0xff] }
 0x3e6   :  { %6736 = vmatpush1.bf16.msra.mxu0 %v10494_v49  ;;  %6768 = vmatpush1.bf16.msra.mxu1 %v10576_v2 }
 0x3e7   :  { %6738 = vmatprep.subr.bf16.mxu0 %v10661_v26  ;;  %6770 = vmatprep.subr.bf16.mxu1 %v10662_v7 }
 0x3e8   :  { %2971 = vmatprep.mubr.f32.mxu0 %v10377_v54  ;;  %3042 = vmatprep.mubr.f32.mxu1 %v10377_v54 }
 0x3ea   :  { %6740 = vmatpush1.bf16.msra.mxu0 %v10663_v62  ;;  %6772 = vmatpush1.bf16.msra.mxu1 %v10579_v31 }
 0x3eb   :  { %6742 = vmatprep.subr.bf16.mxu0 %v10664_v58  ;;  %6774 = vmatprep.subr.bf16.mxu1 %v10580_v0 }
 0x3ee   :  { %6744 = vmatpush1.bf16.msra.mxu0 %v10665_v28  ;;  %6776 = vmatpush1.bf16.msra.mxu1 %v10666_v45 }
 0x3ef   :  { %6746 = vmatprep.subr.bf16.mxu0 %v10499_v11  ;;  %6778 = vmatprep.subr.bf16.mxu1 %v10582_v1  ;;  %v10677_v1 = vld [vmem:[#allocation40_spill] sm:$0xff]  ;;  %v10753_v11 = vld [vmem:[#allocation138_spill] sm:$0xff] }
 0x3f2   :  { %6748 = vmatpush1.bf16.msra.mxu0 %v10667_v47  ;;  %6780 = vmatpush1.bf16.msra.mxu1 %v10668_v48  ;;  %v10678_v47 = vld [vmem:[#allocation71_spill] sm:$0xff]  ;;  %v10679_v48 = vld [vmem:[#allocation42_spill] sm:$0xff] }
 0x3f3   :  { %6750 = vmatprep.subr.bf16.mxu0 %v10669_v42  ;;  %6782 = vmatprep.subr.bf16.mxu1 %v10670_v15  ;;  %v10680_v42 = vld [vmem:[#allocation73_spill] sm:$0xff]  ;;  %v10681_v15 = vld [vmem:[#allocation44_spill] sm:$0xff] }
 0x3f6   :  { %6752 = vmatpush1.bf16.msra.mxu0 %v10671_v18  ;;  %6784 = vmatpush1.bf16.msra.mxu1 %v10672_v41  ;;  %v10682_v18 = vld [vmem:[#allocation75_spill] sm:$0xff]  ;;  %v10683_v41 = vld [vmem:[#allocation46_spill] sm:$0xff] }
 0x3f7   :  { %6754 = vmatprep.subr.bf16.mxu0 %v10673_v13  ;;  %6786 = vmatprep.subr.bf16.mxu1 %v10674_v6  ;;  %v10684_v13 = vld [vmem:[#allocation77_spill] sm:$0xff] }
 0x3f8   :  { %v10685_v6 = vld [vmem:[#allocation17_spill] sm:$0xff] }
 0x3fa   :  { %6756 = vmatpush1.bf16.msra.mxu0 %v10675_v23  ;;  %6788 = vmatpush1.bf16.msra.mxu1 %v10676_v24  ;;  %v10686_v23 = vld [vmem:[#allocation79_spill] sm:$0xff] }
 0x3fb   :  { %6758 = vmatprep.subr.bf16.mxu0 %v10677_v1  ;;  %6790 = vmatprep.subr.bf16.mxu1 %v10678_v47  ;;  %v10687_v24 = vld [vmem:[#allocation131_spill] sm:$0xff]  ;;  %v10702_v1 = vld [vmem:[#allocation33_spill] sm:$0xff] }
 0x3fc   :  { %v10688_v47 = vld [vmem:[#allocation19_spill] sm:$0xff] }
 0x3fe   :  { %6760 = vmatpush1.bf16.msra.mxu0 %v10679_v48  ;;  %6792 = vmatpush1.bf16.msra.mxu1 %v10680_v42  ;;  %v10689_v48 = vld [vmem:[#allocation81_spill] sm:$0xff] }
 0x3ff   :  { %6762 = vmatprep.subr.bf16.mxu0 %v10681_v15  ;;  %6794 = vmatprep.subr.bf16.mxu1 %v10682_v18  ;;  %v10690_v42 = vld [vmem:[#allocation21_spill] sm:$0xff]  ;;  %v10691_v15 = vld [vmem:[#allocation83_spill] sm:$0xff] }
 0x400   :  { %v10701_v18 = vld [vmem:[#allocation93_spill] sm:$0xff] }
 0x402   :  { %6764 = vmatpush1.bf16.msra.mxu0 %v10683_v41  ;;  %6796 = vmatpush1.bf16.msra.mxu1 %v10684_v13  ;;  %v10692_v13 = vld [vmem:[#allocation23_spill] sm:$0xff] }
 0x403   :  { %6798 = vmatprep.subr.bf16.mxu0 %v10685_v6  ;;  %6830 = vmatprep.subr.bf16.mxu1 %v10686_v23  ;;  %v10693_v6 = vld [vmem:[#allocation85_spill] sm:$0xff]  ;;  %v10695_v41 = vld [vmem:[#allocation87_spill] sm:$0xff] }
 0x404   :  { %v10694_v23 = vld [vmem:[#allocation25_spill] sm:$0xff] }
 0x405   :  { %2972 = vmatmul.mubr.f32.vlgmr.msra.gmra.mrb[16].mxu0 %v10687_v24  ;;  %3043 = vmatmul.mubr.f32.vlgmr.msra.gmra.mrb[18].mxu1 %v10687_v24  ;;  %v10696_v24 = vld [vmem:[#allocation27_spill] sm:$0xff] }
 0x406   :  { %6800 = vmatpush1.bf16.msra.mxu0 %v10688_v47  ;;  %6832 = vmatpush1.bf16.msra.mxu1 %v10689_v48  ;;  %v10697_v47 = vld [vmem:[#allocation89_spill] sm:$0xff] }
 0x407   :  { %6802 = vmatprep.subr.bf16.mxu0 %v10690_v42  ;;  %6834 = vmatprep.subr.bf16.mxu1 %v10691_v15  ;;  %v10698_v48 = vld [vmem:[#allocation29_spill] sm:$0xff]  ;;  %v10699_v42 = vld [vmem:[#allocation91_spill] sm:$0xff] }
 0x408   :  { %3113 = vmatprep.mubr.f32.mxu0 %v10377_v54  ;;  %3184 = vmatprep.mubr.f32.mxu1 %v10377_v54  ;;  %v10700_v15 = vld [vmem:[#allocation31_spill] sm:$0xff] }
 0x40a   :  { %6804 = vmatpush1.bf16.msra.mxu0 %v10692_v13  ;;  %6836 = vmatpush1.bf16.msra.mxu1 %v10693_v6  ;;  %v10703_v13 = vld [vmem:[#allocation95_spill] sm:$0xff] }
 0x40b   :  { %6806 = vmatprep.subr.bf16.mxu0 %v10694_v23  ;;  %6838 = vmatprep.subr.bf16.mxu1 %v10695_v41  ;;  %v10704_v6 = vld [vmem:[#allocation35_spill] sm:$0xff]  ;;  %v10705_v23 = vld [vmem:[#allocation97_spill] sm:$0xff] }
 0x40c   :  { %v10706_v41 = vld [vmem:[#allocation37_spill] sm:$0xff] }
 0x40e   :  { %6808 = vmatpush1.bf16.msra.mxu0 %v10696_v24  ;;  %6840 = vmatpush1.bf16.msra.mxu1 %v10697_v47  ;;  %v10707_v24 = vld [vmem:[#allocation99_spill] sm:$0xff] }
 0x40f   :  { %6810 = vmatprep.subr.bf16.mxu0 %v10698_v48  ;;  %6842 = vmatprep.subr.bf16.mxu1 %v10699_v42  ;;  %v10708_v47 = vld [vmem:[#allocation39_spill] sm:$0xff]  ;;  %v10709_v48 = vld [vmem:[#allocation101_spill] sm:$0xff] }
 0x410   :  { %v10710_v42 = vld [vmem:[#allocation41_spill] sm:$0xff] }
 0x412   :  { %6812 = vmatpush1.bf16.msra.mxu0 %v10700_v15  ;;  %6844 = vmatpush1.bf16.msra.mxu1 %v10701_v18  ;;  %v10711_v15 = vld [vmem:[#allocation103_spill] sm:$0xff] }
 0x413   :  { %6814 = vmatprep.subr.bf16.mxu0 %v10702_v1  ;;  %6846 = vmatprep.subr.bf16.mxu1 %v10703_v13  ;;  %v10712_v18 = vld [vmem:[#allocation43_spill] sm:$0xff]  ;;  %v10713_v1 = vld [vmem:[#allocation105_spill] sm:$0xff] }
 0x414   :  { %v10714_v13 = vld [vmem:[#allocation45_spill] sm:$0xff] }
 0x416   :  { %6816 = vmatpush1.bf16.msra.mxu0 %v10704_v6  ;;  %6848 = vmatpush1.bf16.msra.mxu1 %v10705_v23  ;;  %v10715_v6 = vld [vmem:[#allocation107_spill] sm:$0xff] }
 0x417   :  { %6818 = vmatprep.subr.bf16.mxu0 %v10706_v41  ;;  %6850 = vmatprep.subr.bf16.mxu1 %v10707_v24  ;;  %v10716_v23 = vld [vmem:[#allocation47_spill] sm:$0xff]  ;;  %v10717_v41 = vld [vmem:[#allocation109_spill] sm:$0xff]  ;;  %v10718_v24 = vld [vmem:[#allocation48_spill] sm:$0xff] }
 0x41a   :  { %6820 = vmatpush1.bf16.msra.mxu0 %v10708_v47  ;;  %6852 = vmatpush1.bf16.msra.mxu1 %v10709_v48  ;;  %v10719_v47 = vld [vmem:[#allocation111_spill] sm:$0xff]  ;;  %v10720_v48 = vld [vmem:[#allocation94_spill] sm:$0xff] }
 0x41b   :  { %6822 = vmatprep.subr.bf16.mxu0 %v10710_v42  ;;  %6854 = vmatprep.subr.bf16.mxu1 %v10711_v15  ;;  %v10721_v15 = vld [vmem:[#allocation50_spill] sm:$0xff]  ;;  %v10735_v42 = vld [vmem:[#allocation64_spill] sm:$0xff] }
 0x41e   :  { %6824 = vmatpush1.bf16.msra.mxu0 %v10712_v18  ;;  %6856 = vmatpush1.bf16.msra.mxu1 %v10713_v1  ;;  %v10722_v18 = vld [vmem:[#allocation112_spill] sm:$0xff] }
 0x41f   :  { %6826 = vmatprep.subr.bf16.mxu0 %v10714_v13  ;;  %6858 = vmatprep.subr.bf16.mxu1 %v10715_v6  ;;  %v10723_v1 = vld [vmem:[#allocation52_spill] sm:$0xff]  ;;  %v10724_v13 = vld [vmem:[#allocation113_spill] sm:$0xff]  ;;  %v10734_v6 = vld [vmem:[#allocation118_spill] sm:$0xff] }
 0x422   :  { %6828 = vmatpush1.bf16.msra.mxu0 %v10716_v23  ;;  %6860 = vmatpush1.bf16.msra.mxu1 %v10717_v41  ;;  %v10725_v41 = vld [vmem:[#allocation54_spill] sm:$0xff]  ;;  %v10728_v23 = vld [vmem:[#allocation115_spill] sm:$0xff] }
 0x423   :  { %6862 = vmatprep.subr.bf16.mxu0 %v10718_v24  ;;  %6894 = vmatprep.subr.bf16.mxu1 %v10719_v47  ;;  %v10726_v24 = vld [vmem:[#allocation114_spill] sm:$0xff]  ;;  %v10727_v47 = vld [vmem:[#allocation56_spill] sm:$0xff] }
 0x425   :  { %3114 = vmatmul.mubr.f32.vlgmr.msra.gmra.mrb[18].mxu0 %v10720_v48  ;;  %3185 = vmatmul.mubr.f32.vlgmr.msra.gmra.mrb[20].mxu1 %v10720_v48  ;;  %v10729_v48 = vld [vmem:[#allocation58_spill] sm:$0xff] }
 0x426   :  { %6864 = vmatpush1.bf16.msra.mxu0 %v10721_v15  ;;  %6896 = vmatpush1.bf16.msra.mxu1 %v10722_v18  ;;  %v10730_v15 = vld [vmem:[#allocation116_spill] sm:$0xff] }
 0x427   :  { %6866 = vmatprep.subr.bf16.mxu0 %v10723_v1  ;;  %6898 = vmatprep.subr.bf16.mxu1 %v10724_v13  ;;  %v10731_v18 = vld [vmem:[#allocation60_spill] sm:$0xff]  ;;  %v10732_v1 = vld [vmem:[#allocation117_spill] sm:$0xff]  ;;  %v10733_v13 = vld [vmem:[#allocation62_spill] sm:$0xff] }
 0x428   :  { %3255 = vmatprep.mubr.f32.mxu0 %v10377_v54  ;;  %3326 = vmatprep.mubr.f32.mxu1 %v10377_v54 }
 0x42a   :  { %6868 = vmatpush1.bf16.msra.mxu0 %v10725_v41  ;;  %6900 = vmatpush1.bf16.msra.mxu1 %v10726_v24  ;;  %v10736_v41 = vld [vmem:[#allocation119_spill] sm:$0xff]  ;;  %v10737_v24 = vld [vmem:[#allocation66_spill] sm:$0xff] }
 0x42b   :  { %6870 = vmatprep.subr.bf16.mxu0 %v10727_v47  ;;  %6902 = vmatprep.subr.bf16.mxu1 %v10728_v23  ;;  %v10738_v47 = vld [vmem:[#allocation120_spill] sm:$0xff] }
 0x42c   :  { %v10739_v23 = vld [vmem:[#allocation68_spill] sm:$0xff] }
 0x42e   :  { %6872 = vmatpush1.bf16.msra.mxu0 %v10729_v48  ;;  %6904 = vmatpush1.bf16.msra.mxu1 %v10730_v15  ;;  %v10740_v48 = vld [vmem:[#allocation121_spill] sm:$0xff]  ;;  %v10741_v15 = vld [vmem:[#allocation70_spill] sm:$0xff] }
 0x42f   :  { %6874 = vmatprep.subr.bf16.mxu0 %v10731_v18  ;;  %6906 = vmatprep.subr.bf16.mxu1 %v10732_v1  ;;  %v10742_v18 = vld [vmem:[#allocation122_spill] sm:$0xff]  ;;  %v10743_v1 = vld [vmem:[#allocation72_spill] sm:$0xff] }
 0x432   :  { %6876 = vmatpush1.bf16.msra.mxu0 %v10733_v13  ;;  %6908 = vmatpush1.bf16.msra.mxu1 %v10734_v6  ;;  %v10744_v13 = vld [vmem:[#allocation123_spill] sm:$0xff]  ;;  %v10745_v6 = vld [vmem:[#allocation74_spill] sm:$0xff] }
 0x433   :  { %6878 = vmatprep.subr.bf16.mxu0 %v10735_v42  ;;  %6910 = vmatprep.subr.bf16.mxu1 %v10736_v41  ;;  %v10746_v42 = vld [vmem:[#allocation124_spill] sm:$0xff] }
 0x434   :  { %v10747_v41 = vld [vmem:[#allocation76_spill] sm:$0xff] }
 0x436   :  { %6880 = vmatpush1.bf16.msra.mxu0 %v10737_v24  ;;  %6912 = vmatpush1.bf16.msra.mxu1 %v10738_v47  ;;  %v10748_v24 = vld [vmem:[#allocation125_spill] sm:$0xff]  ;;  %v10749_v47 = vld [vmem:[#allocation78_spill] sm:$0xff] }
 0x437   :  { %6882 = vmatprep.subr.bf16.mxu0 %v10739_v23  ;;  %6914 = vmatprep.subr.bf16.mxu1 %v10740_v48  ;;  %v10750_v23 = vld [vmem:[#allocation126_spill] sm:$0xff]  ;;  %v10751_v48 = vld [vmem:[#allocation80_spill] sm:$0xff] }
 0x43a   :  { %6884 = vmatpush1.bf16.msra.mxu0 %v10741_v15  ;;  %6916 = vmatpush1.bf16.msra.mxu1 %v10742_v18  ;;  %v10752_v15 = vld [vmem:[#allocation127_spill] sm:$0xff] }
 0x43b   :  { %6886 = vmatprep.subr.bf16.mxu0 %v10743_v1  ;;  %6918 = vmatprep.subr.bf16.mxu1 %v10744_v13 }
 0x43e   :  { %6888 = vmatpush1.bf16.msra.mxu0 %v10745_v6  ;;  %6920 = vmatpush1.bf16.msra.mxu1 %v10746_v42 }
 0x43f   :  { %6890 = vmatprep.subr.bf16.mxu0 %v10747_v41  ;;  %6922 = vmatprep.subr.bf16.mxu1 %v10748_v24 }
 0x442   :  { %6892 = vmatpush1.bf16.msra.mxu0 %v10749_v47  ;;  %6924 = vmatpush1.bf16.msra.mxu1 %v10750_v23 }
 0x443   :  { %6926 = vmatprep.subr.bf16.mxu0 %v10751_v48  ;;  %6958 = vmatprep.subr.bf16.mxu1 %v10752_v15 }
 0x498   :  { %v2627_v18 = vpop.f32.mrb[12].mxu0  ;;  %v2698_v1 = vpop.f32.mrb[14].mxu1 }
 0x499   :  { %v7815_v13 = vadd.f32 %v2627_v18, %v10753_v11  ;;  %v2629_v45 = vpop.f32.mrb[13].mxu0  ;;  %v2700_v6 = vpop.f32.mrb[15].mxu1  ;;  %v7817_v23 = vadd.f32 %v2698_v1, %v10563_v20 }
 0x49a   :  { %v7816_v42 = vadd.f32 %v2629_v45, %v10562_v5  ;;  %v7818_v47 = vadd.f32 %v2700_v6, %v8938_v51 }
 0x49b   :  { %v5622_v28 = vmul.f32 -1.442695, %v7815_v13 }
 0x49c   :  { %v5623_v41 = vmul.f32 -1.442695, %v7816_v42  ;;  %v5624_v24 = vmul.f32 -1.442695, %v7818_v47 }
 0x49d   :  { %8023 = vpow2.f32 %v5622_v28 }
 0x49e   :  { %8025 = vpow2.f32 %v5623_v41 }
 0x49f   :  { %8027 = vpow2.f32 %v5624_v24 }
 0x4a0   :  { %8029 = vtanh.f32 %v7817_v23 }
 0x4a7   :  { %v8024_v48 = vpop.eup %8023 }
 0x4a8   :  { %v8026_v0 = vpop.eup %8025  ;;  %v2856_v15 = vadd.f32 1.0, %v8024_v48 }
 0x4a9   :  { %v2862_v58 = vadd.f32 1.0, %v8026_v0  ;;  %v8028_v18 = vpop.eup %8027 }
 0x4aa   :  { %8031 = vrcp.f32 %v2856_v15  ;;  %v8030_v11 = vpop.eup %8029  ;;  %v2869_v28 = vadd.f32 1.0, %v8028_v18 }
 0x4ab   :  { %8033 = vrcp.f32 %v2862_v58 }
 0x4ac   :  { %8035 = vrcp.f32 %v2869_v28 }
 0x4b4   :  { %v8032_v45 = vpop.eup %8031 }
 0x4b5   :  { %v8034_v13 = vpop.eup %8033  ;;  %v2873_v42 = vmul.f32 %v8032_v45, %v8030_v11 }
 0x4b6   :  { %v2872_v41 = vmul.f32 %v8034_v13, %v9280_v56  ;;  %v8036_v56 = vpop.eup %8035 }
 0x4b8   :  { %v9444_v6 = vadd.f32 %v2873_v42, %v2872_v41  ;;  %v2773_v47 = vpop.f32.mrb[14].mxu0  ;;  %v2844_v1 = vpop.f32.mrb[16].mxu1 }
 0x4b9   :  { %v7819_v48 = vadd.f32 %v2773_v47, %v8947_v40  ;;  %v2775_v24 = vpop.f32.mrb[15].mxu0  ;;  %v2846_v23 = vpop.f32.mrb[17].mxu1  ;;  %v7821_v13 = vadd.f32 %v2844_v1, %v8954_v33 }
 0x4ba   :  { %v7820_v0 = vadd.f32 %v2775_v24, %v8945_v32  ;;  %8037 = vtanh.f32 %v9444_v6  ;;  %v7822_v11 = vadd.f32 %v2846_v23, %v8958_v17 }
 0x4bb   :  { %v5625_v58 = vmul.f32 -1.442695, %v7819_v48 }
 0x4bc   :  { %v5626_v15 = vmul.f32 -1.442695, %v7820_v0  ;;  %v5627_v45 = vmul.f32 -1.442695, %v7822_v11 }
 0x4bd   :  { %8039 = vpow2.f32 %v5625_v58 }
 0x4be   :  { %8041 = vpow2.f32 %v5626_v15 }
 0x4bf   :  { %8043 = vpow2.f32 %v5627_v45 }
 0x4c0   :  { %8045 = vtanh.f32 %v7821_v13  ;;  %v10756_v13 = vld [vmem:[#allocation24_spill] sm:$0xff] }
 0x4c4   :  { %v8038_v18 = vpop.eup %8037 }
 0x4c5   :  { %v9451_v42 = vmul.f32 %v8038_v18, %v8036_v56 }
 0x4c7   :  { %10754 = vst [vmem:[#allocation98_spill] sm:$0xff] %v9451_v42  ;;  %v8040_v28 = vpop.eup %8039  ;;  %3256 = vmatmul.mubr.f32.vlgmr.msra.gmra.mrb[16].mxu0 %v9451_v42  ;;  %3327 = vmatmul.mubr.f32.vlgmr.msra.gmra.mrb[18].mxu1 %v9451_v42  ;;  %v10771_v42 = vld [vmem:[#allocation69_spill] sm:$0xff] }
 0x4c8   :  { %v8042_v41 = vpop.eup %8041  ;;  %v2880_v47 = vadd.f32 1.0, %v8040_v28  ;;  %6928 = vmatpush1.bf16.msra.mxu0 %v10471_v34  ;;  %6960 = vmatpush1.bf16.msra.mxu1 %v8784_v16  ;;  %v10757_v28 = vld [vmem:[#allocation55_spill] sm:$0xff] }
 0x4c9   :  { %v2886_v48 = vadd.f32 1.0, %v8042_v41  ;;  %6930 = vmatprep.subr.bf16.mxu0 %v10472_v4  ;;  %6962 = vmatprep.subr.bf16.mxu1 %v8787_v53  ;;  %v8044_v1 = vpop.eup %8043  ;;  %v10758_v41 = vld [vmem:[#allocation26_spill] sm:$0xff] }
 0x4ca   :  { %8047 = vrcp.f32 %v2880_v47  ;;  %3401 = vmatprep.mubr.f32.mxu0 %v10377_v54  ;;  %3472 = vmatprep.mubr.f32.mxu1 %v10377_v54  ;;  %v8046_v24 = vpop.eup %8045  ;;  %v2893_v15 = vadd.f32 1.0, %v8044_v1  ;;  %v10759_v47 = vld [vmem:[#allocation57_spill] sm:$0xff]  ;;  %v10761_v1 = vld [vmem:[#allocation59_spill] sm:$0xff] }
 0x4cb   :  { %8049 = vrcp.f32 %v2886_v48  ;;  %v10760_v48 = vld [vmem:[#allocation28_spill] sm:$0xff] }
 0x4cc   :  { %6932 = vmatpush1.bf16.msra.mxu0 %v10473_v35  ;;  %6964 = vmatpush1.bf16.msra.mxu1 %v8793_v37  ;;  %8051 = vrcp.f32 %v2893_v15  ;;  %v10766_v15 = vld [vmem:[#allocation34_spill] sm:$0xff] }
 0x4cd   :  { %6934 = vmatprep.subr.bf16.mxu0 %v10565_v36  ;;  %6966 = vmatprep.subr.bf16.mxu1 %v10566_v52 }
 0x4d0   :  { %6936 = vmatpush1.bf16.msra.mxu0 %v10567_v14  ;;  %6968 = vmatpush1.bf16.msra.mxu1 %v10568_v10 }
 0x4d1   :  { %6938 = vmatprep.subr.bf16.mxu0 %v10569_v3  ;;  %6970 = vmatprep.subr.bf16.mxu1 %v10570_v30 }
 0x4d4   :  { %v8048_v23 = vpop.eup %8047  ;;  %6940 = vmatpush1.bf16.msra.mxu0 %v10480_v29  ;;  %6972 = vmatpush1.bf16.msra.mxu1 %v10481_v57 }
 0x4d5   :  { %v8050_v0 = vpop.eup %8049  ;;  %v2897_v58 = vmul.f32 %v8048_v23, %v8046_v24  ;;  %6942 = vmatprep.subr.bf16.mxu0 %v10482_v59  ;;  %6974 = vmatprep.subr.bf16.mxu1 %v10483_v39  ;;  %v10762_v24 = vld [vmem:[#allocation30_spill] sm:$0xff]  ;;  %v10763_v23 = vld [vmem:[#allocation61_spill] sm:$0xff] }
 0x4d6   :  { %v2896_v11 = vmul.f32 %v8050_v0, %v9310_v25  ;;  %v8052_v25 = vpop.eup %8051  ;;  %v10764_v0 = vld [vmem:[#allocation32_spill] sm:$0xff] }
 0x4d8   :  { %v9474_v56 = vadd.f32 %v2897_v58, %v2896_v11  ;;  %6944 = vmatpush1.bf16.msra.mxu0 %v10484_v46  ;;  %6976 = vmatpush1.bf16.msra.mxu1 %v10485_v63  ;;  %v10765_v58 = vld [vmem:[#allocation63_spill] sm:$0xff]  ;;  %v10767_v11 = vld [vmem:[#allocation65_spill] sm:$0xff] }
 0x4d9   :  { %6946 = vmatprep.subr.bf16.mxu0 %v10486_v27  ;;  %6978 = vmatprep.subr.bf16.mxu1 %v10571_v44 }
 0x4da   :  { %8053 = vtanh.f32 %v9474_v56 }
 0x4dc   :  { %6948 = vmatpush1.bf16.msra.mxu0 %v10487_v22  ;;  %6980 = vmatpush1.bf16.msra.mxu1 %v10572_v60 }
 0x4dd   :  { %6950 = vmatprep.subr.bf16.mxu0 %v10488_v12  ;;  %6982 = vmatprep.subr.bf16.mxu1 %v8821_v38 }
 0x4e0   :  { %6952 = vmatpush1.bf16.msra.mxu0 %v10489_v43  ;;  %6984 = vmatpush1.bf16.msra.mxu1 %v10573_v8 }
 0x4e1   :  { %6954 = vmatprep.subr.bf16.mxu0 %v10490_v21  ;;  %6986 = vmatprep.subr.bf16.mxu1 %v10574_v9 }
 0x4e4   :  { %v8054_v18 = vpop.eup %8053  ;;  %6956 = vmatpush1.bf16.msra.mxu0 %v10491_v19  ;;  %6988 = vmatpush1.bf16.msra.mxu1 %v8830_v50 }
 0x4e5   :  { %v9491_v45 = vmul.f32 %v8054_v18, %v8052_v25  ;;  %6990 = vmatprep.subr.bf16.mxu0 %v10493_v61  ;;  %7022 = vmatprep.subr.bf16.mxu1 %v8508_v55  ;;  %v10768_v25 = vld [vmem:[#allocation36_spill] sm:$0xff]  ;;  %v10769_v18 = vld [vmem:[#allocation67_spill] sm:$0xff] }
 0x4e7   :  { %10755 = vst [vmem:[#allocation133_spill] sm:$0xff] %v9491_v45  ;;  %3402 = vmatmul.mubr.f32.vlgmr.msra.gmra.mrb[18].mxu0 %v9491_v45  ;;  %3473 = vmatmul.mubr.f32.vlgmr.msra.gmra.mrb[20].mxu1 %v9491_v45  ;;  %v10770_v45 = vld [vmem:[#allocation38_spill] sm:$0xff] }
 0x4e8   :  { %6992 = vmatpush1.bf16.msra.mxu0 %v10494_v49  ;;  %7024 = vmatpush1.bf16.msra.mxu1 %v10576_v2 }
 0x4e9   :  { %6994 = vmatprep.subr.bf16.mxu0 %v10661_v26  ;;  %7026 = vmatprep.subr.bf16.mxu1 %v10662_v7 }
 0x4ea   :  { %3599 = vmatprep.mubr.f32.mxu0 %v10377_v54  ;;  %3670 = vmatprep.mubr.f32.mxu1 %v10377_v54 }
 0x4ec   :  { %6996 = vmatpush1.bf16.msra.mxu0 %v10663_v62  ;;  %7028 = vmatpush1.bf16.msra.mxu1 %v10579_v31 }
 0x4ed   :  { %6998 = vmatprep.subr.bf16.mxu0 %v10756_v13  ;;  %7030 = vmatprep.subr.bf16.mxu1 %v10757_v28 }
 0x4f0   :  { %7000 = vmatpush1.bf16.msra.mxu0 %v10758_v41  ;;  %7032 = vmatpush1.bf16.msra.mxu1 %v10759_v47 }
 0x4f1   :  { %7002 = vmatprep.subr.bf16.mxu0 %v10760_v48  ;;  %7034 = vmatprep.subr.bf16.mxu1 %v10761_v1  ;;  %v10772_v1 = vld [vmem:[#allocation40_spill] sm:$0xff]  ;;  %v10846_v48 = vld [vmem:[#allocation138_spill] sm:$0xff] }
 0x4f4   :  { %7004 = vmatpush1.bf16.msra.mxu0 %v10762_v24  ;;  %7036 = vmatpush1.bf16.msra.mxu1 %v10763_v23  ;;  %v10773_v24 = vld [vmem:[#allocation71_spill] sm:$0xff]  ;;  %v10774_v23 = vld [vmem:[#allocation42_spill] sm:$0xff] }
 0x4f5   :  { %7006 = vmatprep.subr.bf16.mxu0 %v10764_v0  ;;  %7038 = vmatprep.subr.bf16.mxu1 %v10765_v58  ;;  %v10775_v0 = vld [vmem:[#allocation73_spill] sm:$0xff]  ;;  %v10776_v58 = vld [vmem:[#allocation44_spill] sm:$0xff] }
 0x4f8   :  { %7008 = vmatpush1.bf16.msra.mxu0 %v10766_v15  ;;  %7040 = vmatpush1.bf16.msra.mxu1 %v10767_v11  ;;  %v10777_v15 = vld [vmem:[#allocation75_spill] sm:$0xff]  ;;  %v10778_v11 = vld [vmem:[#allocation46_spill] sm:$0xff] }
 0x4f9   :  { %7010 = vmatprep.subr.bf16.mxu0 %v10768_v25  ;;  %7042 = vmatprep.subr.bf16.mxu1 %v10769_v18  ;;  %v10779_v25 = vld [vmem:[#allocation77_spill] sm:$0xff] }
 0x4fa   :  { %v3533_v18 = vld [vmem:[#allocation3 + $0x28] sm:$0xff] }
 0x4fc   :  { %7012 = vmatpush1.bf16.msra.mxu0 %v10770_v45  ;;  %7044 = vmatpush1.bf16.msra.mxu1 %v10771_v42  ;;  %v10780_v45 = vld [vmem:[#allocation17_spill] sm:$0xff]  ;;  %v10781_v42 = vld [vmem:[#allocation79_spill] sm:$0xff] }
 0x4fd   :  { %7014 = vmatprep.subr.bf16.mxu0 %v10772_v1  ;;  %7046 = vmatprep.subr.bf16.mxu1 %v10773_v24  ;;  %v10782_v24 = vld [vmem:[#allocation19_spill] sm:$0xff]  ;;  %v10796_v1 = vld [vmem:[#allocation33_spill] sm:$0xff] }
 0x500   :  { %7016 = vmatpush1.bf16.msra.mxu0 %v10774_v23  ;;  %7048 = vmatpush1.bf16.msra.mxu1 %v10775_v0  ;;  %v10783_v23 = vld [vmem:[#allocation81_spill] sm:$0xff] }
 0x501   :  { %7018 = vmatprep.subr.bf16.mxu0 %v10776_v58  ;;  %7050 = vmatprep.subr.bf16.mxu1 %v10777_v15  ;;  %v10784_v0 = vld [vmem:[#allocation21_spill] sm:$0xff]  ;;  %v10785_v58 = vld [vmem:[#allocation83_spill] sm:$0xff] }
 0x502   :  { %v10795_v15 = vld [vmem:[#allocation93_spill] sm:$0xff] }
 0x504   :  { %7020 = vmatpush1.bf16.msra.mxu0 %v10778_v11  ;;  %7052 = vmatpush1.bf16.msra.mxu1 %v10779_v25  ;;  %v10786_v25 = vld [vmem:[#allocation23_spill] sm:$0xff]  ;;  %v10787_v11 = vld [vmem:[#allocation85_spill] sm:$0xff] }
 0x505   :  { %7054 = vmatprep.subr.bf16.mxu0 %v10780_v45  ;;  %7086 = vmatprep.subr.bf16.mxu1 %v10781_v42  ;;  %v10788_v45 = vld [vmem:[#allocation25_spill] sm:$0xff]  ;;  %v10789_v42 = vld [vmem:[#allocation87_spill] sm:$0xff] }
 0x507   :  { %3600 = vmatmul.mubr.f32.vlgmr.msra.gmra.mrb[20].mxu0 %v3533_v18  ;;  %3671 = vmatmul.mubr.f32.vlgmr.msra.gmra.mrb[22].mxu1 %v3533_v18  ;;  %v10790_v18 = vld [vmem:[#allocation27_spill] sm:$0xff] }
 0x508   :  { %7056 = vmatpush1.bf16.msra.mxu0 %v10782_v24  ;;  %7088 = vmatpush1.bf16.msra.mxu1 %v10783_v23  ;;  %v10791_v24 = vld [vmem:[#allocation89_spill] sm:$0xff] }
 0x509   :  { %7058 = vmatprep.subr.bf16.mxu0 %v10784_v0  ;;  %7090 = vmatprep.subr.bf16.mxu1 %v10785_v58  ;;  %v10792_v23 = vld [vmem:[#allocation29_spill] sm:$0xff]  ;;  %v10793_v0 = vld [vmem:[#allocation91_spill] sm:$0xff] }
 0x50a   :  { %3741 = vmatprep.mubr.f32.mxu0 %v10377_v54  ;;  %3812 = vmatprep.mubr.f32.mxu1 %v10377_v54  ;;  %v10794_v58 = vld [vmem:[#allocation31_spill] sm:$0xff] }
 0x50c   :  { %7060 = vmatpush1.bf16.msra.mxu0 %v10786_v25  ;;  %7092 = vmatpush1.bf16.msra.mxu1 %v10787_v11  ;;  %v10797_v25 = vld [vmem:[#allocation95_spill] sm:$0xff] }
 0x50d   :  { %7062 = vmatprep.subr.bf16.mxu0 %v10788_v45  ;;  %7094 = vmatprep.subr.bf16.mxu1 %v10789_v42  ;;  %v10798_v11 = vld [vmem:[#allocation35_spill] sm:$0xff]  ;;  %v10799_v45 = vld [vmem:[#allocation97_spill] sm:$0xff] }
 0x50e   :  { %v10800_v42 = vld [vmem:[#allocation37_spill] sm:$0xff] }
 0x510   :  { %7064 = vmatpush1.bf16.msra.mxu0 %v10790_v18  ;;  %7096 = vmatpush1.bf16.msra.mxu1 %v10791_v24  ;;  %v10801_v18 = vld [vmem:[#allocation99_spill] sm:$0xff] }
 0x511   :  { %7066 = vmatprep.subr.bf16.mxu0 %v10792_v23  ;;  %7098 = vmatprep.subr.bf16.mxu1 %v10793_v0  ;;  %v10802_v24 = vld [vmem:[#allocation39_spill] sm:$0xff]  ;;  %v10803_v23 = vld [vmem:[#allocation101_spill] sm:$0xff] }
 0x512   :  { %v10804_v0 = vld [vmem:[#allocation41_spill] sm:$0xff] }
 0x514   :  { %7068 = vmatpush1.bf16.msra.mxu0 %v10794_v58  ;;  %7100 = vmatpush1.bf16.msra.mxu1 %v10795_v15  ;;  %v10805_v58 = vld [vmem:[#allocation103_spill] sm:$0xff] }
 0x515   :  { %7070 = vmatprep.subr.bf16.mxu0 %v10796_v1  ;;  %7102 = vmatprep.subr.bf16.mxu1 %v10797_v25  ;;  %v10806_v15 = vld [vmem:[#allocation43_spill] sm:$0xff]  ;;  %v10807_v1 = vld [vmem:[#allocation105_spill] sm:$0xff] }
 0x516   :  { %v10808_v25 = vld [vmem:[#allocation45_spill] sm:$0xff] }
 0x518   :  { %7072 = vmatpush1.bf16.msra.mxu0 %v10798_v11  ;;  %7104 = vmatpush1.bf16.msra.mxu1 %v10799_v45  ;;  %v10809_v11 = vld [vmem:[#allocation107_spill] sm:$0xff] }
 0x519   :  { %7074 = vmatprep.subr.bf16.mxu0 %v10800_v42  ;;  %7106 = vmatprep.subr.bf16.mxu1 %v10801_v18  ;;  %v10810_v45 = vld [vmem:[#allocation47_spill] sm:$0xff]  ;;  %v10811_v42 = vld [vmem:[#allocation109_spill] sm:$0xff]  ;;  %v10812_v18 = vld [vmem:[#allocation48_spill] sm:$0xff] }
 0x51c   :  { %7076 = vmatpush1.bf16.msra.mxu0 %v10802_v24  ;;  %7108 = vmatpush1.bf16.msra.mxu1 %v10803_v23  ;;  %v10813_v24 = vld [vmem:[#allocation111_spill] sm:$0xff]  ;;  %v3534_v23 = vld [vmem:[#allocation3 + $0x10] sm:$0xff] }
 0x51d   :  { %7078 = vmatprep.subr.bf16.mxu0 %v10804_v0  ;;  %7110 = vmatprep.subr.bf16.mxu1 %v10805_v58  ;;  %v10814_v58 = vld [vmem:[#allocation50_spill] sm:$0xff]  ;;  %v10828_v0 = vld [vmem:[#allocation64_spill] sm:$0xff] }
 0x520   :  { %7080 = vmatpush1.bf16.msra.mxu0 %v10806_v15  ;;  %7112 = vmatpush1.bf16.msra.mxu1 %v10807_v1  ;;  %v10815_v15 = vld [vmem:[#allocation112_spill] sm:$0xff] }
 0x521   :  { %7082 = vmatprep.subr.bf16.mxu0 %v10808_v25  ;;  %7114 = vmatprep.subr.bf16.mxu1 %v10809_v11  ;;  %v10816_v1 = vld [vmem:[#allocation52_spill] sm:$0xff]  ;;  %v10817_v25 = vld [vmem:[#allocation113_spill] sm:$0xff]  ;;  %v10827_v11 = vld [vmem:[#allocation118_spill] sm:$0xff] }
 0x524   :  { %7084 = vmatpush1.bf16.msra.mxu0 %v10810_v45  ;;  %7116 = vmatpush1.bf16.msra.mxu1 %v10811_v42  ;;  %v10818_v42 = vld [vmem:[#allocation54_spill] sm:$0xff]  ;;  %v10821_v45 = vld [vmem:[#allocation115_spill] sm:$0xff] }
 0x525   :  { %7118 = vmatprep.subr.bf16.mxu0 %v10812_v18  ;;  %7150 = vmatprep.subr.bf16.mxu1 %v10813_v24  ;;  %v10819_v18 = vld [vmem:[#allocation114_spill] sm:$0xff]  ;;  %v10820_v24 = vld [vmem:[#allocation56_spill] sm:$0xff] }
 0x527   :  { %3742 = vmatmul.mubr.f32.vlgmr.msra.gmra.mrb[22].mxu0 %v3534_v23  ;;  %3813 = vmatmul.mubr.f32.vlgmr.msra.gmra.mrb[24].mxu1 %v3534_v23  ;;  %v10822_v23 = vld [vmem:[#allocation58_spill] sm:$0xff] }
 0x528   :  { %7120 = vmatpush1.bf16.msra.mxu0 %v10814_v58  ;;  %7152 = vmatpush1.bf16.msra.mxu1 %v10815_v15  ;;  %v10823_v58 = vld [vmem:[#allocation116_spill] sm:$0xff] }
 0x529   :  { %7122 = vmatprep.subr.bf16.mxu0 %v10816_v1  ;;  %7154 = vmatprep.subr.bf16.mxu1 %v10817_v25  ;;  %v10824_v15 = vld [vmem:[#allocation60_spill] sm:$0xff]  ;;  %v10825_v1 = vld [vmem:[#allocation117_spill] sm:$0xff]  ;;  %v10826_v25 = vld [vmem:[#allocation62_spill] sm:$0xff] }
 0x52a   :  { %3883 = vmatprep.mubr.f32.mxu0 %v10377_v54  ;;  %3954 = vmatprep.mubr.f32.mxu1 %v10377_v54 }
 0x52c   :  { %7124 = vmatpush1.bf16.msra.mxu0 %v10818_v42  ;;  %7156 = vmatpush1.bf16.msra.mxu1 %v10819_v18  ;;  %v10829_v42 = vld [vmem:[#allocation119_spill] sm:$0xff]  ;;  %v10830_v18 = vld [vmem:[#allocation66_spill] sm:$0xff] }
 0x52d   :  { %7126 = vmatprep.subr.bf16.mxu0 %v10820_v24  ;;  %7158 = vmatprep.subr.bf16.mxu1 %v10821_v45  ;;  %v10831_v24 = vld [vmem:[#allocation120_spill] sm:$0xff] }
 0x52e   :  { %v10832_v45 = vld [vmem:[#allocation68_spill] sm:$0xff] }
 0x530   :  { %7128 = vmatpush1.bf16.msra.mxu0 %v10822_v23  ;;  %7160 = vmatpush1.bf16.msra.mxu1 %v10823_v58  ;;  %v10833_v23 = vld [vmem:[#allocation121_spill] sm:$0xff]  ;;  %v10834_v58 = vld [vmem:[#allocation70_spill] sm:$0xff] }
 0x531   :  { %7130 = vmatprep.subr.bf16.mxu0 %v10824_v15  ;;  %7162 = vmatprep.subr.bf16.mxu1 %v10825_v1  ;;  %v10835_v15 = vld [vmem:[#allocation122_spill] sm:$0xff]  ;;  %v10836_v1 = vld [vmem:[#allocation72_spill] sm:$0xff] }
 0x534   :  { %7132 = vmatpush1.bf16.msra.mxu0 %v10826_v25  ;;  %7164 = vmatpush1.bf16.msra.mxu1 %v10827_v11  ;;  %v10837_v25 = vld [vmem:[#allocation123_spill] sm:$0xff]  ;;  %v10838_v11 = vld [vmem:[#allocation74_spill] sm:$0xff] }
 0x535   :  { %7134 = vmatprep.subr.bf16.mxu0 %v10828_v0  ;;  %7166 = vmatprep.subr.bf16.mxu1 %v10829_v42  ;;  %v10839_v0 = vld [vmem:[#allocation124_spill] sm:$0xff] }
 0x536   :  { %v10840_v42 = vld [vmem:[#allocation76_spill] sm:$0xff] }
 0x538   :  { %7136 = vmatpush1.bf16.msra.mxu0 %v10830_v18  ;;  %7168 = vmatpush1.bf16.msra.mxu1 %v10831_v24  ;;  %v10841_v18 = vld [vmem:[#allocation125_spill] sm:$0xff]  ;;  %v10842_v24 = vld [vmem:[#allocation78_spill] sm:$0xff] }
 0x539   :  { %7138 = vmatprep.subr.bf16.mxu0 %v10832_v45  ;;  %7170 = vmatprep.subr.bf16.mxu1 %v10833_v23  ;;  %v10843_v45 = vld [vmem:[#allocation126_spill] sm:$0xff]  ;;  %v10844_v23 = vld [vmem:[#allocation80_spill] sm:$0xff] }
 0x53c   :  { %7140 = vmatpush1.bf16.msra.mxu0 %v10834_v58  ;;  %7172 = vmatpush1.bf16.msra.mxu1 %v10835_v15  ;;  %v10845_v58 = vld [vmem:[#allocation127_spill] sm:$0xff] }
 0x53d   :  { %7142 = vmatprep.subr.bf16.mxu0 %v10836_v1  ;;  %7174 = vmatprep.subr.bf16.mxu1 %v10837_v25 }
 0x540   :  { %7144 = vmatpush1.bf16.msra.mxu0 %v10838_v11  ;;  %7176 = vmatpush1.bf16.msra.mxu1 %v10839_v0 }
 0x541   :  { %7146 = vmatprep.subr.bf16.mxu0 %v10840_v42  ;;  %7178 = vmatprep.subr.bf16.mxu1 %v10841_v18 }
 0x544   :  { %7148 = vmatpush1.bf16.msra.mxu0 %v10842_v24  ;;  %7180 = vmatpush1.bf16.msra.mxu1 %v10843_v45 }
 0x545   :  { %7182 = vmatprep.subr.bf16.mxu0 %v10844_v23  ;;  %7214 = vmatprep.subr.bf16.mxu1 %v10845_v58 }
 0x59a   :  { %v3257_v15 = vpop.f32.mrb[16].mxu0  ;;  %v3328_v1 = vpop.f32.mrb[18].mxu1 }
 0x59b   :  { %v7823_v25 = vadd.f32 %v3257_v15, %v10846_v48  ;;  %v3259_v47 = vpop.f32.mrb[17].mxu0  ;;  %v3330_v11 = vpop.f32.mrb[19].mxu1  ;;  %v7825_v45 = vadd.f32 %v3328_v1, %v10563_v20 }
 0x59c   :  { %v7824_v0 = vadd.f32 %v3259_v47, %v10562_v5  ;;  %v7826_v24 = vadd.f32 %v3330_v11, %v8938_v51 }
 0x59d   :  { %v5628_v41 = vmul.f32 -1.442695, %v7823_v25 }
 0x59e   :  { %v5629_v42 = vmul.f32 -1.442695, %v7824_v0  ;;  %v5630_v18 = vmul.f32 -1.442695, %v7826_v24 }
 0x59f   :  { %8055 = vpow2.f32 %v5628_v41 }
 0x5a0   :  { %8057 = vpow2.f32 %v5629_v42 }
 0x5a1   :  { %8059 = vpow2.f32 %v5630_v18 }
 0x5a2   :  { %8061 = vtanh.f32 %v7825_v45 }
 0x5a9   :  { %v8056_v23 = vpop.eup %8055 }
 0x5aa   :  { %v8058_v28 = vpop.eup %8057  ;;  %v3486_v58 = vadd.f32 1.0, %v8056_v23 }
 0x5ab   :  { %v3492_v13 = vadd.f32 1.0, %v8058_v28  ;;  %v8060_v15 = vpop.eup %8059 }
 0x5ac   :  { %8063 = vrcp.f32 %v3486_v58  ;;  %v8062_v48 = vpop.eup %8061  ;;  %v3499_v41 = vadd.f32 1.0, %v8060_v15 }
 0x5ad   :  { %8065 = vrcp.f32 %v3492_v13 }
 0x5ae   :  { %8067 = vrcp.f32 %v3499_v41 }
 0x5b6   :  { %v8064_v47 = vpop.eup %8063 }
 0x5b7   :  { %v8066_v25 = vpop.eup %8065  ;;  %v3503_v0 = vmul.f32 %v8064_v47, %v8062_v48 }
 0x5b8   :  { %v3502_v42 = vmul.f32 %v8066_v25, %v9444_v6  ;;  %v8068_v6 = vpop.eup %8067 }
 0x5ba   :  { %v9604_v11 = vadd.f32 %v3503_v0, %v3502_v42  ;;  %v3403_v24 = vpop.f32.mrb[18].mxu0  ;;  %v3474_v1 = vpop.f32.mrb[20].mxu1 }
 0x5bb   :  { %v7827_v23 = vadd.f32 %v3403_v24, %v8947_v40  ;;  %v3405_v18 = vpop.f32.mrb[19].mxu0  ;;  %v3476_v45 = vpop.f32.mrb[21].mxu1  ;;  %v7829_v25 = vadd.f32 %v3474_v1, %v8954_v33 }
 0x5bc   :  { %v7828_v28 = vadd.f32 %v3405_v18, %v8945_v32  ;;  %8069 = vtanh.f32 %v9604_v11  ;;  %v7830_v48 = vadd.f32 %v3476_v45, %v8958_v17 }
 0x5bd   :  { %v5631_v13 = vmul.f32 -1.442695, %v7827_v23 }
 0x5be   :  { %v5632_v58 = vmul.f32 -1.442695, %v7828_v28  ;;  %v5633_v47 = vmul.f32 -1.442695, %v7830_v48 }
 0x5bf   :  { %8071 = vpow2.f32 %v5631_v13 }
 0x5c0   :  { %8073 = vpow2.f32 %v5632_v58 }
 0x5c1   :  { %8075 = vpow2.f32 %v5633_v47 }
 0x5c2   :  { %8077 = vtanh.f32 %v7829_v25  ;;  %v10849_v25 = vld [vmem:[#allocation24_spill] sm:$0xff] }
 0x5c6   :  { %v8070_v15 = vpop.eup %8069 }
 0x5c7   :  { %v9611_v0 = vmul.f32 %v8070_v15, %v8068_v6 }
 0x5c9   :  { %10847 = vst [vmem:[#allocation100_spill] sm:$0xff] %v9611_v0  ;;  %v8072_v41 = vpop.eup %8071  ;;  %3884 = vmatmul.mubr.f32.vlgmr.msra.gmra.mrb[20].mxu0 %v9611_v0  ;;  %3955 = vmatmul.mubr.f32.vlgmr.msra.gmra.mrb[22].mxu1 %v9611_v0  ;;  %v10863_v0 = vld [vmem:[#allocation38_spill] sm:$0xff] }
 0x5ca   :  { %v8074_v42 = vpop.eup %8073  ;;  %v3510_v24 = vadd.f32 1.0, %v8072_v41  ;;  %7184 = vmatpush1.bf16.msra.mxu0 %v10471_v34  ;;  %7216 = vmatpush1.bf16.msra.mxu1 %v8784_v16  ;;  %v10850_v41 = vld [vmem:[#allocation55_spill] sm:$0xff] }
 0x5cb   :  { %v3516_v23 = vadd.f32 1.0, %v8074_v42  ;;  %7186 = vmatprep.subr.bf16.mxu0 %v10472_v4  ;;  %7218 = vmatprep.subr.bf16.mxu1 %v8787_v53  ;;  %v8076_v1 = vpop.eup %8075  ;;  %v10851_v42 = vld [vmem:[#allocation26_spill] sm:$0xff] }
 0x5cc   :  { %8079 = vrcp.f32 %v3510_v24  ;;  %4029 = vmatprep.mubr.f32.mxu0 %v10377_v54  ;;  %4100 = vmatprep.mubr.f32.mxu1 %v10377_v54  ;;  %v8078_v18 = vpop.eup %8077  ;;  %v3523_v58 = vadd.f32 1.0, %v8076_v1  ;;  %v10852_v24 = vld [vmem:[#allocation57_spill] sm:$0xff]  ;;  %v10854_v1 = vld [vmem:[#allocation59_spill] sm:$0xff] }
 0x5cd   :  { %8081 = vrcp.f32 %v3516_v23  ;;  %v10853_v23 = vld [vmem:[#allocation28_spill] sm:$0xff] }
 0x5ce   :  { %7188 = vmatpush1.bf16.msra.mxu0 %v10473_v35  ;;  %7220 = vmatpush1.bf16.msra.mxu1 %v8793_v37  ;;  %8083 = vrcp.f32 %v3523_v58  ;;  %v10859_v58 = vld [vmem:[#allocation34_spill] sm:$0xff] }
 0x5cf   :  { %7190 = vmatprep.subr.bf16.mxu0 %v10565_v36  ;;  %7222 = vmatprep.subr.bf16.mxu1 %v10566_v52 }
 0x5d2   :  { %7192 = vmatpush1.bf16.msra.mxu0 %v10567_v14  ;;  %7224 = vmatpush1.bf16.msra.mxu1 %v10568_v10 }
 0x5d3   :  { %7194 = vmatprep.subr.bf16.mxu0 %v10569_v3  ;;  %7226 = vmatprep.subr.bf16.mxu1 %v10570_v30 }
 0x5d6   :  { %v8080_v45 = vpop.eup %8079  ;;  %7196 = vmatpush1.bf16.msra.mxu0 %v10480_v29  ;;  %7228 = vmatpush1.bf16.msra.mxu1 %v10481_v57 }
 0x5d7   :  { %v8082_v28 = vpop.eup %8081  ;;  %v3527_v13 = vmul.f32 %v8080_v45, %v8078_v18  ;;  %7198 = vmatprep.subr.bf16.mxu0 %v10482_v59  ;;  %7230 = vmatprep.subr.bf16.mxu1 %v10483_v39  ;;  %v10855_v18 = vld [vmem:[#allocation30_spill] sm:$0xff]  ;;  %v10856_v45 = vld [vmem:[#allocation61_spill] sm:$0xff] }
 0x5d8   :  { %v3526_v48 = vmul.f32 %v8082_v28, %v9474_v56  ;;  %v8084_v56 = vpop.eup %8083  ;;  %v10857_v28 = vld [vmem:[#allocation32_spill] sm:$0xff] }
 0x5da   :  { %v9634_v6 = vadd.f32 %v3527_v13, %v3526_v48  ;;  %7200 = vmatpush1.bf16.msra.mxu0 %v10484_v46  ;;  %7232 = vmatpush1.bf16.msra.mxu1 %v10485_v63  ;;  %v10858_v13 = vld [vmem:[#allocation63_spill] sm:$0xff]  ;;  %v10860_v48 = vld [vmem:[#allocation65_spill] sm:$0xff] }
 0x5db   :  { %7202 = vmatprep.subr.bf16.mxu0 %v10486_v27  ;;  %7234 = vmatprep.subr.bf16.mxu1 %v10571_v44 }
 0x5dc   :  { %8085 = vtanh.f32 %v9634_v6 }
 0x5de   :  { %7204 = vmatpush1.bf16.msra.mxu0 %v10487_v22  ;;  %7236 = vmatpush1.bf16.msra.mxu1 %v10572_v60 }
 0x5df   :  { %7206 = vmatprep.subr.bf16.mxu0 %v10488_v12  ;;  %7238 = vmatprep.subr.bf16.mxu1 %v8821_v38 }
 0x5e2   :  { %7208 = vmatpush1.bf16.msra.mxu0 %v10489_v43  ;;  %7240 = vmatpush1.bf16.msra.mxu1 %v10573_v8 }
 0x5e3   :  { %7210 = vmatprep.subr.bf16.mxu0 %v10490_v21  ;;  %7242 = vmatprep.subr.bf16.mxu1 %v10574_v9 }
 0x5e6   :  { %v8086_v15 = vpop.eup %8085  ;;  %7212 = vmatpush1.bf16.msra.mxu0 %v10491_v19  ;;  %7244 = vmatpush1.bf16.msra.mxu1 %v8830_v50 }
 0x5e7   :  { %v9651_v47 = vmul.f32 %v8086_v15, %v8084_v56  ;;  %7246 = vmatprep.subr.bf16.mxu0 %v10493_v61  ;;  %7278 = vmatprep.subr.bf16.mxu1 %v8508_v55  ;;  %v10861_v56 = vld [vmem:[#allocation36_spill] sm:$0xff]  ;;  %v10862_v15 = vld [vmem:[#allocation67_spill] sm:$0xff] }
 0x5e9   :  { %10848 = vst [vmem:[#allocation102_spill] sm:$0xff] %v9651_v47  ;;  %4030 = vmatmul.mubr.f32.vlgmr.msra.gmra.mrb[22].mxu0 %v9651_v47  ;;  %4101 = vmatmul.mubr.f32.vlgmr.msra.gmra.mrb[24].mxu1 %v9651_v47  ;;  %v10864_v47 = vld [vmem:[#allocation69_spill] sm:$0xff] }
 0x5ea   :  { %7248 = vmatpush1.bf16.msra.mxu0 %v10494_v49  ;;  %7280 = vmatpush1.bf16.msra.mxu1 %v10576_v2 }
 0x5eb   :  { %7250 = vmatprep.subr.bf16.mxu0 %v10661_v26  ;;  %7282 = vmatprep.subr.bf16.mxu1 %v10662_v7 }
 0x5ec   :  { %4227 = vmatprep.mubr.f32.mxu0 %v10377_v54  ;;  %4298 = vmatprep.mubr.f32.mxu1 %v10377_v54 }
 0x5ee   :  { %7252 = vmatpush1.bf16.msra.mxu0 %v10663_v62  ;;  %7284 = vmatpush1.bf16.msra.mxu1 %v10579_v31 }
 0x5ef   :  { %7254 = vmatprep.subr.bf16.mxu0 %v10849_v25  ;;  %7286 = vmatprep.subr.bf16.mxu1 %v10850_v41 }
 0x5f2   :  { %7256 = vmatpush1.bf16.msra.mxu0 %v10851_v42  ;;  %7288 = vmatpush1.bf16.msra.mxu1 %v10852_v24 }
 0x5f3   :  { %7258 = vmatprep.subr.bf16.mxu0 %v10853_v23  ;;  %7290 = vmatprep.subr.bf16.mxu1 %v10854_v1  ;;  %v10865_v1 = vld [vmem:[#allocation40_spill] sm:$0xff]  ;;  %v10939_v23 = vld [vmem:[#allocation138_spill] sm:$0xff] }
 0x5f6   :  { %7260 = vmatpush1.bf16.msra.mxu0 %v10855_v18  ;;  %7292 = vmatpush1.bf16.msra.mxu1 %v10856_v45  ;;  %v10866_v18 = vld [vmem:[#allocation71_spill] sm:$0xff]  ;;  %v10867_v45 = vld [vmem:[#allocation42_spill] sm:$0xff] }
 0x5f7   :  { %7262 = vmatprep.subr.bf16.mxu0 %v10857_v28  ;;  %7294 = vmatprep.subr.bf16.mxu1 %v10858_v13  ;;  %v10868_v28 = vld [vmem:[#allocation73_spill] sm:$0xff]  ;;  %v10869_v13 = vld [vmem:[#allocation44_spill] sm:$0xff] }
 0x5fa   :  { %7264 = vmatpush1.bf16.msra.mxu0 %v10859_v58  ;;  %7296 = vmatpush1.bf16.msra.mxu1 %v10860_v48  ;;  %v10870_v58 = vld [vmem:[#allocation75_spill] sm:$0xff]  ;;  %v10871_v48 = vld [vmem:[#allocation46_spill] sm:$0xff] }
 0x5fb   :  { %7266 = vmatprep.subr.bf16.mxu0 %v10861_v56  ;;  %7298 = vmatprep.subr.bf16.mxu1 %v10862_v15  ;;  %v10872_v56 = vld [vmem:[#allocation77_spill] sm:$0xff]  ;;  %v4161_v15 = vld [vmem:[#allocation3 + $0x30] sm:$0xff] }
 0x5fe   :  { %7268 = vmatpush1.bf16.msra.mxu0 %v10863_v0  ;;  %7300 = vmatpush1.bf16.msra.mxu1 %v10864_v47  ;;  %v10873_v0 = vld [vmem:[#allocation17_spill] sm:$0xff]  ;;  %v10874_v47 = vld [vmem:[#allocation79_spill] sm:$0xff] }
 0x5ff   :  { %7270 = vmatprep.subr.bf16.mxu0 %v10865_v1  ;;  %7302 = vmatprep.subr.bf16.mxu1 %v10866_v18  ;;  %v10875_v18 = vld [vmem:[#allocation19_spill] sm:$0xff]  ;;  %v10889_v1 = vld [vmem:[#allocation33_spill] sm:$0xff] }
 0x602   :  { %7272 = vmatpush1.bf16.msra.mxu0 %v10867_v45  ;;  %7304 = vmatpush1.bf16.msra.mxu1 %v10868_v28  ;;  %v10876_v45 = vld [vmem:[#allocation81_spill] sm:$0xff] }
 0x603   :  { %7274 = vmatprep.subr.bf16.mxu0 %v10869_v13  ;;  %7306 = vmatprep.subr.bf16.mxu1 %v10870_v58  ;;  %v10877_v28 = vld [vmem:[#allocation21_spill] sm:$0xff]  ;;  %v10878_v13 = vld [vmem:[#allocation83_spill] sm:$0xff] }
 0x604   :  { %v10888_v58 = vld [vmem:[#allocation93_spill] sm:$0xff] }
 0x606   :  { %7276 = vmatpush1.bf16.msra.mxu0 %v10871_v48  ;;  %7308 = vmatpush1.bf16.msra.mxu1 %v10872_v56  ;;  %v10879_v56 = vld [vmem:[#allocation23_spill] sm:$0xff]  ;;  %v10880_v48 = vld [vmem:[#allocation85_spill] sm:$0xff] }
 0x607   :  { %7310 = vmatprep.subr.bf16.mxu0 %v10873_v0  ;;  %7342 = vmatprep.subr.bf16.mxu1 %v10874_v47  ;;  %v10881_v0 = vld [vmem:[#allocation25_spill] sm:$0xff]  ;;  %v10882_v47 = vld [vmem:[#allocation87_spill] sm:$0xff] }
 0x609   :  { %4228 = vmatmul.mubr.f32.vlgmr.msra.gmra.mrb[24].mxu0 %v4161_v15  ;;  %4299 = vmatmul.mubr.f32.vlgmr.msra.gmra.mrb[26].mxu1 %v4161_v15  ;;  %v10883_v15 = vld [vmem:[#allocation27_spill] sm:$0xff] }
 0x60a   :  { %7312 = vmatpush1.bf16.msra.mxu0 %v10875_v18  ;;  %7344 = vmatpush1.bf16.msra.mxu1 %v10876_v45  ;;  %v10884_v18 = vld [vmem:[#allocation89_spill] sm:$0xff] }
 0x60b   :  { %7314 = vmatprep.subr.bf16.mxu0 %v10877_v28  ;;  %7346 = vmatprep.subr.bf16.mxu1 %v10878_v13  ;;  %v10885_v45 = vld [vmem:[#allocation29_spill] sm:$0xff]  ;;  %v10886_v28 = vld [vmem:[#allocation91_spill] sm:$0xff] }
 0x60c   :  { %4369 = vmatprep.mubr.f32.mxu0 %v10377_v54  ;;  %4440 = vmatprep.mubr.f32.mxu1 %v10377_v54  ;;  %v10887_v13 = vld [vmem:[#allocation31_spill] sm:$0xff] }
 0x60e   :  { %7316 = vmatpush1.bf16.msra.mxu0 %v10879_v56  ;;  %7348 = vmatpush1.bf16.msra.mxu1 %v10880_v48  ;;  %v10890_v56 = vld [vmem:[#allocation95_spill] sm:$0xff] }
 0x60f   :  { %7318 = vmatprep.subr.bf16.mxu0 %v10881_v0  ;;  %7350 = vmatprep.subr.bf16.mxu1 %v10882_v47  ;;  %v10891_v48 = vld [vmem:[#allocation35_spill] sm:$0xff]  ;;  %v10892_v0 = vld [vmem:[#allocation97_spill] sm:$0xff] }
 0x610   :  { %v10893_v47 = vld [vmem:[#allocation37_spill] sm:$0xff] }
 0x612   :  { %7320 = vmatpush1.bf16.msra.mxu0 %v10883_v15  ;;  %7352 = vmatpush1.bf16.msra.mxu1 %v10884_v18  ;;  %v10894_v15 = vld [vmem:[#allocation99_spill] sm:$0xff] }
 0x613   :  { %7322 = vmatprep.subr.bf16.mxu0 %v10885_v45  ;;  %7354 = vmatprep.subr.bf16.mxu1 %v10886_v28  ;;  %v10895_v18 = vld [vmem:[#allocation39_spill] sm:$0xff]  ;;  %v10896_v45 = vld [vmem:[#allocation101_spill] sm:$0xff] }
 0x614   :  { %v10897_v28 = vld [vmem:[#allocation41_spill] sm:$0xff] }
 0x616   :  { %7324 = vmatpush1.bf16.msra.mxu0 %v10887_v13  ;;  %7356 = vmatpush1.bf16.msra.mxu1 %v10888_v58  ;;  %v10898_v13 = vld [vmem:[#allocation103_spill] sm:$0xff] }
 0x617   :  { %7326 = vmatprep.subr.bf16.mxu0 %v10889_v1  ;;  %7358 = vmatprep.subr.bf16.mxu1 %v10890_v56  ;;  %v10899_v58 = vld [vmem:[#allocation43_spill] sm:$0xff]  ;;  %v10900_v1 = vld [vmem:[#allocation105_spill] sm:$0xff] }
 0x618   :  { %v10901_v56 = vld [vmem:[#allocation45_spill] sm:$0xff] }
 0x61a   :  { %7328 = vmatpush1.bf16.msra.mxu0 %v10891_v48  ;;  %7360 = vmatpush1.bf16.msra.mxu1 %v10892_v0  ;;  %v10902_v48 = vld [vmem:[#allocation107_spill] sm:$0xff] }
 0x61b   :  { %7330 = vmatprep.subr.bf16.mxu0 %v10893_v47  ;;  %7362 = vmatprep.subr.bf16.mxu1 %v10894_v15  ;;  %v10903_v0 = vld [vmem:[#allocation47_spill] sm:$0xff]  ;;  %v10904_v47 = vld [vmem:[#allocation109_spill] sm:$0xff]  ;;  %v10905_v15 = vld [vmem:[#allocation48_spill] sm:$0xff] }
 0x61e   :  { %7332 = vmatpush1.bf16.msra.mxu0 %v10895_v18  ;;  %7364 = vmatpush1.bf16.msra.mxu1 %v10896_v45  ;;  %v10906_v18 = vld [vmem:[#allocation111_spill] sm:$0xff]  ;;  %v4162_v45 = vld [vmem:[#allocation3 + $0x8] sm:$0xff] }
 0x61f   :  { %7334 = vmatprep.subr.bf16.mxu0 %v10897_v28  ;;  %7366 = vmatprep.subr.bf16.mxu1 %v10898_v13  ;;  %v10907_v13 = vld [vmem:[#allocation50_spill] sm:$0xff]  ;;  %v10921_v28 = vld [vmem:[#allocation64_spill] sm:$0xff] }
 0x622   :  { %7336 = vmatpush1.bf16.msra.mxu0 %v10899_v58  ;;  %7368 = vmatpush1.bf16.msra.mxu1 %v10900_v1  ;;  %v10908_v58 = vld [vmem:[#allocation112_spill] sm:$0xff] }
 0x623   :  { %7338 = vmatprep.subr.bf16.mxu0 %v10901_v56  ;;  %7370 = vmatprep.subr.bf16.mxu1 %v10902_v48  ;;  %v10909_v1 = vld [vmem:[#allocation52_spill] sm:$0xff]  ;;  %v10910_v56 = vld [vmem:[#allocation113_spill] sm:$0xff]  ;;  %v10920_v48 = vld [vmem:[#allocation118_spill] sm:$0xff] }
 0x626   :  { %7340 = vmatpush1.bf16.msra.mxu0 %v10903_v0  ;;  %7372 = vmatpush1.bf16.msra.mxu1 %v10904_v47  ;;  %v10911_v47 = vld [vmem:[#allocation54_spill] sm:$0xff]  ;;  %v10914_v0 = vld [vmem:[#allocation115_spill] sm:$0xff] }
 0x627   :  { %7374 = vmatprep.subr.bf16.mxu0 %v10905_v15  ;;  %7406 = vmatprep.subr.bf16.mxu1 %v10906_v18  ;;  %v10912_v15 = vld [vmem:[#allocation114_spill] sm:$0xff]  ;;  %v10913_v18 = vld [vmem:[#allocation56_spill] sm:$0xff] }
 0x629   :  { %4370 = vmatmul.mubr.f32.vlgmr.msra.gmra.mrb[26].mxu0 %v4162_v45  ;;  %4441 = vmatmul.mubr.f32.vlgmr.msra.gmra.mrb[28].mxu1 %v4162_v45  ;;  %v10915_v45 = vld [vmem:[#allocation58_spill] sm:$0xff] }
 0x62a   :  { %7376 = vmatpush1.bf16.msra.mxu0 %v10907_v13  ;;  %7408 = vmatpush1.bf16.msra.mxu1 %v10908_v58  ;;  %v10916_v13 = vld [vmem:[#allocation116_spill] sm:$0xff] }
 0x62b   :  { %7378 = vmatprep.subr.bf16.mxu0 %v10909_v1  ;;  %7410 = vmatprep.subr.bf16.mxu1 %v10910_v56  ;;  %v10917_v58 = vld [vmem:[#allocation60_spill] sm:$0xff]  ;;  %v10918_v1 = vld [vmem:[#allocation117_spill] sm:$0xff]  ;;  %v10919_v56 = vld [vmem:[#allocation62_spill] sm:$0xff] }
 0x62c   :  { %4511 = vmatprep.mubr.f32.mxu0 %v10377_v54  ;;  %4582 = vmatprep.mubr.f32.mxu1 %v10377_v54 }
 0x62e   :  { %7380 = vmatpush1.bf16.msra.mxu0 %v10911_v47  ;;  %7412 = vmatpush1.bf16.msra.mxu1 %v10912_v15  ;;  %v10922_v47 = vld [vmem:[#allocation119_spill] sm:$0xff]  ;;  %v10923_v15 = vld [vmem:[#allocation66_spill] sm:$0xff] }
 0x62f   :  { %7382 = vmatprep.subr.bf16.mxu0 %v10913_v18  ;;  %7414 = vmatprep.subr.bf16.mxu1 %v10914_v0  ;;  %v10924_v18 = vld [vmem:[#allocation120_spill] sm:$0xff] }
 0x630   :  { %v10925_v0 = vld [vmem:[#allocation68_spill] sm:$0xff] }
 0x632   :  { %7384 = vmatpush1.bf16.msra.mxu0 %v10915_v45  ;;  %7416 = vmatpush1.bf16.msra.mxu1 %v10916_v13  ;;  %v10926_v45 = vld [vmem:[#allocation121_spill] sm:$0xff]  ;;  %v10927_v13 = vld [vmem:[#allocation70_spill] sm:$0xff] }
 0x633   :  { %7386 = vmatprep.subr.bf16.mxu0 %v10917_v58  ;;  %7418 = vmatprep.subr.bf16.mxu1 %v10918_v1  ;;  %v10928_v58 = vld [vmem:[#allocation122_spill] sm:$0xff]  ;;  %v10929_v1 = vld [vmem:[#allocation72_spill] sm:$0xff] }
 0x636   :  { %7388 = vmatpush1.bf16.msra.mxu0 %v10919_v56  ;;  %7420 = vmatpush1.bf16.msra.mxu1 %v10920_v48  ;;  %v10930_v56 = vld [vmem:[#allocation123_spill] sm:$0xff]  ;;  %v10931_v48 = vld [vmem:[#allocation74_spill] sm:$0xff] }
 0x637   :  { %7390 = vmatprep.subr.bf16.mxu0 %v10921_v28  ;;  %7422 = vmatprep.subr.bf16.mxu1 %v10922_v47  ;;  %v10932_v28 = vld [vmem:[#allocation124_spill] sm:$0xff] }
 0x638   :  { %v10933_v47 = vld [vmem:[#allocation76_spill] sm:$0xff] }
 0x63a   :  { %7392 = vmatpush1.bf16.msra.mxu0 %v10923_v15  ;;  %7424 = vmatpush1.bf16.msra.mxu1 %v10924_v18  ;;  %v10934_v15 = vld [vmem:[#allocation125_spill] sm:$0xff]  ;;  %v10935_v18 = vld [vmem:[#allocation78_spill] sm:$0xff] }
 0x63b   :  { %7394 = vmatprep.subr.bf16.mxu0 %v10925_v0  ;;  %7426 = vmatprep.subr.bf16.mxu1 %v10926_v45  ;;  %v10936_v0 = vld [vmem:[#allocation126_spill] sm:$0xff]  ;;  %v10937_v45 = vld [vmem:[#allocation80_spill] sm:$0xff] }
 0x63e   :  { %7396 = vmatpush1.bf16.msra.mxu0 %v10927_v13  ;;  %7428 = vmatpush1.bf16.msra.mxu1 %v10928_v58  ;;  %v10938_v13 = vld [vmem:[#allocation127_spill] sm:$0xff] }
 0x63f   :  { %7398 = vmatprep.subr.bf16.mxu0 %v10929_v1  ;;  %7430 = vmatprep.subr.bf16.mxu1 %v10930_v56 }
 0x642   :  { %7400 = vmatpush1.bf16.msra.mxu0 %v10931_v48  ;;  %7432 = vmatpush1.bf16.msra.mxu1 %v10932_v28 }
 0x643   :  { %7402 = vmatprep.subr.bf16.mxu0 %v10933_v47  ;;  %7434 = vmatprep.subr.bf16.mxu1 %v10934_v15 }
 0x646   :  { %7404 = vmatpush1.bf16.msra.mxu0 %v10935_v18  ;;  %7436 = vmatpush1.bf16.msra.mxu1 %v10936_v0 }
 0x647   :  { %7438 = vmatprep.subr.bf16.mxu0 %v10937_v45  ;;  %7470 = vmatprep.subr.bf16.mxu1 %v10938_v13 }
 0x69c   :  { %v3885_v58 = vpop.f32.mrb[20].mxu0  ;;  %v3956_v1 = vpop.f32.mrb[22].mxu1 }
 0x69d   :  { %v7831_v56 = vadd.f32 %v3885_v58, %v10939_v23  ;;  %v3887_v24 = vpop.f32.mrb[21].mxu0  ;;  %v3958_v48 = vpop.f32.mrb[23].mxu1  ;;  %v7833_v0 = vadd.f32 %v3956_v1, %v10563_v20 }
 0x69e   :  { %v7832_v28 = vadd.f32 %v3887_v24, %v10562_v5  ;;  %v7834_v18 = vadd.f32 %v3958_v48, %v8938_v51 }
 0x69f   :  { %v5634_v42 = vmul.f32 -1.442695, %v7831_v56 }
 0x6a0   :  { %v5635_v47 = vmul.f32 -1.442695, %v7832_v28  ;;  %v5636_v15 = vmul.f32 -1.442695, %v7834_v18 }
 0x6a1   :  { %8087 = vpow2.f32 %v5634_v42 }
 0x6a2   :  { %8089 = vpow2.f32 %v5635_v47 }
 0x6a3   :  { %8091 = vpow2.f32 %v5636_v15 }
 0x6a4   :  { %8093 = vtanh.f32 %v7833_v0 }
 0x6ab   :  { %v8088_v45 = vpop.eup %8087 }
 0x6ac   :  { %v8090_v41 = vpop.eup %8089  ;;  %v4114_v13 = vadd.f32 1.0, %v8088_v45 }
 0x6ad   :  { %v4120_v25 = vadd.f32 1.0, %v8090_v41  ;;  %v8092_v58 = vpop.eup %8091 }
 0x6ae   :  { %8095 = vrcp.f32 %v4114_v13  ;;  %v8094_v23 = vpop.eup %8093  ;;  %v4127_v42 = vadd.f32 1.0, %v8092_v58 }
 0x6af   :  { %8097 = vrcp.f32 %v4120_v25 }
 0x6b0   :  { %8099 = vrcp.f32 %v4127_v42 }
 0x6b8   :  { %v8096_v24 = vpop.eup %8095 }
 0x6b9   :  { %v8098_v56 = vpop.eup %8097  ;;  %v4131_v28 = vmul.f32 %v8096_v24, %v8094_v23 }
 0x6ba   :  { %v4130_v47 = vmul.f32 %v8098_v56, %v9604_v11  ;;  %v8100_v11 = vpop.eup %8099 }
 0x6bc   :  { %v9764_v48 = vadd.f32 %v4131_v28, %v4130_v47  ;;  %v4031_v18 = vpop.f32.mrb[22].mxu0  ;;  %v4102_v1 = vpop.f32.mrb[24].mxu1 }
 0x6bd   :  { %v7835_v45 = vadd.f32 %v4031_v18, %v8947_v40  ;;  %v4033_v15 = vpop.f32.mrb[23].mxu0  ;;  %v4104_v0 = vpop.f32.mrb[25].mxu1  ;;  %v7837_v56 = vadd.f32 %v4102_v1, %v8954_v33 }
 0x6be   :  { %v7836_v41 = vadd.f32 %v4033_v15, %v8945_v32  ;;  %8101 = vtanh.f32 %v9764_v48  ;;  %v7838_v23 = vadd.f32 %v4104_v0, %v8958_v17 }
 0x6bf   :  { %v5637_v25 = vmul.f32 -1.442695, %v7835_v45 }
 0x6c0   :  { %v5638_v13 = vmul.f32 -1.442695, %v7836_v41  ;;  %v5639_v24 = vmul.f32 -1.442695, %v7838_v23 }
 0x6c1   :  { %8103 = vpow2.f32 %v5637_v25 }
 0x6c2   :  { %8105 = vpow2.f32 %v5638_v13 }
 0x6c3   :  { %8107 = vpow2.f32 %v5639_v24 }
 0x6c4   :  { %8109 = vtanh.f32 %v7837_v56  ;;  %v10942_v56 = vld [vmem:[#allocation26_spill] sm:$0xff] }
 0x6c8   :  { %v8102_v58 = vpop.eup %8101 }
 0x6c9   :  { %v9771_v28 = vmul.f32 %v8102_v58, %v8100_v11 }
 0x6cb   :  { %v8104_v42 = vpop.eup %8103  ;;  %4512 = vmatmul.mubr.f32.vlgmr.msra.gmra.mrb[24].mxu0 %v9771_v28  ;;  %4583 = vmatmul.mubr.f32.vlgmr.msra.gmra.mrb[26].mxu1 %v9771_v28 }
 0x6cc   :  { %v8106_v47 = vpop.eup %8105  ;;  %v4138_v18 = vadd.f32 1.0, %v8104_v42  ;;  %7440 = vmatpush1.bf16.msra.mxu0 %v10471_v34  ;;  %7472 = vmatpush1.bf16.msra.mxu1 %v8784_v16  ;;  %v10947_v42 = vld [vmem:[#allocation61_spill] sm:$0xff] }
 0x6cd   :  { %v4144_v45 = vadd.f32 1.0, %v8106_v47  ;;  %7442 = vmatprep.subr.bf16.mxu0 %v10472_v4  ;;  %7474 = vmatprep.subr.bf16.mxu1 %v8787_v53  ;;  %v8108_v1 = vpop.eup %8107  ;;  %v10948_v47 = vld [vmem:[#allocation32_spill] sm:$0xff] }
 0x6ce   :  { %8111 = vrcp.f32 %v4138_v18  ;;  %4657 = vmatprep.mubr.f32.mxu0 %v10377_v54  ;;  %4728 = vmatprep.mubr.f32.mxu1 %v10377_v54  ;;  %v8110_v15 = vpop.eup %8109  ;;  %v4151_v13 = vadd.f32 1.0, %v8108_v1  ;;  %v10951_v18 = vld [vmem:[#allocation65_spill] sm:$0xff]  ;;  %v10953_v1 = vld [vmem:[#allocation67_spill] sm:$0xff] }
 0x6cf   :  { %8113 = vrcp.f32 %v4144_v45  ;;  %v10952_v45 = vld [vmem:[#allocation36_spill] sm:$0xff] }
 0x6d0   :  { %7444 = vmatpush1.bf16.msra.mxu0 %v10473_v35  ;;  %7476 = vmatpush1.bf16.msra.mxu1 %v8793_v37  ;;  %8115 = vrcp.f32 %v4151_v13  ;;  %v10958_v13 = vld [vmem:[#allocation42_spill] sm:$0xff] }
 0x6d1   :  { %7446 = vmatprep.subr.bf16.mxu0 %v10565_v36  ;;  %7478 = vmatprep.subr.bf16.mxu1 %v10566_v52 }
 0x6d4   :  { %7448 = vmatpush1.bf16.msra.mxu0 %v10567_v14  ;;  %7480 = vmatpush1.bf16.msra.mxu1 %v10568_v10 }
 0x6d5   :  { %7450 = vmatprep.subr.bf16.mxu0 %v10569_v3  ;;  %7482 = vmatprep.subr.bf16.mxu1 %v10570_v30 }
 0x6d8   :  { %v8112_v0 = vpop.eup %8111  ;;  %7452 = vmatpush1.bf16.msra.mxu0 %v10480_v29  ;;  %7484 = vmatpush1.bf16.msra.mxu1 %v10481_v57 }
 0x6d9   :  { %v8114_v41 = vpop.eup %8113  ;;  %v4155_v25 = vmul.f32 %v8112_v0, %v8110_v15  ;;  %7454 = vmatprep.subr.bf16.mxu0 %v10482_v59  ;;  %7486 = vmatprep.subr.bf16.mxu1 %v10483_v39  ;;  %v10954_v15 = vld [vmem:[#allocation38_spill] sm:$0xff]  ;;  %v10955_v0 = vld [vmem:[#allocation69_spill] sm:$0xff] }
 0x6da   :  { %v4154_v23 = vmul.f32 %v8114_v41, %v9634_v6  ;;  %v8116_v6 = vpop.eup %8115  ;;  %v10956_v41 = vld [vmem:[#allocation40_spill] sm:$0xff] }
 0x6dc   :  { %v9794_v11 = vadd.f32 %v4155_v25, %v4154_v23  ;;  %7456 = vmatpush1.bf16.msra.mxu0 %v10484_v46  ;;  %7488 = vmatpush1.bf16.msra.mxu1 %v10485_v63  ;;  %v10957_v25 = vld [vmem:[#allocation71_spill] sm:$0xff]  ;;  %v10959_v23 = vld [vmem:[#allocation73_spill] sm:$0xff] }
 0x6dd   :  { %7458 = vmatprep.subr.bf16.mxu0 %v10486_v27  ;;  %7490 = vmatprep.subr.bf16.mxu1 %v10571_v44 }
 0x6de   :  { %8117 = vtanh.f32 %v9794_v11 }
 0x6e0   :  { %7460 = vmatpush1.bf16.msra.mxu0 %v10487_v22  ;;  %7492 = vmatpush1.bf16.msra.mxu1 %v10572_v60 }
 0x6e1   :  { %7462 = vmatprep.subr.bf16.mxu0 %v10488_v12  ;;  %7494 = vmatprep.subr.bf16.mxu1 %v8821_v38 }
 0x6e4   :  { %7464 = vmatpush1.bf16.msra.mxu0 %v10489_v43  ;;  %7496 = vmatpush1.bf16.msra.mxu1 %v10573_v8 }
 0x6e5   :  { %7466 = vmatprep.subr.bf16.mxu0 %v10490_v21  ;;  %7498 = vmatprep.subr.bf16.mxu1 %v10574_v9 }
 0x6e8   :  { %v8118_v58 = vpop.eup %8117  ;;  %7468 = vmatpush1.bf16.msra.mxu0 %v10491_v19  ;;  %7500 = vmatpush1.bf16.msra.mxu1 %v8830_v50 }
 0x6e9   :  { %v9811_v24 = vmul.f32 %v8118_v58, %v8116_v6  ;;  %7502 = vmatprep.subr.bf16.mxu0 %v10493_v61  ;;  %7534 = vmatprep.subr.bf16.mxu1 %v8508_v55  ;;  %v10940_v55 = vld [vmem:[#allocation24_spill] sm:$0xff]  ;;  %v10941_v61 = vld [vmem:[#allocation55_spill] sm:$0xff] }
 0x6ea   :  { %v10960_v6 = vld [vmem:[#allocation44_spill] sm:$0xff]  ;;  %v10961_v58 = vld [vmem:[#allocation75_spill] sm:$0xff] }
 0x6eb   :  { %4658 = vmatmul.mubr.f32.vlgmr.msra.gmra.mrb[26].mxu0 %v9811_v24  ;;  %4729 = vmatmul.mubr.f32.vlgmr.msra.gmra.mrb[28].mxu1 %v9811_v24 }
 0x6ec   :  { %7504 = vmatpush1.bf16.msra.mxu0 %v10494_v49  ;;  %7536 = vmatpush1.bf16.msra.mxu1 %v10576_v2  ;;  %v10943_v49 = vld [vmem:[#allocation57_spill] sm:$0xff]  ;;  %v10944_v2 = vld [vmem:[#allocation28_spill] sm:$0xff] }
 0x6ed   :  { %7506 = vmatprep.subr.bf16.mxu0 %v10661_v26  ;;  %7538 = vmatprep.subr.bf16.mxu1 %v10662_v7  ;;  %v10945_v26 = vld [vmem:[#allocation59_spill] sm:$0xff]  ;;  %v10946_v7 = vld [vmem:[#allocation30_spill] sm:$0xff] }
 0x6ee   :  { %4855 = vmatprep.mubr.f32.mxu0 %v10377_v54  ;;  %4926 = vmatprep.mubr.f32.mxu1 %v10377_v54 }
 0x6f0   :  { %7508 = vmatpush1.bf16.msra.mxu0 %v10663_v62  ;;  %7540 = vmatpush1.bf16.msra.mxu1 %v10579_v31  ;;  %v10949_v62 = vld [vmem:[#allocation63_spill] sm:$0xff]  ;;  %v10950_v31 = vld [vmem:[#allocation34_spill] sm:$0xff] }
 0x6f1   :  { %7510 = vmatprep.subr.bf16.mxu0 %v10940_v55  ;;  %7542 = vmatprep.subr.bf16.mxu1 %v10941_v61  ;;  %v10962_v55 = vld [vmem:[#allocation46_spill] sm:$0xff]  ;;  %v10963_v61 = vld [vmem:[#allocation77_spill] sm:$0xff] }
 0x6f4   :  { %7512 = vmatpush1.bf16.msra.mxu0 %v10942_v56  ;;  %7544 = vmatpush1.bf16.msra.mxu1 %v10943_v49  ;;  %v4789_v56 = vld [vmem:[#allocation3 + $0x38] sm:$0xff]  ;;  %v10964_v49 = vld [vmem:[#allocation17_spill] sm:$0xff] }
 0x6f5   :  { %7514 = vmatprep.subr.bf16.mxu0 %v10944_v2  ;;  %7546 = vmatprep.subr.bf16.mxu1 %v10945_v26  ;;  %v10965_v2 = vld [vmem:[#allocation79_spill] sm:$0xff] }
 0x6f6   :  { %v10966_v26 = vld [vmem:[#allocation19_spill] sm:$0xff] }
 0x6f8   :  { %7516 = vmatpush1.bf16.msra.mxu0 %v10946_v7  ;;  %7548 = vmatpush1.bf16.msra.mxu1 %v10947_v42  ;;  %v10967_v7 = vld [vmem:[#allocation81_spill] sm:$0xff] }
 0x6f9   :  { %7518 = vmatprep.subr.bf16.mxu0 %v10948_v47  ;;  %7550 = vmatprep.subr.bf16.mxu1 %v10949_v62  ;;  %v10968_v42 = vld [vmem:[#allocation21_spill] sm:$0xff]  ;;  %v10969_v47 = vld [vmem:[#allocation83_spill] sm:$0xff] }
 0x6fa   :  { %v10970_v62 = vld [vmem:[#allocation23_spill] sm:$0xff] }
 0x6fc   :  { %7520 = vmatpush1.bf16.msra.mxu0 %v10950_v31  ;;  %7552 = vmatpush1.bf16.msra.mxu1 %v10951_v18  ;;  %v10971_v31 = vld [vmem:[#allocation85_spill] sm:$0xff] }
 0x6fd   :  { %7522 = vmatprep.subr.bf16.mxu0 %v10952_v45  ;;  %7554 = vmatprep.subr.bf16.mxu1 %v10953_v1  ;;  %v10972_v18 = vld [vmem:[#allocation25_spill] sm:$0xff]  ;;  %v10973_v45 = vld [vmem:[#allocation87_spill] sm:$0xff] }
 0x6fe   :  { %v10974_v1 = vld [vmem:[#allocation27_spill] sm:$0xff] }
 0x700   :  { %7524 = vmatpush1.bf16.msra.mxu0 %v10954_v15  ;;  %7556 = vmatpush1.bf16.msra.mxu1 %v10955_v0  ;;  %v10975_v15 = vld [vmem:[#allocation89_spill] sm:$0xff] }
 0x701   :  { %7526 = vmatprep.subr.bf16.mxu0 %v10956_v41  ;;  %7558 = vmatprep.subr.bf16.mxu1 %v10957_v25  ;;  %v10976_v0 = vld [vmem:[#allocation29_spill] sm:$0xff]  ;;  %v10977_v41 = vld [vmem:[#allocation91_spill] sm:$0xff] }
 0x702   :  { %v10978_v25 = vld [vmem:[#allocation31_spill] sm:$0xff] }
 0x704   :  { %7528 = vmatpush1.bf16.msra.mxu0 %v10958_v13  ;;  %7560 = vmatpush1.bf16.msra.mxu1 %v10959_v23  ;;  %v10979_v13 = vld [vmem:[#allocation93_spill] sm:$0xff] }
 0x705   :  { %7530 = vmatprep.subr.bf16.mxu0 %v10960_v6  ;;  %7562 = vmatprep.subr.bf16.mxu1 %v10961_v58  ;;  %v10980_v23 = vld [vmem:[#allocation33_spill] sm:$0xff]  ;;  %v10981_v6 = vld [vmem:[#allocation95_spill] sm:$0xff] }
 0x706   :  { %v10982_v58 = vld [vmem:[#allocation35_spill] sm:$0xff] }
 0x708   :  { %7532 = vmatpush1.bf16.msra.mxu0 %v10962_v55  ;;  %7564 = vmatpush1.bf16.msra.mxu1 %v10963_v61  ;;  %v10983_v55 = vld [vmem:[#allocation97_spill] sm:$0xff] }
 0x709   :  { %7566 = vmatprep.subr.bf16.mxu0 %v10964_v49  ;;  %7598 = vmatprep.subr.bf16.mxu1 %v10965_v2  ;;  %v10984_v61 = vld [vmem:[#allocation37_spill] sm:$0xff]  ;;  %v10986_v49 = vld [vmem:[#allocation39_spill] sm:$0xff] }
 0x70a   :  { %v10987_v2 = vld [vmem:[#allocation101_spill] sm:$0xff] }
 0x70b   :  { %4856 = vmatmul.mubr.f32.vlgmr.msra.gmra.mrb[28].mxu0 %v4789_v56  ;;  %4927 = vmatmul.mubr.f32.vlgmr.msra.gmra.mrb[30].mxu1 %v4789_v56  ;;  %v10985_v56 = vld [vmem:[#allocation99_spill] sm:$0xff] }
 0x70c   :  { %7568 = vmatpush1.bf16.msra.mxu0 %v10966_v26  ;;  %7600 = vmatpush1.bf16.msra.mxu1 %v10967_v7  ;;  %v10988_v26 = vld [vmem:[#allocation41_spill] sm:$0xff]  ;;  %v10989_v7 = vld [vmem:[#allocation103_spill] sm:$0xff] }
 0x70d   :  { %7570 = vmatprep.subr.bf16.mxu0 %v10968_v42  ;;  %7602 = vmatprep.subr.bf16.mxu1 %v10969_v47  ;;  %v10990_v42 = vld [vmem:[#allocation43_spill] sm:$0xff]  ;;  %v10991_v47 = vld [vmem:[#allocation105_spill] sm:$0xff] }
 0x70e   :  { %4997 = vmatprep.mubr.f32.mxu0 %v10377_v54  ;;  %5068 = vmatprep.mubr.f32.mxu1 %v10377_v54 }
 0x710   :  { %7572 = vmatpush1.bf16.msra.mxu0 %v10970_v62  ;;  %7604 = vmatpush1.bf16.msra.mxu1 %v10971_v31  ;;  %v10992_v62 = vld [vmem:[#allocation45_spill] sm:$0xff]  ;;  %v10993_v31 = vld [vmem:[#allocation107_spill] sm:$0xff] }
 0x711   :  { %7574 = vmatprep.subr.bf16.mxu0 %v10972_v18  ;;  %7606 = vmatprep.subr.bf16.mxu1 %v10973_v45  ;;  %v10994_v18 = vld [vmem:[#allocation47_spill] sm:$0xff]  ;;  %v10995_v45 = vld [vmem:[#allocation109_spill] sm:$0xff] }
 0x714   :  { %7576 = vmatpush1.bf16.msra.mxu0 %v10974_v1  ;;  %7608 = vmatpush1.bf16.msra.mxu1 %v10975_v15  ;;  %v10996_v1 = vld [vmem:[#allocation48_spill] sm:$0xff]  ;;  %v10997_v15 = vld [vmem:[#allocation111_spill] sm:$0xff] }
 0x715   :  { %7578 = vmatprep.subr.bf16.mxu0 %v10976_v0  ;;  %7610 = vmatprep.subr.bf16.mxu1 %v10977_v41  ;;  %v4790_v0 = vld [vmem:[#allocation3] sm:$0xff]  ;;  %v10998_v41 = vld [vmem:[#allocation50_spill] sm:$0xff] }
 0x718   :  { %7580 = vmatpush1.bf16.msra.mxu0 %v10978_v25  ;;  %7612 = vmatpush1.bf16.msra.mxu1 %v10979_v13  ;;  %v10999_v25 = vld [vmem:[#allocation112_spill] sm:$0xff] }
 0x719   :  { %7582 = vmatprep.subr.bf16.mxu0 %v10980_v23  ;;  %7614 = vmatprep.subr.bf16.mxu1 %v10981_v6  ;;  %v11000_v13 = vld [vmem:[#allocation52_spill] sm:$0xff]  ;;  %v11001_v23 = vld [vmem:[#allocation113_spill] sm:$0xff]  ;;  %v11002_v6 = vld [vmem:[#allocation54_spill] sm:$0xff] }
 0x71c   :  { %7584 = vmatpush1.bf16.msra.mxu0 %v10982_v58  ;;  %7616 = vmatpush1.bf16.msra.mxu1 %v10983_v55  ;;  %v11003_v58 = vld [vmem:[#allocation114_spill] sm:$0xff]  ;;  %v11004_v55 = vld [vmem:[#allocation56_spill] sm:$0xff] }
 0x71d   :  { %7586 = vmatprep.subr.bf16.mxu0 %v10984_v61  ;;  %7618 = vmatprep.subr.bf16.mxu1 %v10985_v56  ;;  %v11005_v61 = vld [vmem:[#allocation115_spill] sm:$0xff]  ;;  %v11006_v56 = vld [vmem:[#allocation58_spill] sm:$0xff] }
 0x720   :  { %7588 = vmatpush1.bf16.msra.mxu0 %v10986_v49  ;;  %7620 = vmatpush1.bf16.msra.mxu1 %v10987_v2  ;;  %v11007_v49 = vld [vmem:[#allocation116_spill] sm:$0xff] }
 0x721   :  { %7590 = vmatprep.subr.bf16.mxu0 %v10988_v26  ;;  %7622 = vmatprep.subr.bf16.mxu1 %v10989_v7  ;;  %v11008_v2 = vld [vmem:[#allocation60_spill] sm:$0xff]  ;;  %v11009_v26 = vld [vmem:[#allocation117_spill] sm:$0xff]  ;;  %v11010_v7 = vld [vmem:[#allocation62_spill] sm:$0xff] }
 0x724   :  { %7592 = vmatpush1.bf16.msra.mxu0 %v10990_v42  ;;  %7624 = vmatpush1.bf16.msra.mxu1 %v10991_v47  ;;  %v11011_v42 = vld [vmem:[#allocation118_spill] sm:$0xff]  ;;  %v11012_v47 = vld [vmem:[#allocation64_spill] sm:$0xff] }
 0x725   :  { %7594 = vmatprep.subr.bf16.mxu0 %v10992_v62  ;;  %7626 = vmatprep.subr.bf16.mxu1 %v10993_v31  ;;  %v11013_v62 = vld [vmem:[#allocation119_spill] sm:$0xff]  ;;  %v11014_v31 = vld [vmem:[#allocation66_spill] sm:$0xff] }
 0x728   :  { %7596 = vmatpush1.bf16.msra.mxu0 %v10994_v18  ;;  %7628 = vmatpush1.bf16.msra.mxu1 %v10995_v45  ;;  %v11015_v18 = vld [vmem:[#allocation120_spill] sm:$0xff] }
 0x729   :  { %7630 = vmatprep.subr.bf16.mxu0 %v10996_v1  ;;  %7662 = vmatprep.subr.bf16.mxu1 %v10997_v15  ;;  %v11016_v45 = vld [vmem:[#allocation68_spill] sm:$0xff]  ;;  %v11017_v1 = vld [vmem:[#allocation121_spill] sm:$0xff]  ;;  %v11018_v15 = vld [vmem:[#allocation70_spill] sm:$0xff] }
 0x72b   :  { %4998 = vmatmul.mubr.f32.vlgmr.msra.gmra.mrb[30].mxu0 %v4790_v0  ;;  %5069 = vmatmul.mubr.f32.vlgmr.msra.gmra.mrb[32].mxu1 %v4790_v0  ;;  %v11019_v0 = vld [vmem:[#allocation122_spill] sm:$0xff] }
 0x72c   :  { %7632 = vmatpush1.bf16.msra.mxu0 %v10998_v41  ;;  %7664 = vmatpush1.bf16.msra.mxu1 %v10999_v25  ;;  %v11020_v41 = vld [vmem:[#allocation72_spill] sm:$0xff]  ;;  %v11021_v25 = vld [vmem:[#allocation123_spill] sm:$0xff] }
 0x72d   :  { %7634 = vmatprep.subr.bf16.mxu0 %v11000_v13  ;;  %7666 = vmatprep.subr.bf16.mxu1 %v11001_v23  ;;  %v11022_v13 = vld [vmem:[#allocation74_spill] sm:$0xff]  ;;  %v11023_v23 = vld [vmem:[#allocation124_spill] sm:$0xff] }
 0x72e   :  { %5139 = vmatprep.mubr.f32.mxu0 %v10377_v54  ;;  %5210 = vmatprep.mubr.f32.mxu1 %v10377_v54 }
 0x730   :  { %7636 = vmatpush1.bf16.msra.mxu0 %v11002_v6  ;;  %7668 = vmatpush1.bf16.msra.mxu1 %v11003_v58  ;;  %v11024_v6 = vld [vmem:[#allocation76_spill] sm:$0xff]  ;;  %v11025_v58 = vld [vmem:[#allocation125_spill] sm:$0xff] }
 0x731   :  { %7638 = vmatprep.subr.bf16.mxu0 %v11004_v55  ;;  %7670 = vmatprep.subr.bf16.mxu1 %v11005_v61  ;;  %v11026_v55 = vld [vmem:[#allocation78_spill] sm:$0xff] }
 0x732   :  { %v11027_v61 = vld [vmem:[#allocation126_spill] sm:$0xff] }
 0x734   :  { %7640 = vmatpush1.bf16.msra.mxu0 %v11006_v56  ;;  %7672 = vmatpush1.bf16.msra.mxu1 %v11007_v49  ;;  %v11028_v56 = vld [vmem:[#allocation80_spill] sm:$0xff]  ;;  %v11029_v49 = vld [vmem:[#allocation127_spill] sm:$0xff] }
 0x735   :  { %7642 = vmatprep.subr.bf16.mxu0 %v11008_v2  ;;  %7674 = vmatprep.subr.bf16.mxu1 %v11009_v26 }
 0x738   :  { %7644 = vmatpush1.bf16.msra.mxu0 %v11010_v7  ;;  %7676 = vmatpush1.bf16.msra.mxu1 %v11011_v42  ;;  %v11030_v7 = vld [vmem:[#allocation138_spill] sm:$0xff] }
 0x739   :  { %7646 = vmatprep.subr.bf16.mxu0 %v11012_v47  ;;  %7678 = vmatprep.subr.bf16.mxu1 %v11013_v62 }
 0x73c   :  { %7648 = vmatpush1.bf16.msra.mxu0 %v11014_v31  ;;  %7680 = vmatpush1.bf16.msra.mxu1 %v11015_v18 }
 0x73d   :  { %7650 = vmatprep.subr.bf16.mxu0 %v11016_v45  ;;  %7682 = vmatprep.subr.bf16.mxu1 %v11017_v1 }
 0x740   :  { %7652 = vmatpush1.bf16.msra.mxu0 %v11018_v15  ;;  %7684 = vmatpush1.bf16.msra.mxu1 %v11019_v0 }
 0x741   :  { %7654 = vmatprep.subr.bf16.mxu0 %v11020_v41  ;;  %7686 = vmatprep.subr.bf16.mxu1 %v11021_v25 }
 0x744   :  { %7656 = vmatpush1.bf16.msra.mxu0 %v11022_v13  ;;  %7688 = vmatpush1.bf16.msra.mxu1 %v11023_v23 }
 0x745   :  { %7658 = vmatprep.subr.bf16.mxu0 %v11024_v6  ;;  %7690 = vmatprep.subr.bf16.mxu1 %v11025_v58 }
 0x748   :  { %7660 = vmatpush1.bf16.msra.mxu0 %v11026_v55  ;;  %7692 = vmatpush1.bf16.msra.mxu1 %v11027_v61 }
 0x749   :  { %7694 = vmatprep.subr.bf16.mxu0 %v11028_v56  ;;  %7726 = vmatprep.subr.bf16.mxu1 %v11029_v49 }
 0x79e   :  { %v4513_v2 = vpop.f32.mrb[24].mxu0  ;;  %v4584_v26 = vpop.f32.mrb[26].mxu1 }
 0x79f   :  { %v7839_v42 = vadd.f32 %v4513_v2, %v11030_v7  ;;  %v4515_v47 = vpop.f32.mrb[25].mxu0  ;;  %v4586_v62 = vpop.f32.mrb[27].mxu1  ;;  %v7841_v0 = vadd.f32 %v4584_v26, %v10563_v20 }
 0x7a0   :  { %v7840_v31 = vadd.f32 %v4515_v47, %v10562_v5  ;;  %v7842_v1 = vadd.f32 %v4586_v62, %v8938_v51 }
 0x7a1   :  { %v5640_v18 = vmul.f32 -1.442695, %v7839_v42 }
 0x7a2   :  { %v5641_v45 = vmul.f32 -1.442695, %v7840_v31  ;;  %v5642_v15 = vmul.f32 -1.442695, %v7842_v1 }
 0x7a3   :  { %8119 = vpow2.f32 %v5640_v18 }
 0x7a4   :  { %8121 = vpow2.f32 %v5641_v45 }
 0x7a5   :  { %8123 = vpow2.f32 %v5642_v15 }
 0x7a6   :  { %8125 = vtanh.f32 %v7841_v0 }
 0x7ad   :  { %v8120_v41 = vpop.eup %8119 }
 0x7ae   :  { %v8122_v25 = vpop.eup %8121  ;;  %v4742_v13 = vadd.f32 1.0, %v8120_v41 }
 0x7af   :  { %v4748_v23 = vadd.f32 1.0, %v8122_v25  ;;  %v8124_v6 = vpop.eup %8123 }
 0x7b0   :  { %8127 = vrcp.f32 %v4742_v13  ;;  %v8126_v58 = vpop.eup %8125  ;;  %v4755_v49 = vadd.f32 1.0, %v8124_v6 }
 0x7b1   :  { %8129 = vrcp.f32 %v4748_v23 }
 0x7b2   :  { %8131 = vrcp.f32 %v4755_v49  ;;  %v5440_v49 = vld [vmem:[#allocation9 + $0x38] sm:$0xff] }
 0x7ba   :  { %v8128_v55 = vpop.eup %8127 }
 0x7bb   :  { %v8130_v61 = vpop.eup %8129  ;;  %v4759_v56 = vmul.f32 %v8128_v55, %v8126_v58 }
 0x7bc   :  { %v4758_v2 = vmul.f32 %v8130_v61, %v9764_v48  ;;  %v8132_v48 = vpop.eup %8131 }
 0x7be   :  { %v9924_v42 = vadd.f32 %v4759_v56, %v4758_v2  ;;  %v4659_v47 = vpop.f32.mrb[26].mxu0  ;;  %v4730_v26 = vpop.f32.mrb[28].mxu1  ;;  %v5439_v56 = vld [vmem:[#allocation9 + $0x30] sm:$0xff] }
 0x7bf   :  { %v7843_v62 = vadd.f32 %v4659_v47, %v8947_v40  ;;  %v4661_v31 = vpop.f32.mrb[27].mxu0  ;;  %v4732_v18 = vpop.f32.mrb[29].mxu1  ;;  %v7845_v13 = vadd.f32 %v4730_v26, %v8954_v33  ;;  %v7771_v2 = vpack.c.bf16 %v5440_v49, %v5439_v56  ;;  %v5457_v47 = vld [vmem:[#allocation9 + $0xc0] sm:$0xff]  ;;  %v5458_v26 = vld [vmem:[#allocation9 + $0xc8] sm:$0xff] }
 0x7c0   :  { %v7844_v45 = vadd.f32 %v4661_v31, %v8945_v32  ;;  %8133 = vtanh.f32 %v9924_v42  ;;  %v7846_v0 = vadd.f32 %v4732_v18, %v8958_v17  ;;  %v7773_v31 = vpack.c.bf16 %v5458_v26, %v5457_v47  ;;  %v5442_v18 = vld [vmem:[#allocation9 + $0x48] sm:$0xff] }
 0x7c1   :  { %v5643_v1 = vmul.f32 -1.442695, %v7843_v62  ;;  %v5441_v62 = vld [vmem:[#allocation9 + $0x40] sm:$0xff] }
 0x7c2   :  { %v5644_v15 = vmul.f32 -1.442695, %v7844_v45  ;;  %v5645_v25 = vmul.f32 -1.442695, %v7846_v0  ;;  %v5459_v45 = vld [vmem:[#allocation9 + $0xd0] sm:$0xff] }
 0x7c3   :  { %8135 = vpow2.f32 %v5643_v1  ;;  %v5460_v1 = vld [vmem:[#allocation9 + $0xd8] sm:$0xff] }
 0x7c4   :  { %8137 = vpow2.f32 %v5644_v15  ;;  %v7775_v15 = vpack.c.bf16 %v5442_v18, %v5441_v62  ;;  %v7777_v0 = vpack.c.bf16 %v5460_v1, %v5459_v45 }
 0x7c5   :  { %8139 = vpow2.f32 %v5645_v25  ;;  %v5461_v25 = vld [vmem:[#allocation9 + $0xe0] sm:$0xff] }
 0x7c6   :  { %8141 = vtanh.f32 %v7845_v13  ;;  %v5462_v13 = vld [vmem:[#allocation9 + $0xe8] sm:$0xff] }
 0x7ca   :  { %v8134_v41 = vpop.eup %8133 }
 0x7cb   :  { %v9931_v23 = vmul.f32 %v8134_v41, %v8132_v48  ;;  %v5443_v48 = vld [vmem:[#allocation9 + $0x50] sm:$0xff]  ;;  %v5444_v41 = vld [vmem:[#allocation9 + $0x58] sm:$0xff] }
 0x7cd   :  { %v8136_v6 = vpop.eup %8135  ;;  %5140 = vmatmul.mubr.f32.vlgmr.msra.gmra.mrb[28].mxu0 %v9931_v23  ;;  %5211 = vmatmul.mubr.f32.vlgmr.msra.gmra.mrb[30].mxu1 %v9931_v23 }
 0x7ce   :  { %v8138_v58 = vpop.eup %8137  ;;  %v4766_v55 = vadd.f32 1.0, %v8136_v6  ;;  %7696 = vmatpush1.bf16.msra.mxu0 %v10471_v34  ;;  %7728 = vmatpush1.bf16.msra.mxu1 %v8784_v16  ;;  %v7779_v6 = vpack.c.bf16 %v5444_v41, %v5443_v48 }
 0x7cf   :  { %v4772_v61 = vadd.f32 1.0, %v8138_v58  ;;  %7698 = vmatprep.subr.bf16.mxu0 %v10472_v4  ;;  %7730 = vmatprep.subr.bf16.mxu1 %v8787_v53  ;;  %v8140_v16 = vpop.eup %8139  ;;  %v7781_v58 = vpack.c.bf16 %v5462_v13, %v5461_v25 }
 0x7d0   :  { %8143 = vrcp.f32 %v4766_v55  ;;  %5285 = vmatprep.mubr.f32.mxu0 %v10377_v54  ;;  %5356 = vmatprep.mubr.f32.mxu1 %v10377_v54  ;;  %v8142_v53 = vpop.eup %8141  ;;  %v4779_v4 = vadd.f32 1.0, %v8140_v16  ;;  %v5445_v55 = vld [vmem:[#allocation9 + $0x60] sm:$0xff]  ;;  %v5463_v16 = vld [vmem:[#allocation9 + $0xf0] sm:$0xff] }
 0x7d1   :  { %8145 = vrcp.f32 %v4772_v61  ;;  %v5446_v61 = vld [vmem:[#allocation9 + $0x68] sm:$0xff] }
 0x7d2   :  { %7700 = vmatpush1.bf16.msra.mxu0 %v10473_v35  ;;  %7732 = vmatpush1.bf16.msra.mxu1 %v8793_v37  ;;  %8147 = vrcp.f32 %v4779_v4  ;;  %v5448_v4 = vld [vmem:[#allocation9 + $0x78] sm:$0xff] }
 0x7d3   :  { %7702 = vmatprep.subr.bf16.mxu0 %v10565_v36  ;;  %7734 = vmatprep.subr.bf16.mxu1 %v10566_v52  ;;  %v5436_v52 = vld [vmem:[#allocation9 + $0x18] sm:$0xff] }
 0x7d6   :  { %7704 = vmatpush1.bf16.msra.mxu0 %v10567_v14  ;;  %7736 = vmatpush1.bf16.msra.mxu1 %v10568_v10  ;;  %v5453_v14 = vld [vmem:[#allocation9 + $0xa0] sm:$0xff]  ;;  %v5454_v10 = vld [vmem:[#allocation9 + $0xa8] sm:$0xff] }
 0x7d7   :  { %7706 = vmatprep.subr.bf16.mxu0 %v10569_v3  ;;  %7738 = vmatprep.subr.bf16.mxu1 %v10570_v30  ;;  %v7765_v3 = vpack.c.bf16 %v5454_v10, %v5453_v14  ;;  %v5437_v30 = vld [vmem:[#allocation9 + $0x20] sm:$0xff] }
 0x7da   :  { %v8144_v54 = vpop.eup %8143  ;;  %7708 = vmatpush1.bf16.msra.mxu0 %v10480_v29  ;;  %7740 = vmatpush1.bf16.msra.mxu1 %v10481_v57  ;;  %v5433_v57 = vld [vmem:[#allocation9] sm:$0xff] }
 0x7db   :  { %v8146_v37 = vpop.eup %8145  ;;  %v4783_v34 = vmul.f32 %v8144_v54, %v8142_v53  ;;  %7710 = vmatprep.subr.bf16.mxu0 %v10482_v59  ;;  %7742 = vmatprep.subr.bf16.mxu1 %v10483_v39  ;;  %v5434_v59 = vld [vmem:[#allocation9 + $0x8] sm:$0xff]  ;;  %v5464_v53 = vld [vmem:[#allocation9 + $0xf8] sm:$0xff]  ;;  %v7783_v54 = vpack.c.bf16 %v5446_v61, %v5445_v55 }
 0x7dc   :  { %v4782_v35 = vmul.f32 %v8146_v37, %v9794_v11  ;;  %v8148_v39 = vpop.eup %8147  ;;  %v7785_v37 = vpack.c.bf16 %v5464_v53, %v5463_v16  ;;  %v11031_v16 = vld [vmem:[#allocation141_spill] sm:$0xff]  ;;  %v11032_v53 = vld [vmem:[#allocation84_spill] sm:$0xff] }
 0x7de   :  { %v9954_v36 = vadd.f32 %v4783_v34, %v4782_v35  ;;  %7712 = vmatpush1.bf16.msra.mxu0 %v10484_v46  ;;  %7744 = vmatpush1.bf16.msra.mxu1 %v10485_v63  ;;  %v5450_v63 = vld [vmem:[#allocation9 + $0x88] sm:$0xff]  ;;  %v5447_v34 = vld [vmem:[#allocation9 + $0x70] sm:$0xff] }
 0x7df   :  { %7714 = vmatprep.subr.bf16.mxu0 %v10486_v27  ;;  %7746 = vmatprep.subr.bf16.mxu1 %v10571_v44  ;;  %v5438_v44 = vld [vmem:[#allocation9 + $0x28] sm:$0xff]  ;;  %v7787_v35 = vpack.c.bf16 %v5448_v4, %v5447_v34  ;;  %v11037_v4 = vld [vmem:[#allocation100_spill] sm:$0xff] }
 0x7e0   :  { %8149 = vtanh.f32 %v9954_v36  ;;  %v11036_v34 = vld [vmem:[#allocation133_spill] sm:$0xff] }
 0x7e2   :  { %7716 = vmatpush1.bf16.msra.mxu0 %v10487_v22  ;;  %7748 = vmatpush1.bf16.msra.mxu1 %v10572_v60  ;;  %v7759_v22 = vpack.c.bf16 %v5434_v59, %v5433_v57  ;;  %v7767_v60 = vpack.c.bf16 %v5438_v44, %v5437_v30 }
 0x7e3   :  { %7718 = vmatprep.subr.bf16.mxu0 %v10488_v12  ;;  %7750 = vmatprep.subr.bf16.mxu1 %v8821_v38  ;;  %v5449_v38 = vld [vmem:[#allocation9 + $0x80] sm:$0xff]  ;;  %v5451_v12 = vld [vmem:[#allocation9 + $0x90] sm:$0xff] }
 0x7e4   :  { %v7757_v29 = vpack.c.bf16 %v5450_v63, %v5449_v38 }
 0x7e6   :  { %7720 = vmatpush1.bf16.msra.mxu0 %v10489_v43  ;;  %7752 = vmatpush1.bf16.msra.mxu1 %v10573_v8  ;;  %v5452_v43 = vld [vmem:[#allocation9 + $0x98] sm:$0xff]  ;;  %v5455_v8 = vld [vmem:[#allocation9 + $0xb0] sm:$0xff] }
 0x7e7   :  { %7722 = vmatprep.subr.bf16.mxu0 %v10490_v21  ;;  %7754 = vmatprep.subr.bf16.mxu1 %v10574_v9  ;;  %v7761_v21 = vpack.c.bf16 %v5452_v43, %v5451_v12  ;;  %v5456_v9 = vld [vmem:[#allocation9 + $0xb8] sm:$0xff] }
 0x7e8   :  { %v7769_v11 = vpack.c.bf16 %v5456_v9, %v5455_v8 }
 0x7ea   :  { %v8150_v27 = vpop.eup %8149  ;;  %7724 = vmatpush1.bf16.msra.mxu0 %v10491_v19  ;;  %7756 = vmatpush1.bf16.msra.mxu1 %v8830_v50  ;;  %v5435_v19 = vld [vmem:[#allocation9 + $0x10] sm:$0xff] }
 0x7eb   :  { %v9971_v46 = vmul.f32 %v8150_v27, %v8148_v39  ;;  %7758 = vmatprep.subr.bf16.mxu0 %v7757_v29  ;;  %v7763_v50 = vpack.c.bf16 %v5436_v52, %v5435_v19 }
 0x7ed   :  { %5286 = vmatmul.mubr.f32.vlgmr.msra.gmra.mrb[30].mxu0 %v9971_v46  ;;  %5357 = vmatmul.mubr.f32.vlgmr.msra.gmra.mrb[32].mxu1 %v9971_v46 }
 0x7ee   :  { %7760 = vmatpush3.bf16.msra.mxu0 %v7759_v22 }
 0x7ef   :  { %7762 = vmatprep.subr.bf16.mxu0 %v7761_v21 }
 0x7f2   :  { %7764 = vmatpush3.bf16.msra.mxu0 %v7763_v50 }
 0x7f3   :  { %7766 = vmatprep.subr.bf16.mxu0 %v7765_v3 }
 0x7f6   :  { %7768 = vmatpush3.bf16.msra.mxu0 %v7767_v60 }
 0x7f7   :  { %7770 = vmatprep.subr.bf16.mxu0 %v7769_v11 }
 0x7fa   :  { %7772 = vmatpush3.bf16.msra.mxu0 %v7771_v2 }
 0x7fb   :  { %7774 = vmatprep.subr.bf16.mxu0 %v7773_v31 }
 0x7fe   :  { %7776 = vmatpush3.bf16.msra.mxu0 %v7775_v15 }
 0x7ff   :  { %7778 = vmatprep.subr.bf16.mxu0 %v7777_v0 }
 0x802   :  { %7780 = vmatpush3.bf16.msra.mxu0 %v7779_v6 }
 0x803   :  { %7782 = vmatprep.subr.bf16.mxu0 %v7781_v58 }
 0x806   :  { %7784 = vmatpush3.bf16.msra.mxu0 %v7783_v54  ;;  %v11033_v54 = vld [vmem:[#allocation96_spill] sm:$0xff] }
 0x807   :  { %7786 = vmatprep.subr.bf16.mxu0 %v7785_v37  ;;  %v11034_v37 = vld [vmem:[#allocation102_spill] sm:$0xff] }
 0x80a   :  { %7788 = vmatpush3.bf16.msra.mxu0 %v7787_v35  ;;  %v11038_v35 = vld [vmem:[#allocation132_spill] sm:$0xff] }
 0x8a0   :  { %v5141_v39 = vpop.f32.mrb[28].mxu0  ;;  %v5212_v27 = vpop.f32.mrb[30].mxu1 }
 0x8a1   :  { %v7847_v38 = vadd.f32 %v5141_v39, %v11030_v7  ;;  %v5143_v63 = vpop.f32.mrb[29].mxu0  ;;  %v5214_v29 = vpop.f32.mrb[31].mxu1  ;;  %v7849_v21 = vadd.f32 %v5212_v27, %v10563_v20  ;;  %v11039_v39 = vld [vmem:[#allocation86_spill] sm:$0xff]  ;;  %v5652_v27 = vld [vmem:[%s10022_s5] ss:$0 sm:$0xff]  ;;  %s8310_s5 = smov [#allocation11]  }
 0x8a2   :  { %v7848_v57 = vadd.f32 %v5143_v63, %v10562_v5  ;;  %v7850_v12 = vadd.f32 %v5214_v29, %v8938_v51  ;;  %s5590_s27 = sshll.u32 %s8310_s5, 4  ;;  %s5591_s27 = int_to_ptr.vmem [resolvable:$true] %s5590_s27 }
 0x8a3   :  { %v5646_v59 = vmul.f32 -1.442695, %v7847_v38  ;;  %s8271_s28 = scalar_lea.vmem %s5591_s27, 1024  ;;  %p8276_p5 = scmp.lt.s32.totalorder %s5591_s27, %s5591_s27 }
 0x8a4   :  { %v5647_v22 = vmul.f32 -1.442695, %v7848_v57  ;;  %v5648_v43 = vmul.f32 -1.442695, %v7850_v12  ;;  %p8272_p4 = scmp.ne.s32.totalorder %s5591_s27, %s8271_s28  ;;  %p8277_p6 = scmp.lt.s32.totalorder %s8271_s28, %s8271_s28 }
 0x8a5   :  { %8151 = vpow2.f32 %v5646_v59 }
 0x8a6   :  { %8153 = vpow2.f32 %v5647_v22  ;;  %p8278_p7 = por %p8277_p6, %p8276_p5 }
 0x8a7   :  { %8155 = vpow2.f32 %v5648_v43 }
 0x8a8   :  { %8157 = vtanh.f32 %v7849_v21  ;;  %p8279_p8 = pnand %p8278_p7, %p8272_p4 }
 0x8af   :  { %v8152_v19 = vpop.eup %8151 }
 0x8b0   :  { %v8154_v52 = vpop.eup %8153  ;;  %v5370_v50 = vadd.f32 1.0, %v8152_v19 }
 0x8b1   :  { %v5376_v14 = vadd.f32 1.0, %v8154_v52  ;;  %v8156_v7 = vpop.eup %8155 }
 0x8b2   :  { %8159 = vrcp.f32 %v5370_v50  ;;  %v8158_v10 = vpop.eup %8157  ;;  %v5383_v44 = vadd.f32 1.0, %v8156_v7 }
 0x8b3   :  { %8161 = vrcp.f32 %v5376_v14 }
 0x8b4   :  { %8163 = vrcp.f32 %v5383_v44 }
 0x8bc   :  { %v8160_v5 = vpop.eup %8159 }
 0x8bd   :  { %v8162_v3 = vpop.eup %8161  ;;  %v5387_v30 = vmul.f32 %v8160_v5, %v8158_v10 }
 0x8be   :  { %v5386_v60 = vmul.f32 %v8162_v3, %v9924_v42  ;;  %v8164_v62 = vpop.eup %8163 }
 0x8c0   :  { %v5287_v51 = vpop.f32.mrb[30].mxu0  ;;  %v5358_v8 = vpop.f32.mrb[32].mxu1  ;;  %v5388_v9 = vadd.f32 %v5387_v30, %v5386_v60 }
 0x8c1   :  { %v7851_v20 = vadd.f32 %v5287_v51, %v8947_v40  ;;  %v5289_v11 = vpop.f32.mrb[31].mxu0  ;;  %v5360_v56 = vpop.f32.mrb[33].mxu1  ;;  %v7853_v18 = vadd.f32 %v5358_v8, %v8954_v33 }
 0x8c2   :  { %v7852_v49 = vadd.f32 %v5289_v11, %v8945_v32  ;;  %8165 = vtanh.f32 %v5388_v9  ;;  %v7854_v26 = vadd.f32 %v5360_v56, %v8958_v17 }
 0x8c3   :  { %v5649_v2 = vmul.f32 -1.442695, %v7851_v20 }
 0x8c4   :  { %v5650_v47 = vmul.f32 -1.442695, %v7852_v49  ;;  %v5651_v42 = vmul.f32 -1.442695, %v7854_v26 }
 0x8c5   :  { %8167 = vpow2.f32 %v5649_v2 }
 0x8c6   :  { %8169 = vpow2.f32 %v5650_v47 }
 0x8c7   :  { %8171 = vpow2.f32 %v5651_v42 }
 0x8c8   :  { %8173 = vtanh.f32 %v7853_v18 }
 0x8cc   :  { %v8166_v31 = vpop.eup %8165 }
 0x8cd   :  { %v5390_v45 = vmul.f32 %v8166_v31, %v8164_v62 }
 0x8cf   :  { %v8168_v1 = vpop.eup %8167 }
 0x8d0   :  { %v8170_v15 = vpop.eup %8169  ;;  %v5394_v40 = vadd.f32 1.0, %v8168_v1 }
 0x8d1   :  { %v5400_v0 = vadd.f32 1.0, %v8170_v15  ;;  %v8172_v32 = vpop.eup %8171 }
 0x8d2   :  { %8175 = vrcp.f32 %v5394_v40  ;;  %v8174_v48 = vpop.eup %8173  ;;  %v5407_v17 = vadd.f32 1.0, %v8172_v32 }
 0x8d3   :  { %8177 = vrcp.f32 %v5400_v0 }
 0x8d4   :  { %8179 = vrcp.f32 %v5407_v17 }
 0x8dc   :  { %v8176_v41 = vpop.eup %8175 }
 0x8dd   :  { %v8178_v25 = vpop.eup %8177  ;;  %v5411_v13 = vmul.f32 %v8176_v41, %v8174_v48 }
 0x8de   :  { %v5410_v6 = vmul.f32 %v8178_v25, %v9954_v36  ;;  %v8180_v33 = vpop.eup %8179  ;;  %v11035_v36 = vld [vmem:[#allocation98_spill] sm:$0xff] }
 0x8e0   :  { %v5412_v58 = vadd.f32 %v5411_v13, %v5410_v6 }
 0x8e2   :  { %8181 = vtanh.f32 %v5412_v58 }
 0x8ec   :  { %v8182_v55 = vpop.eup %8181 }
 0x8ed   :  { %v5414_v61 = vmul.f32 %v8182_v55, %v8180_v33 }
 0x8ef   :  { %5536 = vmatprep.mubr.f32.mxu0 %v5414_v61 }
 0x8f0   :  { %5537 = vmatmul.mubr.f32.vlgmr.msra.gmra.mrb[32].mxu0 %v11031_v16 }
 0x8f1   :  { %5541 = vmatprep.mubr.f32.mxu0 %v9971_v46  ;;  %v11040_v46 = vld [vmem:[#allocation82_spill] sm:$0xff] }
 0x8f4   :  { %5542 = vmatmul.mubr.f32.gmra.mrb[34].mxu0 %v11032_v53 }
 0x8f5   :  { %5546 = vmatprep.mubr.f32.mxu0 %v9811_v24 }
 0x8f8   :  { %5547 = vmatmul.mubr.f32.gmra.mrb[36].mxu0 %v11033_v54 }
 0x8f9   :  { %5551 = vmatprep.mubr.f32.mxu0 %v11034_v37 }
 0x8fc   :  { %5552 = vmatmul.mubr.f32.gmra.mrb[38].mxu0 %v11035_v36 }
 0x8fd   :  { %5556 = vmatprep.mubr.f32.mxu0 %v11036_v34 }
 0x900   :  { %5557 = vmatmul.mubr.f32.gmra.mrb[40].mxu0 %v11037_v4 }
 0x901   :  { %5561 = vmatprep.mubr.f32.mxu0 %v11038_v35 }
 0x904   :  { %5562 = vmatmul.mubr.f32.gmra.mrb[42].mxu0 %v9771_v28 }
 0x905   :  { %5566 = vmatprep.mubr.f32.mxu0 %v11039_v39 }
 0x908   :  { %5567 = vmatmul.mubr.f32.gmra.mrb[44].mxu0 %v9931_v23 }
 0x909   :  { %5571 = vmatprep.mubr.f32.mxu0 %v11040_v46 }
 0x90c   :  { %5572 = vmatmul.mubr.f32.gmra.mrb[46].mxu0 %v5390_v45 }
 0x9c3   :  { %v5685_v24 = vpop.f32.mrb[32].mxu0 }
 0x9c4   :  { %v5686_v38 = vpop.f32.mrb[33].mxu0 }
 0x9c5   :  { %v5687_v63 = vadd.f32 %v5686_v38, %v5685_v24 }
 0x9c7   :  { %v5539_v29 = vadd.f32 %v5687_v63, %v5652_v27  ;;  %v5688_v57 = vpop.f32.mrb[34].mxu0 }
 0x9c8   :  { %v5689_v59 = vpop.f32.mrb[35].mxu0 }
 0x9c9   :  { %5577 = vst [vmem:[#allocation11] sm:$0xff] %v5539_v29  ;;  %v5690_v22 = vadd.f32 %v5689_v59, %v5688_v57 }
 0x9cb   :  { %v5544_v28 = vadd.f32 %v5690_v22, %v5652_v27  ;;  %v5691_v12 = vpop.f32.mrb[36].mxu0 }
 0x9cc   :  { %v5692_v43 = vpop.f32.mrb[37].mxu0 }
 0x9cd   :  { %5578 = vst [vmem:[#allocation11 + $0x8] sm:$0xff] %v5544_v28  ;;  %v5693_v23 = vadd.f32 %v5692_v43, %v5691_v12 }
 0x9cf   :  { %v5549_v21 = vadd.f32 %v5693_v23, %v5652_v27  ;;  %v5694_v19 = vpop.f32.mrb[38].mxu0 }
 0x9d0   :  { %v5695_v52 = vpop.f32.mrb[39].mxu0 }
 0x9d1   :  { %5579 = vst [vmem:[#allocation11 + $0x10] sm:$0xff] %v5549_v21  ;;  %v5696_v50 = vadd.f32 %v5695_v52, %v5694_v19 }
 0x9d3   :  { %v5554_v14 = vadd.f32 %v5696_v50, %v5652_v27  ;;  %v5697_v7 = vpop.f32.mrb[40].mxu0 }
 0x9d4   :  { %v5698_v10 = vpop.f32.mrb[41].mxu0 }
 0x9d5   :  { %5580 = vst [vmem:[#allocation11 + $0x18] sm:$0xff] %v5554_v14  ;;  %v5699_v5 = vadd.f32 %v5698_v10, %v5697_v7 }
 0x9d7   :  { %v5559_v3 = vadd.f32 %v5699_v5, %v5652_v27  ;;  %v5700_v30 = vpop.f32.mrb[42].mxu0 }
 0x9d8   :  { %v5701_v44 = vpop.f32.mrb[43].mxu0 }
 0x9d9   :  { %5581 = vst [vmem:[#allocation11 + $0x20] sm:$0xff] %v5559_v3  ;;  %v5702_v60 = vadd.f32 %v5701_v44, %v5700_v30 }
 0x9db   :  { %v5564_v51 = vadd.f32 %v5702_v60, %v5652_v27  ;;  %v5703_v8 = vpop.f32.mrb[44].mxu0 }
 0x9dc   :  { %v5704_v9 = vpop.f32.mrb[45].mxu0 }
 0x9dd   :  { %5582 = vst [vmem:[#allocation11 + $0x28] sm:$0xff] %v5564_v51  ;;  %v5705_v20 = vadd.f32 %v5704_v9, %v5703_v8 }
 0x9df   :  { %v5569_v11 = vadd.f32 %v5705_v20, %v5652_v27  ;;  %v5706_v56 = vpop.f32.mrb[46].mxu0 }
 0x9e0   :  { %v5707_v49 = vpop.f32.mrb[47].mxu0 }
 0x9e1   :  { %5583 = vst [vmem:[#allocation11 + $0x30] sm:$0xff] %v5569_v11  ;;  %v5708_v2 = vadd.f32 %v5707_v49, %v5706_v56 }
 0x9e3   :  { %v5574_v47 = vadd.f32 %v5708_v2, %v5652_v27 }
 0x9e5   :  { %5584 = vst [vmem:[#allocation11 + $0x38] sm:$0xff] %v5574_v47 }
 0x9e6   :  { %8282 = shalt.err (!%p8279_p8)
}
 0x9e7   :  { %s8283_s9 = scalar_lea.hbm %s10023_s6, 1024 }
 0x9e8   :  { %p8284_p9 = scmp.ne.s32.totalorder %s10023_s6, %s8283_s9  ;;  %p8287_p10 = scmp.lt.u32.totalorder %s8283_s9, %s10023_s6 }
 0x9ea   :  { %p8289_p11 = pnand %p8287_p10, %p8284_p9 }
 0x9ec   :  { %8292 = shalt.err (!%p8289_p11)
}
 0x9ed   :  { %5596 = dma.vmem_to_hbm [thread:$0]  %s5591_s27, 1024, %s10023_s6, [#allocation5], %s8305_s1, %s8305_s1, %s8306_s21  }
 0x9ee   :  { %8299 = dma.done.wait [#allocation5], 1024  }
 0x9ef   :  { %8300 = vsyncadd [#allocation5], 4294966272 }
 0x9f0   :  { %5600 = vsyncpa [#allocation4], 1 }
 0x9f1   :  { %5601 = vsyncpa [#allocation7], 1 }
 0x9f2   :  { %5602 = vsyncpa [#allocation10], 1 }
 0x9f3   :  { %5603 = vsyncpa [#allocation5], 1 }

</bundles_post_ra>
